<compile_context>
chip_gen: v7x
topology: tpu7x:2x2x1
jax: 0.10.0
libtpu: 0.0.40
codegen_flags: <defaults>
</compile_context>

<pallas_src>
import math

import jax
import jax.numpy as jnp
from jax.experimental import pallas as pl
from jax.experimental.pallas import tpu as pltpu

# Module hyper-parameters (defaults of ActionDecoder.__init__)
EMBED_DIM = 128
HIDDEN_DIM = 256
NUM_HEADS = 4
NUM_LAYERS = 2
HEAD_DIM = EMBED_DIM // NUM_HEADS
LN_EPS = 1e-5
TANH_CLIP = 10.0
NEG_MASK = -1e9   # stand-in for -inf used by nn.MultiheadAttention bool mask
NEG_FILL = -1e8   # SingleHeadAttention masked_fill value


def _layernorm(x, gamma, beta):
    mean = jnp.mean(x, axis=-1, keepdims=True)
    var = jnp.mean(jnp.square(x - mean), axis=-1, keepdims=True)
    return (x - mean) * jax.lax.rsqrt(var + LN_EPS) * gamma + beta


def action_decoder_kernel(
    agent_ref, mask_ref,
    wq_ref, bq_ref, kT_ref, v_ref, wo_ref, bo_ref,
    g1_ref, be1_ref, w1_ref, bf1_ref, w2_ref, bf2_ref, g2_ref, be2_ref,
    awq_ref, kaT_ref,
    out_ref,
):
    x = agent_ref[...].astype(jnp.float32)        # (M, E), M = batch_block * A
    masked = mask_ref[...] > 0.5                  # (M, C) bool, True == disallowed
    # Additive mask bias, computed once per grid step (replaces per-head selects).
    bias = jnp.where(masked, jnp.float32(NEG_MASK), jnp.float32(0.0))

    for l in range(NUM_LAYERS):
        # ---- multi-head cross attention: q from agents, k/v from (shared) cities ----
        x_b = x.astype(jnp.bfloat16)
        attn = jnp.zeros_like(x)                  # f32 accumulator for output proj
        for h in range(NUM_HEADS):
            # per-head weights pre-split in the wrapper -> no 32-lane slicing.
            qh = jnp.dot(x_b, wq_ref[l, h],
                         preferred_element_type=jnp.float32) + bq_ref[l, h]    # (M, HD)
            # city keys pre-projected / pre-transposed / pre-scaled by 1/sqrt(HD)
            s = jnp.dot(qh, kT_ref[l, h],
                        preferred_element_type=jnp.float32) + bias             # (M, C)
            m = jnp.max(s, axis=-1, keepdims=True)
            e = jnp.exp(s - m)
            denom = jnp.sum(e, axis=-1, keepdims=True)
            # approx=True would put this on the EUP slot at a slightly looser tolerance.
            p = e * pl.reciprocal(denom, approx=False)
            ctx = jnp.dot(p, v_ref[l, h], preferred_element_type=jnp.float32)  # (M, HD)
            # accumulate the output projection per head (no concat / relayout).
            attn = attn + jnp.dot(ctx.astype(jnp.bfloat16), wo_ref[l, h],
                                  preferred_element_type=jnp.float32)
        x = _layernorm(x + attn + bo_ref[l], g1_ref[l], be1_ref[l])

        # ---- feed-forward ----
        mid = jnp.maximum(
            jnp.dot(x.astype(jnp.bfloat16), w1_ref[l],
                    preferred_element_type=jnp.float32) + bf1_ref[l], 0.0)
        ffn = jnp.dot(mid.astype(jnp.bfloat16), w2_ref[l],
                      preferred_element_type=jnp.float32) + bf2_ref[l]
        x = _layernorm(x + ffn, g2_ref[l], be2_ref[l])

    # ---- SingleHeadAttention -> action logits ----
    qa = jnp.dot(x.astype(jnp.bfloat16), awq_ref[...],
                 preferred_element_type=jnp.float32)                            # (M, E)
    # city-side keys pre-projected, pre-transposed, pre-scaled by 1/sqrt(E).
    u = jnp.dot(qa, kaT_ref[...], preferred_element_type=jnp.float32)           # (M, C)
    u = TANH_CLIP * jnp.tanh(u)
    out_ref[...] = jnp.where(masked, jnp.float32(NEG_FILL), u).astype(out_ref.dtype)


def action_decoder(agent_embed, city_embed, masks, params, *, target_rows=256):
    """target_rows: rows of the folded (B*A) dimension per grid step.
    256 matches the v6e/v7x MXU; use 128 on v5e."""
    B, A, E = agent_embed.shape
    C = city_embed.shape[-2]
    L, NH, HD = NUM_LAYERS, NUM_HEADS, HEAD_DIM
    city2d = jnp.reshape(city_embed, (C, E)).astype(jnp.float32)

    # ---- hoist batch-independent city projections out of the kernel ----
    k = jnp.einsum("ce,lef->lcf", city2d, params["wk"]) + params["bk"][:, None, :]  # (L,C,E)
    v = jnp.einsum("ce,lef->lcf", city2d, params["wv"]) + params["bv"][:, None, :]  # (L,C,E)
    kT_heads = (jnp.transpose(k.reshape(L, C, NH, HD), (0, 2, 3, 1))
                / math.sqrt(HD)).astype(jnp.float32)                  # (L,NH,HD,C)
    v_heads = jnp.transpose(v.reshape(L, C, NH, HD), (0, 2, 1, 3)).astype(jnp.float32)  # (L,NH,C,HD)
    kaT = (jnp.transpose(city2d @ params["awk"]) / math.sqrt(E)).astype(jnp.float32)    # (E,C)

    # ---- per-head split of Q / output-projection weights; bf16 MXU operands ----
    wq_h = jnp.transpose(params["wq"].reshape(L, E, NH, HD), (0, 2, 1, 3)).astype(jnp.bfloat16)
    bq_h = params["bq"].reshape(L, NH, 1, HD)
    wo_h = params["wo"].reshape(L, NH, HD, E).astype(jnp.bfloat16)
    w1 = params["w1"].astype(jnp.bfloat16)
    w2 = params["w2"].astype(jnp.bfloat16)
    awq = params["awq"].astype(jnp.bfloat16)

    row2 = lambda a: a[:, None, :]   # (L, D) -> (L, 1, D) for in-kernel broadcasting
    weights = [
        wq_h, bq_h, kT_heads, v_heads, wo_h, row2(params["bo"]),
        row2(params["g1"]), row2(params["be1"]),
        w1, row2(params["bf1"]), w2, row2(params["bf2"]),
        row2(params["g2"]), row2(params["be2"]),
        awq, kaT,
    ]

    # ---- fold batch into the matmul M dimension (A=8 keeps M a multiple of 8) ----
    bblk = max(1, min(B, max(1, target_rows // A)))
    nblk = (B + bblk - 1) // bblk
    b_pad = nblk * bblk
    mblk = bblk * A

    agent2d = agent_embed.reshape(B * A, E).astype(jnp.float32)
    mask2d = masks.reshape(B * A, C).astype(jnp.float32)
    if b_pad != B:
        pad_rows = (b_pad - B) * A
        agent2d = jnp.pad(agent2d, ((0, pad_rows), (0, 0)))
        mask2d = jnp.pad(mask2d, ((0, pad_rows), (0, 0)))

    def full_spec(a):
        # constant index map -> weight block stays resident in VMEM across grid steps
        return pl.BlockSpec(a.shape, lambda i, n=a.ndim: (0,) * n)

    in_specs = [
        pl.BlockSpec((mblk, E), lambda i: (i, 0)),   # folded agent rows
        pl.BlockSpec((mblk, C), lambda i: (i, 0)),   # folded masks
    ] + [full_spec(w) for w in weights]

    out = pl.pallas_call(
        action_decoder_kernel,
        out_shape=jax.ShapeDtypeStruct((b_pad * A, C), jnp.float32),
        grid=(nblk,),
        in_specs=in_specs,
        out_specs=pl.BlockSpec((mblk, C), lambda i: (i, 0)),
        compiler_params=pltpu.CompilerParams(
            dimension_semantics=("parallel",)),   # lets v7x's 2nd TC take batch blocks
    )(agent2d, mask2d, *weights)

    return out[: B * A].reshape(B, A, C)


# ---------------- pure-JAX reference (same math, no Pallas) ----------------
def _mm(a, b):
    # mirror the kernel's bf16 MXU operands with f32 accumulation
    return jnp.dot(a.astype(jnp.bfloat16), b.astype(jnp.bfloat16),
                   preferred_element_type=jnp.float32)


def action_decoder_ref(agent, city, masks, p):
    B, A, E = agent.shape
    C = city.shape[-2]
    city2d = jnp.reshape(city, (C, E)).astype(jnp.float32)
    masked = masks > 0.5
    x = agent.astype(jnp.float32)
    for l in range(NUM_LAYERS):
        q = _mm(x, p["wq"][l]) + p["bq"][l]
        k = city2d @ p["wk"][l] + p["bk"][l]
        v = city2d @ p["wv"][l] + p["bv"][l]
        qh = q.reshape(B, A, NUM_HEADS, HEAD_DIM)
        kh = k.reshape(C, NUM_HEADS, HEAD_DIM)
        vh = v.reshape(C, NUM_HEADS, HEAD_DIM)
        s = jnp.einsum("bahd,chd->bhac", qh, kh) / math.sqrt(HEAD_DIM)
        s = jnp.where(masked[:, None], NEG_MASK, s)
        pr = jax.nn.softmax(s, axis=-1)
        ctx = jnp.einsum("bhac,chd->bahd", pr, vh).reshape(B, A, E)
        x = _layernorm(x + _mm(ctx, p["wo"][l]) + p["bo"][l], p["g1"][l], p["be1"][l])
        mid = jnp.maximum(_mm(x, p["w1"][l]) + p["bf1"][l], 0.0)
        ffn = _mm(mid, p["w2"][l]) + p["bf2"][l]
        x = _layernorm(x + ffn, p["g2"][l], p["be2"][l])
    qa = _mm(x, p["awq"])
    ka = city2d @ p["awk"]
    u = jnp.einsum("bae,ce->bac", qa, ka) / math.sqrt(EMBED_DIM)
    u = TANH_CLIP * jnp.tanh(u)
    return jnp.where(masked, NEG_FILL, u)


def init_params(key):
    ks = jax.random.split(key, 14)
    L, E, H = NUM_LAYERS, EMBED_DIM, HIDDEN_DIM
    w = lambda k, shape, s=0.05: jax.random.normal(k, shape, jnp.float32) * s
    return {
        "wq": w(ks[0], (L, E, E)), "wk": w(ks[1], (L, E, E)), "wv": w(ks[2], (L, E, E)),
        "bq": w(ks[3], (L, E), 0.01), "bk": w(ks[4], (L, E), 0.01), "bv": w(ks[5], (L, E), 0.01),
        "wo": w(ks[6], (L, E, E)), "bo": w(ks[7], (L, E), 0.01),
        "g1": jnp.ones((L, E), jnp.float32), "be1": jnp.zeros((L, E), jnp.float32),
        "w1": w(ks[8], (L, E, H)), "bf1": w(ks[9], (L, H), 0.01),
        "w2": w(ks[10], (L, H, E)), "bf2": w(ks[11], (L, E), 0.01),
        "g2": jnp.ones((L, E), jnp.float32), "be2": jnp.zeros((L, E), jnp.float32),
        "awq": w(ks[12], (E, E)), "awk": w(ks[13], (E, E)),
    }


if __name__ == "__main__":
    key = jax.random.PRNGKey(0)
    k_a, k_c, k_m, k_p = jax.random.split(key, 4)

    B, A, C = 2, 8, 16   # batch, agents, cities (small, consistent with forward)
    agent = jax.random.normal(k_a, (B, A, EMBED_DIM), jnp.float32)
    city = jax.random.normal(k_c, (1, C, EMBED_DIM), jnp.float32)
    masks = (jax.random.uniform(k_m, (B, A, C)) < 0.3).astype(jnp.float32)
    masks = masks.at[..., 0].set(0.0)   # keep at least one city unmasked per agent

    params = init_params(k_p)

    out = jax.block_until_ready(action_decoder(agent, city, masks, params))
    ref = action_decoder_ref(agent, city, masks, params)

    assert out.shape == (B, A, C), out.shape
    assert bool(jnp.all(jnp.isfinite(out)))
    # bf16 matmul operands are mirrored in the reference; the remaining gap is
    # accumulation-order only, well inside 2e-3 on O(1..10) logits.
    max_err = float(jnp.max(jnp.abs(out - ref)))
    assert bool(jnp.allclose(out, ref, atol=2e-3, rtol=2e-3)), max_err

    print("KERNEL_OK")
</pallas_src>

<mosaic_0001>
module attributes {stable_mosaic.version = 11 : i64} {
  func.func @action_decoder_kernel(%arg0: i32, %arg1: memref<16x128xf32, #tpu.memory_space<vmem>>, %arg2: memref<16x16xf32, #tpu.memory_space<vmem>>, %arg3: memref<2x4x128x32xbf16, #tpu.memory_space<vmem>>, %arg4: memref<2x4x1x32xf32, #tpu.memory_space<vmem>>, %arg5: memref<2x4x32x16xf32, #tpu.memory_space<vmem>>, %arg6: memref<2x4x16x32xf32, #tpu.memory_space<vmem>>, %arg7: memref<2x4x32x128xbf16, #tpu.memory_space<vmem>>, %arg8: memref<2x1x128xf32, #tpu.memory_space<vmem>>, %arg9: memref<2x1x128xf32, #tpu.memory_space<vmem>>, %arg10: memref<2x1x128xf32, #tpu.memory_space<vmem>>, %arg11: memref<2x128x256xbf16, #tpu.memory_space<vmem>>, %arg12: memref<2x1x256xf32, #tpu.memory_space<vmem>>, %arg13: memref<2x256x128xbf16, #tpu.memory_space<vmem>>, %arg14: memref<2x1x128xf32, #tpu.memory_space<vmem>>, %arg15: memref<2x1x128xf32, #tpu.memory_space<vmem>>, %arg16: memref<2x1x128xf32, #tpu.memory_space<vmem>>, %arg17: memref<128x128xbf16, #tpu.memory_space<vmem>>, %arg18: memref<128x16xf32, #tpu.memory_space<vmem>>, %arg19: memref<16x16xf32, #tpu.memory_space<vmem>>) attributes {dimension_semantics = [#tpu.dimension_semantics<parallel>], iteration_bounds = array<i64: 1>, scalar_prefetch = 0 : i64, scratch_operands = 0 : i64, tpu.core_type = #tpu.core_type<tc>, window_params = [{transform_indices = @transform_0, window_bounds = array<i64: 16, 128>}, {transform_indices = @transform_1, window_bounds = array<i64: 16, 16>}, {pipeline_mode = #tpu.pipeline_mode<synchronous>, transform_indices = @transform_2, window_bounds = array<i64: 2, 4, 128, 32>}, {pipeline_mode = #tpu.pipeline_mode<synchronous>, transform_indices = @transform_3, window_bounds = array<i64: 2, 4, 1, 32>}, {pipeline_mode = #tpu.pipeline_mode<synchronous>, transform_indices = @transform_4, window_bounds = array<i64: 2, 4, 32, 16>}, {pipeline_mode = #tpu.pipeline_mode<synchronous>, transform_indices = @transform_5, window_bounds = array<i64: 2, 4, 16, 32>}, {pipeline_mode = #tpu.pipeline_mode<synchronous>, transform_indices = @transform_6, window_bounds = array<i64: 2, 4, 32, 128>}, {pipeline_mode = #tpu.pipeline_mode<synchronous>, transform_indices = @transform_7, window_bounds = array<i64: 2, 1, 128>}, {pipeline_mode = #tpu.pipeline_mode<synchronous>, transform_indices = @transform_8, window_bounds = array<i64: 2, 1, 128>}, {pipeline_mode = #tpu.pipeline_mode<synchronous>, transform_indices = @transform_9, window_bounds = array<i64: 2, 1, 128>}, {pipeline_mode = #tpu.pipeline_mode<synchronous>, transform_indices = @transform_10, window_bounds = array<i64: 2, 128, 256>}, {pipeline_mode = #tpu.pipeline_mode<synchronous>, transform_indices = @transform_11, window_bounds = array<i64: 2, 1, 256>}, {pipeline_mode = #tpu.pipeline_mode<synchronous>, transform_indices = @transform_12, window_bounds = array<i64: 2, 256, 128>}, {pipeline_mode = #tpu.pipeline_mode<synchronous>, transform_indices = @transform_13, window_bounds = array<i64: 2, 1, 128>}, {pipeline_mode = #tpu.pipeline_mode<synchronous>, transform_indices = @transform_14, window_bounds = array<i64: 2, 1, 128>}, {pipeline_mode = #tpu.pipeline_mode<synchronous>, transform_indices = @transform_15, window_bounds = array<i64: 2, 1, 128>}, {pipeline_mode = #tpu.pipeline_mode<synchronous>, transform_indices = @transform_16, window_bounds = array<i64: 128, 128>}, {pipeline_mode = #tpu.pipeline_mode<synchronous>, transform_indices = @transform_17, window_bounds = array<i64: 128, 16>}, {transform_indices = @transform_18, window_bounds = array<i64: 16, 16>}]} {
    %c0 = arith.constant 0 : index
    %c0_0 = arith.constant 0 : index
    %0 = vector.load %arg1[%c0, %c0_0] : memref<16x128xf32, #tpu.memory_space<vmem>>, vector<16x128xf32>
    %c0_1 = arith.constant 0 : index
    %c0_2 = arith.constant 0 : index
    %1 = vector.load %arg2[%c0_1, %c0_2] : memref<16x16xf32, #tpu.memory_space<vmem>>, vector<16x16xf32>
    %cst = arith.constant 5.000000e-01 : f32
    %2 = vector.broadcast %cst : f32 to vector<16x16xf32>
    %3 = arith.cmpf ogt, %1, %2 : vector<16x16xf32>
    %cst_3 = arith.constant -1.000000e+09 : f32
    %cst_4 = arith.constant 0.000000e+00 : f32
    %4 = vector.broadcast %cst_3 : f32 to vector<16x16xf32>
    %5 = vector.broadcast %cst_4 : f32 to vector<16x16xf32>
    %6 = arith.select %3, %4, %5 : vector<16x16xi1>, vector<16x16xf32>
    %7 = arith.truncf %0 : vector<16x128xf32> to vector<16x128xbf16>
    %cst_5 = arith.constant 0.000000e+00 : f32
    %8 = vector.broadcast %cst_5 : f32 to vector<16x128xf32>
    %c0_6 = arith.constant 0 : index
    %c0_7 = arith.constant 0 : index
    %c0_8 = arith.constant 0 : index
    %c0_9 = arith.constant 0 : index
    %9 = vector.load %arg3[%c0_6, %c0_7, %c0_8, %c0_9] : memref<2x4x128x32xbf16, #tpu.memory_space<vmem>>, vector<1x1x128x32xbf16>
    %10 = vector.shape_cast %9 : vector<1x1x128x32xbf16> to vector<128x32xbf16>
    %cst_10 = arith.constant dense<0.000000e+00> : vector<16x32xf32>
    %11 = tpu.matmul %7, %10, %cst_10 {dimension_numbers = #tpu.dot_dimension_numbers<[1], [0], [0], [1], [0, 0, 1, 1], [], []>} : vector<16x128xbf16>, vector<128x32xbf16>, vector<16x32xf32> -> vector<16x32xf32>
    %c0_11 = arith.constant 0 : index
    %c0_12 = arith.constant 0 : index
    %c0_13 = arith.constant 0 : index
    %c0_14 = arith.constant 0 : index
    %12 = vector.load %arg4[%c0_11, %c0_12, %c0_13, %c0_14] : memref<2x4x1x32xf32, #tpu.memory_space<vmem>>, vector<1x1x1x32xf32>
    %13 = vector.shape_cast %12 : vector<1x1x1x32xf32> to vector<1x32xf32>
    %14 = vector.broadcast %13 : vector<1x32xf32> to vector<16x32xf32>
    %15 = arith.addf %11, %14 : vector<16x32xf32>
    %c0_15 = arith.constant 0 : index
    %c0_16 = arith.constant 0 : index
    %c0_17 = arith.constant 0 : index
    %c0_18 = arith.constant 0 : index
    %16 = vector.load %arg5[%c0_15, %c0_16, %c0_17, %c0_18] : memref<2x4x32x16xf32, #tpu.memory_space<vmem>>, vector<1x1x32x16xf32>
    %17 = vector.shape_cast %16 : vector<1x1x32x16xf32> to vector<32x16xf32>
    %cst_19 = arith.constant dense<0.000000e+00> : vector<16x16xf32>
    %18 = tpu.matmul %15, %17, %cst_19 {dimension_numbers = #tpu.dot_dimension_numbers<[1], [0], [0], [1], [0, 0, 1, 1], [], []>} : vector<16x32xf32>, vector<32x16xf32>, vector<16x16xf32> -> vector<16x16xf32>
    %19 = arith.addf %18, %6 : vector<16x16xf32>
    %cst_20 = arith.constant dense<0xFF800000> : vector<16xf32>
    %20 = vector.multi_reduction <maximumf>, %19, %cst_20 [1] : vector<16x16xf32> to vector<16xf32>
    %21 = vector.shape_cast %20 : vector<16xf32> to vector<16x1xf32>
    %22 = vector.broadcast %21 : vector<16x1xf32> to vector<16x16xf32>
    %23 = arith.subf %19, %22 : vector<16x16xf32>
    %24 = math.exp %23 : vector<16x16xf32>
    %cst_21 = arith.constant dense<0.000000e+00> : vector<16xf32>
    %25 = vector.multi_reduction <add>, %24, %cst_21 [1] : vector<16x16xf32> to vector<16xf32>
    %26 = vector.shape_cast %25 : vector<16xf32> to vector<16x1xf32>
    %27 = tpu.reciprocal %26 : vector<16x1xf32> -> vector<16x1xf32>
    %28 = vector.broadcast %27 : vector<16x1xf32> to vector<16x16xf32>
    %29 = arith.mulf %24, %28 : vector<16x16xf32>
    %c0_22 = arith.constant 0 : index
    %c0_23 = arith.constant 0 : index
    %c0_24 = arith.constant 0 : index
    %c0_25 = arith.constant 0 : index
    %30 = vector.load %arg6[%c0_22, %c0_23, %c0_24, %c0_25] : memref<2x4x16x32xf32, #tpu.memory_space<vmem>>, vector<1x1x16x32xf32>
    %31 = vector.shape_cast %30 : vector<1x1x16x32xf32> to vector<16x32xf32>
    %cst_26 = arith.constant dense<0.000000e+00> : vector<16x32xf32>
    %32 = tpu.matmul %29, %31, %cst_26 {dimension_numbers = #tpu.dot_dimension_numbers<[1], [0], [0], [1], [0, 0, 1, 1], [], []>} : vector<16x16xf32>, vector<16x32xf32>, vector<16x32xf32> -> vector<16x32xf32>
    %33 = arith.truncf %32 : vector<16x32xf32> to vector<16x32xbf16>
    %c0_27 = arith.constant 0 : index
    %c0_28 = arith.constant 0 : index
    %c0_29 = arith.constant 0 : index
    %c0_30 = arith.constant 0 : index
    %34 = vector.load %arg7[%c0_27, %c0_28, %c0_29, %c0_30] : memref<2x4x32x128xbf16, #tpu.memory_space<vmem>>, vector<1x1x32x128xbf16>
    %35 = vector.shape_cast %34 : vector<1x1x32x128xbf16> to vector<32x128xbf16>
    %cst_31 = arith.constant dense<0.000000e+00> : vector<16x128xf32>
    %36 = tpu.matmul %33, %35, %cst_31 {dimension_numbers = #tpu.dot_dimension_numbers<[1], [0], [0], [1], [0, 0, 1, 1], [], []>} : vector<16x32xbf16>, vector<32x128xbf16>, vector<16x128xf32> -> vector<16x128xf32>
    %37 = arith.addf %8, %36 : vector<16x128xf32>
    %c0_32 = arith.constant 0 : index
    %c1 = arith.constant 1 : index
    %c0_33 = arith.constant 0 : index
    %c0_34 = arith.constant 0 : index
    %38 = vector.load %arg3[%c0_32, %c1, %c0_33, %c0_34] : memref<2x4x128x32xbf16, #tpu.memory_space<vmem>>, vector<1x1x128x32xbf16>
    %39 = vector.shape_cast %38 : vector<1x1x128x32xbf16> to vector<128x32xbf16>
    %cst_35 = arith.constant dense<0.000000e+00> : vector<16x32xf32>
    %40 = tpu.matmul %7, %39, %cst_35 {dimension_numbers = #tpu.dot_dimension_numbers<[1], [0], [0], [1], [0, 0, 1, 1], [], []>} : vector<16x128xbf16>, vector<128x32xbf16>, vector<16x32xf32> -> vector<16x32xf32>
    %c0_36 = arith.constant 0 : index
    %c1_37 = arith.constant 1 : index
    %c0_38 = arith.constant 0 : index
    %c0_39 = arith.constant 0 : index
    %41 = vector.load %arg4[%c0_36, %c1_37, %c0_38, %c0_39] : memref<2x4x1x32xf32, #tpu.memory_space<vmem>>, vector<1x1x1x32xf32>
    %42 = vector.shape_cast %41 : vector<1x1x1x32xf32> to vector<1x32xf32>
    %43 = vector.broadcast %42 : vector<1x32xf32> to vector<16x32xf32>
    %44 = arith.addf %40, %43 : vector<16x32xf32>
    %c0_40 = arith.constant 0 : index
    %c1_41 = arith.constant 1 : index
    %c0_42 = arith.constant 0 : index
    %c0_43 = arith.constant 0 : index
    %45 = vector.load %arg5[%c0_40, %c1_41, %c0_42, %c0_43] : memref<2x4x32x16xf32, #tpu.memory_space<vmem>>, vector<1x1x32x16xf32>
    %46 = vector.shape_cast %45 : vector<1x1x32x16xf32> to vector<32x16xf32>
    %cst_44 = arith.constant dense<0.000000e+00> : vector<16x16xf32>
    %47 = tpu.matmul %44, %46, %cst_44 {dimension_numbers = #tpu.dot_dimension_numbers<[1], [0], [0], [1], [0, 0, 1, 1], [], []>} : vector<16x32xf32>, vector<32x16xf32>, vector<16x16xf32> -> vector<16x16xf32>
    %48 = arith.addf %47, %6 : vector<16x16xf32>
    %cst_45 = arith.constant dense<0xFF800000> : vector<16xf32>
    %49 = vector.multi_reduction <maximumf>, %48, %cst_45 [1] : vector<16x16xf32> to vector<16xf32>
    %50 = vector.shape_cast %49 : vector<16xf32> to vector<16x1xf32>
    %51 = vector.broadcast %50 : vector<16x1xf32> to vector<16x16xf32>
    %52 = arith.subf %48, %51 : vector<16x16xf32>
    %53 = math.exp %52 : vector<16x16xf32>
    %cst_46 = arith.constant dense<0.000000e+00> : vector<16xf32>
    %54 = vector.multi_reduction <add>, %53, %cst_46 [1] : vector<16x16xf32> to vector<16xf32>
    %55 = vector.shape_cast %54 : vector<16xf32> to vector<16x1xf32>
    %56 = tpu.reciprocal %55 : vector<16x1xf32> -> vector<16x1xf32>
    %57 = vector.broadcast %56 : vector<16x1xf32> to vector<16x16xf32>
    %58 = arith.mulf %53, %57 : vector<16x16xf32>
    %c0_47 = arith.constant 0 : index
    %c1_48 = arith.constant 1 : index
    %c0_49 = arith.constant 0 : index
    %c0_50 = arith.constant 0 : index
    %59 = vector.load %arg6[%c0_47, %c1_48, %c0_49, %c0_50] : memref<2x4x16x32xf32, #tpu.memory_space<vmem>>, vector<1x1x16x32xf32>
    %60 = vector.shape_cast %59 : vector<1x1x16x32xf32> to vector<16x32xf32>
    %cst_51 = arith.constant dense<0.000000e+00> : vector<16x32xf32>
    %61 = tpu.matmul %58, %60, %cst_51 {dimension_numbers = #tpu.dot_dimension_numbers<[1], [0], [0], [1], [0, 0, 1, 1], [], []>} : vector<16x16xf32>, vector<16x32xf32>, vector<16x32xf32> -> vector<16x32xf32>
    %62 = arith.truncf %61 : vector<16x32xf32> to vector<16x32xbf16>
    %c0_52 = arith.constant 0 : index
    %c1_53 = arith.constant 1 : index
    %c0_54 = arith.constant 0 : index
    %c0_55 = arith.constant 0 : index
    %63 = vector.load %arg7[%c0_52, %c1_53, %c0_54, %c0_55] : memref<2x4x32x128xbf16, #tpu.memory_space<vmem>>, vector<1x1x32x128xbf16>
    %64 = vector.shape_cast %63 : vector<1x1x32x128xbf16> to vector<32x128xbf16>
    %cst_56 = arith.constant dense<0.000000e+00> : vector<16x128xf32>
    %65 = tpu.matmul %62, %64, %cst_56 {dimension_numbers = #tpu.dot_dimension_numbers<[1], [0], [0], [1], [0, 0, 1, 1], [], []>} : vector<16x32xbf16>, vector<32x128xbf16>, vector<16x128xf32> -> vector<16x128xf32>
    %66 = arith.addf %37, %65 : vector<16x128xf32>
    %c0_57 = arith.constant 0 : index
    %c2 = arith.constant 2 : index
    %c0_58 = arith.constant 0 : index
    %c0_59 = arith.constant 0 : index
    %67 = vector.load %arg3[%c0_57, %c2, %c0_58, %c0_59] : memref<2x4x128x32xbf16, #tpu.memory_space<vmem>>, vector<1x1x128x32xbf16>
    %68 = vector.shape_cast %67 : vector<1x1x128x32xbf16> to vector<128x32xbf16>
    %cst_60 = arith.constant dense<0.000000e+00> : vector<16x32xf32>
    %69 = tpu.matmul %7, %68, %cst_60 {dimension_numbers = #tpu.dot_dimension_numbers<[1], [0], [0], [1], [0, 0, 1, 1], [], []>} : vector<16x128xbf16>, vector<128x32xbf16>, vector<16x32xf32> -> vector<16x32xf32>
    %c0_61 = arith.constant 0 : index
    %c2_62 = arith.constant 2 : index
    %c0_63 = arith.constant 0 : index
    %c0_64 = arith.constant 0 : index
    %70 = vector.load %arg4[%c0_61, %c2_62, %c0_63, %c0_64] : memref<2x4x1x32xf32, #tpu.memory_space<vmem>>, vector<1x1x1x32xf32>
    %71 = vector.shape_cast %70 : vector<1x1x1x32xf32> to vector<1x32xf32>
    %72 = vector.broadcast %71 : vector<1x32xf32> to vector<16x32xf32>
    %73 = arith.addf %69, %72 : vector<16x32xf32>
    %c0_65 = arith.constant 0 : index
    %c2_66 = arith.constant 2 : index
    %c0_67 = arith.constant 0 : index
    %c0_68 = arith.constant 0 : index
    %74 = vector.load %arg5[%c0_65, %c2_66, %c0_67, %c0_68] : memref<2x4x32x16xf32, #tpu.memory_space<vmem>>, vector<1x1x32x16xf32>
    %75 = vector.shape_cast %74 : vector<1x1x32x16xf32> to vector<32x16xf32>
    %cst_69 = arith.constant dense<0.000000e+00> : vector<16x16xf32>
    %76 = tpu.matmul %73, %75, %cst_69 {dimension_numbers = #tpu.dot_dimension_numbers<[1], [0], [0], [1], [0, 0, 1, 1], [], []>} : vector<16x32xf32>, vector<32x16xf32>, vector<16x16xf32> -> vector<16x16xf32>
    %77 = arith.addf %76, %6 : vector<16x16xf32>
    %cst_70 = arith.constant dense<0xFF800000> : vector<16xf32>
    %78 = vector.multi_reduction <maximumf>, %77, %cst_70 [1] : vector<16x16xf32> to vector<16xf32>
    %79 = vector.shape_cast %78 : vector<16xf32> to vector<16x1xf32>
    %80 = vector.broadcast %79 : vector<16x1xf32> to vector<16x16xf32>
    %81 = arith.subf %77, %80 : vector<16x16xf32>
    %82 = math.exp %81 : vector<16x16xf32>
    %cst_71 = arith.constant dense<0.000000e+00> : vector<16xf32>
    %83 = vector.multi_reduction <add>, %82, %cst_71 [1] : vector<16x16xf32> to vector<16xf32>
    %84 = vector.shape_cast %83 : vector<16xf32> to vector<16x1xf32>
    %85 = tpu.reciprocal %84 : vector<16x1xf32> -> vector<16x1xf32>
    %86 = vector.broadcast %85 : vector<16x1xf32> to vector<16x16xf32>
    %87 = arith.mulf %82, %86 : vector<16x16xf32>
    %c0_72 = arith.constant 0 : index
    %c2_73 = arith.constant 2 : index
    %c0_74 = arith.constant 0 : index
    %c0_75 = arith.constant 0 : index
    %88 = vector.load %arg6[%c0_72, %c2_73, %c0_74, %c0_75] : memref<2x4x16x32xf32, #tpu.memory_space<vmem>>, vector<1x1x16x32xf32>
    %89 = vector.shape_cast %88 : vector<1x1x16x32xf32> to vector<16x32xf32>
    %cst_76 = arith.constant dense<0.000000e+00> : vector<16x32xf32>
    %90 = tpu.matmul %87, %89, %cst_76 {dimension_numbers = #tpu.dot_dimension_numbers<[1], [0], [0], [1], [0, 0, 1, 1], [], []>} : vector<16x16xf32>, vector<16x32xf32>, vector<16x32xf32> -> vector<16x32xf32>
    %91 = arith.truncf %90 : vector<16x32xf32> to vector<16x32xbf16>
    %c0_77 = arith.constant 0 : index
    %c2_78 = arith.constant 2 : index
    %c0_79 = arith.constant 0 : index
    %c0_80 = arith.constant 0 : index
    %92 = vector.load %arg7[%c0_77, %c2_78, %c0_79, %c0_80] : memref<2x4x32x128xbf16, #tpu.memory_space<vmem>>, vector<1x1x32x128xbf16>
    %93 = vector.shape_cast %92 : vector<1x1x32x128xbf16> to vector<32x128xbf16>
    %cst_81 = arith.constant dense<0.000000e+00> : vector<16x128xf32>
    %94 = tpu.matmul %91, %93, %cst_81 {dimension_numbers = #tpu.dot_dimension_numbers<[1], [0], [0], [1], [0, 0, 1, 1], [], []>} : vector<16x32xbf16>, vector<32x128xbf16>, vector<16x128xf32> -> vector<16x128xf32>
    %95 = arith.addf %66, %94 : vector<16x128xf32>
    %c0_82 = arith.constant 0 : index
    %c3 = arith.constant 3 : index
    %c0_83 = arith.constant 0 : index
    %c0_84 = arith.constant 0 : index
    %96 = vector.load %arg3[%c0_82, %c3, %c0_83, %c0_84] : memref<2x4x128x32xbf16, #tpu.memory_space<vmem>>, vector<1x1x128x32xbf16>
    %97 = vector.shape_cast %96 : vector<1x1x128x32xbf16> to vector<128x32xbf16>
    %cst_85 = arith.constant dense<0.000000e+00> : vector<16x32xf32>
    %98 = tpu.matmul %7, %97, %cst_85 {dimension_numbers = #tpu.dot_dimension_numbers<[1], [0], [0], [1], [0, 0, 1, 1], [], []>} : vector<16x128xbf16>, vector<128x32xbf16>, vector<16x32xf32> -> vector<16x32xf32>
    %c0_86 = arith.constant 0 : index
    %c3_87 = arith.constant 3 : index
    %c0_88 = arith.constant 0 : index
    %c0_89 = arith.constant 0 : index
    %99 = vector.load %arg4[%c0_86, %c3_87, %c0_88, %c0_89] : memref<2x4x1x32xf32, #tpu.memory_space<vmem>>, vector<1x1x1x32xf32>
    %100 = vector.shape_cast %99 : vector<1x1x1x32xf32> to vector<1x32xf32>
    %101 = vector.broadcast %100 : vector<1x32xf32> to vector<16x32xf32>
    %102 = arith.addf %98, %101 : vector<16x32xf32>
    %c0_90 = arith.constant 0 : index
    %c3_91 = arith.constant 3 : index
    %c0_92 = arith.constant 0 : index
    %c0_93 = arith.constant 0 : index
    %103 = vector.load %arg5[%c0_90, %c3_91, %c0_92, %c0_93] : memref<2x4x32x16xf32, #tpu.memory_space<vmem>>, vector<1x1x32x16xf32>
    %104 = vector.shape_cast %103 : vector<1x1x32x16xf32> to vector<32x16xf32>
    %cst_94 = arith.constant dense<0.000000e+00> : vector<16x16xf32>
    %105 = tpu.matmul %102, %104, %cst_94 {dimension_numbers = #tpu.dot_dimension_numbers<[1], [0], [0], [1], [0, 0, 1, 1], [], []>} : vector<16x32xf32>, vector<32x16xf32>, vector<16x16xf32> -> vector<16x16xf32>
    %106 = arith.addf %105, %6 : vector<16x16xf32>
    %cst_95 = arith.constant dense<0xFF800000> : vector<16xf32>
    %107 = vector.multi_reduction <maximumf>, %106, %cst_95 [1] : vector<16x16xf32> to vector<16xf32>
    %108 = vector.shape_cast %107 : vector<16xf32> to vector<16x1xf32>
    %109 = vector.broadcast %108 : vector<16x1xf32> to vector<16x16xf32>
    %110 = arith.subf %106, %109 : vector<16x16xf32>
    %111 = math.exp %110 : vector<16x16xf32>
    %cst_96 = arith.constant dense<0.000000e+00> : vector<16xf32>
    %112 = vector.multi_reduction <add>, %111, %cst_96 [1] : vector<16x16xf32> to vector<16xf32>
    %113 = vector.shape_cast %112 : vector<16xf32> to vector<16x1xf32>
    %114 = tpu.reciprocal %113 : vector<16x1xf32> -> vector<16x1xf32>
    %115 = vector.broadcast %114 : vector<16x1xf32> to vector<16x16xf32>
    %116 = arith.mulf %111, %115 : vector<16x16xf32>
    %c0_97 = arith.constant 0 : index
    %c3_98 = arith.constant 3 : index
    %c0_99 = arith.constant 0 : index
    %c0_100 = arith.constant 0 : index
    %117 = vector.load %arg6[%c0_97, %c3_98, %c0_99, %c0_100] : memref<2x4x16x32xf32, #tpu.memory_space<vmem>>, vector<1x1x16x32xf32>
    %118 = vector.shape_cast %117 : vector<1x1x16x32xf32> to vector<16x32xf32>
    %cst_101 = arith.constant dense<0.000000e+00> : vector<16x32xf32>
    %119 = tpu.matmul %116, %118, %cst_101 {dimension_numbers = #tpu.dot_dimension_numbers<[1], [0], [0], [1], [0, 0, 1, 1], [], []>} : vector<16x16xf32>, vector<16x32xf32>, vector<16x32xf32> -> vector<16x32xf32>
    %120 = arith.truncf %119 : vector<16x32xf32> to vector<16x32xbf16>
    %c0_102 = arith.constant 0 : index
    %c3_103 = arith.constant 3 : index
    %c0_104 = arith.constant 0 : index
    %c0_105 = arith.constant 0 : index
    %121 = vector.load %arg7[%c0_102, %c3_103, %c0_104, %c0_105] : memref<2x4x32x128xbf16, #tpu.memory_space<vmem>>, vector<1x1x32x128xbf16>
    %122 = vector.shape_cast %121 : vector<1x1x32x128xbf16> to vector<32x128xbf16>
    %cst_106 = arith.constant dense<0.000000e+00> : vector<16x128xf32>
    %123 = tpu.matmul %120, %122, %cst_106 {dimension_numbers = #tpu.dot_dimension_numbers<[1], [0], [0], [1], [0, 0, 1, 1], [], []>} : vector<16x32xbf16>, vector<32x128xbf16>, vector<16x128xf32> -> vector<16x128xf32>
    %124 = arith.addf %95, %123 : vector<16x128xf32>
    %125 = arith.addf %0, %124 : vector<16x128xf32>
    %c0_107 = arith.constant 0 : index
    %c0_108 = arith.constant 0 : index
    %c0_109 = arith.constant 0 : index
    %126 = vector.load %arg8[%c0_107, %c0_108, %c0_109] : memref<2x1x128xf32, #tpu.memory_space<vmem>>, vector<1x1x128xf32>
    %127 = vector.shape_cast %126 : vector<1x1x128xf32> to vector<1x128xf32>
    %128 = vector.broadcast %127 : vector<1x128xf32> to vector<16x128xf32>
    %129 = arith.addf %125, %128 : vector<16x128xf32>
    %c0_110 = arith.constant 0 : index
    %c0_111 = arith.constant 0 : index
    %c0_112 = arith.constant 0 : index
    %130 = vector.load %arg9[%c0_110, %c0_111, %c0_112] : memref<2x1x128xf32, #tpu.memory_space<vmem>>, vector<1x1x128xf32>
    %131 = vector.shape_cast %130 : vector<1x1x128xf32> to vector<1x128xf32>
    %c0_113 = arith.constant 0 : index
    %c0_114 = arith.constant 0 : index
    %c0_115 = arith.constant 0 : index
    %132 = vector.load %arg10[%c0_113, %c0_114, %c0_115] : memref<2x1x128xf32, #tpu.memory_space<vmem>>, vector<1x1x128xf32>
    %133 = vector.shape_cast %132 : vector<1x1x128xf32> to vector<1x128xf32>
    %cst_116 = arith.constant dense<0.000000e+00> : vector<16xf32>
    %134 = vector.multi_reduction <add>, %129, %cst_116 [1] : vector<16x128xf32> to vector<16xf32>
    %135 = vector.shape_cast %134 : vector<16xf32> to vector<16x1xf32>
    %cst_117 = arith.constant 1.280000e+02 : f32
    %136 = vector.broadcast %cst_117 : f32 to vector<16x1xf32>
    %137 = arith.divf %135, %136 : vector<16x1xf32>
    %138 = vector.broadcast %137 : vector<16x1xf32> to vector<16x128xf32>
    %139 = arith.subf %129, %138 : vector<16x128xf32>
    %140 = arith.mulf %139, %139 : vector<16x128xf32>
    %cst_118 = arith.constant dense<0.000000e+00> : vector<16xf32>
    %141 = vector.multi_reduction <add>, %140, %cst_118 [1] : vector<16x128xf32> to vector<16xf32>
    %142 = vector.shape_cast %141 : vector<16xf32> to vector<16x1xf32>
    %cst_119 = arith.constant 1.280000e+02 : f32
    %143 = vector.broadcast %cst_119 : f32 to vector<16x1xf32>
    %144 = arith.divf %142, %143 : vector<16x1xf32>
    %145 = vector.broadcast %137 : vector<16x1xf32> to vector<16x128xf32>
    %146 = arith.subf %129, %145 : vector<16x128xf32>
    %cst_120 = arith.constant 9.99999974E-6 : f32
    %147 = vector.broadcast %cst_120 : f32 to vector<16x1xf32>
    %148 = arith.addf %144, %147 : vector<16x1xf32>
    %149 = math.rsqrt %148 : vector<16x1xf32>
    %150 = vector.broadcast %149 : vector<16x1xf32> to vector<16x128xf32>
    %151 = arith.mulf %146, %150 : vector<16x128xf32>
    %152 = vector.broadcast %131 : vector<1x128xf32> to vector<16x128xf32>
    %153 = arith.mulf %151, %152 : vector<16x128xf32>
    %154 = vector.broadcast %133 : vector<1x128xf32> to vector<16x128xf32>
    %155 = arith.addf %153, %154 : vector<16x128xf32>
    %156 = arith.truncf %155 : vector<16x128xf32> to vector<16x128xbf16>
    %c0_121 = arith.constant 0 : index
    %c0_122 = arith.constant 0 : index
    %c0_123 = arith.constant 0 : index
    %157 = vector.load %arg11[%c0_121, %c0_122, %c0_123] : memref<2x128x256xbf16, #tpu.memory_space<vmem>>, vector<1x128x256xbf16>
    %158 = vector.shape_cast %157 : vector<1x128x256xbf16> to vector<128x256xbf16>
    %cst_124 = arith.constant dense<0.000000e+00> : vector<16x256xf32>
    %159 = tpu.matmul %156, %158, %cst_124 {dimension_numbers = #tpu.dot_dimension_numbers<[1], [0], [0], [1], [0, 0, 1, 1], [], []>} : vector<16x128xbf16>, vector<128x256xbf16>, vector<16x256xf32> -> vector<16x256xf32>
    %c0_125 = arith.constant 0 : index
    %c0_126 = arith.constant 0 : index
    %c0_127 = arith.constant 0 : index
    %160 = vector.load %arg12[%c0_125, %c0_126, %c0_127] : memref<2x1x256xf32, #tpu.memory_space<vmem>>, vector<1x1x256xf32>
    %161 = vector.shape_cast %160 : vector<1x1x256xf32> to vector<1x256xf32>
    %162 = vector.broadcast %161 : vector<1x256xf32> to vector<16x256xf32>
    %163 = arith.addf %159, %162 : vector<16x256xf32>
    %cst_128 = arith.constant 0.000000e+00 : f32
    %164 = vector.broadcast %cst_128 : f32 to vector<16x256xf32>
    %165 = arith.maximumf %163, %164 : vector<16x256xf32>
    %166 = arith.truncf %165 : vector<16x256xf32> to vector<16x256xbf16>
    %c0_129 = arith.constant 0 : index
    %c0_130 = arith.constant 0 : index
    %c0_131 = arith.constant 0 : index
    %167 = vector.load %arg13[%c0_129, %c0_130, %c0_131] : memref<2x256x128xbf16, #tpu.memory_space<vmem>>, vector<1x256x128xbf16>
    %168 = vector.shape_cast %167 : vector<1x256x128xbf16> to vector<256x128xbf16>
    %cst_132 = arith.constant dense<0.000000e+00> : vector<16x128xf32>
    %169 = tpu.matmul %166, %168, %cst_132 {dimension_numbers = #tpu.dot_dimension_numbers<[1], [0], [0], [1], [0, 0, 1, 1], [], []>} : vector<16x256xbf16>, vector<256x128xbf16>, vector<16x128xf32> -> vector<16x128xf32>
    %c0_133 = arith.constant 0 : index
    %c0_134 = arith.constant 0 : index
    %c0_135 = arith.constant 0 : index
    %170 = vector.load %arg14[%c0_133, %c0_134, %c0_135] : memref<2x1x128xf32, #tpu.memory_space<vmem>>, vector<1x1x128xf32>
    %171 = vector.shape_cast %170 : vector<1x1x128xf32> to vector<1x128xf32>
    %172 = vector.broadcast %171 : vector<1x128xf32> to vector<16x128xf32>
    %173 = arith.addf %169, %172 : vector<16x128xf32>
    %174 = arith.addf %155, %173 : vector<16x128xf32>
    %c0_136 = arith.constant 0 : index
    %c0_137 = arith.constant 0 : index
    %c0_138 = arith.constant 0 : index
    %175 = vector.load %arg15[%c0_136, %c0_137, %c0_138] : memref<2x1x128xf32, #tpu.memory_space<vmem>>, vector<1x1x128xf32>
    %176 = vector.shape_cast %175 : vector<1x1x128xf32> to vector<1x128xf32>
    %c0_139 = arith.constant 0 : index
    %c0_140 = arith.constant 0 : index
    %c0_141 = arith.constant 0 : index
    %177 = vector.load %arg16[%c0_139, %c0_140, %c0_141] : memref<2x1x128xf32, #tpu.memory_space<vmem>>, vector<1x1x128xf32>
    %178 = vector.shape_cast %177 : vector<1x1x128xf32> to vector<1x128xf32>
    %cst_142 = arith.constant dense<0.000000e+00> : vector<16xf32>
    %179 = vector.multi_reduction <add>, %174, %cst_142 [1] : vector<16x128xf32> to vector<16xf32>
    %180 = vector.shape_cast %179 : vector<16xf32> to vector<16x1xf32>
    %cst_143 = arith.constant 1.280000e+02 : f32
    %181 = vector.broadcast %cst_143 : f32 to vector<16x1xf32>
    %182 = arith.divf %180, %181 : vector<16x1xf32>
    %183 = vector.broadcast %182 : vector<16x1xf32> to vector<16x128xf32>
    %184 = arith.subf %174, %183 : vector<16x128xf32>
    %185 = arith.mulf %184, %184 : vector<16x128xf32>
    %cst_144 = arith.constant dense<0.000000e+00> : vector<16xf32>
    %186 = vector.multi_reduction <add>, %185, %cst_144 [1] : vector<16x128xf32> to vector<16xf32>
    %187 = vector.shape_cast %186 : vector<16xf32> to vector<16x1xf32>
    %cst_145 = arith.constant 1.280000e+02 : f32
    %188 = vector.broadcast %cst_145 : f32 to vector<16x1xf32>
    %189 = arith.divf %187, %188 : vector<16x1xf32>
    %190 = vector.broadcast %182 : vector<16x1xf32> to vector<16x128xf32>
    %191 = arith.subf %174, %190 : vector<16x128xf32>
    %cst_146 = arith.constant 9.99999974E-6 : f32
    %192 = vector.broadcast %cst_146 : f32 to vector<16x1xf32>
    %193 = arith.addf %189, %192 : vector<16x1xf32>
    %194 = math.rsqrt %193 : vector<16x1xf32>
    %195 = vector.broadcast %194 : vector<16x1xf32> to vector<16x128xf32>
    %196 = arith.mulf %191, %195 : vector<16x128xf32>
    %197 = vector.broadcast %176 : vector<1x128xf32> to vector<16x128xf32>
    %198 = arith.mulf %196, %197 : vector<16x128xf32>
    %199 = vector.broadcast %178 : vector<1x128xf32> to vector<16x128xf32>
    %200 = arith.addf %198, %199 : vector<16x128xf32>
    %201 = arith.truncf %200 : vector<16x128xf32> to vector<16x128xbf16>
    %cst_147 = arith.constant 0.000000e+00 : f32
    %202 = vector.broadcast %cst_147 : f32 to vector<16x128xf32>
    %c1_148 = arith.constant 1 : index
    %c0_149 = arith.constant 0 : index
    %c0_150 = arith.constant 0 : index
    %c0_151 = arith.constant 0 : index
    %203 = vector.load %arg3[%c1_148, %c0_149, %c0_150, %c0_151] : memref<2x4x128x32xbf16, #tpu.memory_space<vmem>>, vector<1x1x128x32xbf16>
    %204 = vector.shape_cast %203 : vector<1x1x128x32xbf16> to vector<128x32xbf16>
    %cst_152 = arith.constant dense<0.000000e+00> : vector<16x32xf32>
    %205 = tpu.matmul %201, %204, %cst_152 {dimension_numbers = #tpu.dot_dimension_numbers<[1], [0], [0], [1], [0, 0, 1, 1], [], []>} : vector<16x128xbf16>, vector<128x32xbf16>, vector<16x32xf32> -> vector<16x32xf32>
    %c1_153 = arith.constant 1 : index
    %c0_154 = arith.constant 0 : index
    %c0_155 = arith.constant 0 : index
    %c0_156 = arith.constant 0 : index
    %206 = vector.load %arg4[%c1_153, %c0_154, %c0_155, %c0_156] : memref<2x4x1x32xf32, #tpu.memory_space<vmem>>, vector<1x1x1x32xf32>
    %207 = vector.shape_cast %206 : vector<1x1x1x32xf32> to vector<1x32xf32>
    %208 = vector.broadcast %207 : vector<1x32xf32> to vector<16x32xf32>
    %209 = arith.addf %205, %208 : vector<16x32xf32>
    %c1_157 = arith.constant 1 : index
    %c0_158 = arith.constant 0 : index
    %c0_159 = arith.constant 0 : index
    %c0_160 = arith.constant 0 : index
    %210 = vector.load %arg5[%c1_157, %c0_158, %c0_159, %c0_160] : memref<2x4x32x16xf32, #tpu.memory_space<vmem>>, vector<1x1x32x16xf32>
    %211 = vector.shape_cast %210 : vector<1x1x32x16xf32> to vector<32x16xf32>
    %cst_161 = arith.constant dense<0.000000e+00> : vector<16x16xf32>
    %212 = tpu.matmul %209, %211, %cst_161 {dimension_numbers = #tpu.dot_dimension_numbers<[1], [0], [0], [1], [0, 0, 1, 1], [], []>} : vector<16x32xf32>, vector<32x16xf32>, vector<16x16xf32> -> vector<16x16xf32>
    %213 = arith.addf %212, %6 : vector<16x16xf32>
    %cst_162 = arith.constant dense<0xFF800000> : vector<16xf32>
    %214 = vector.multi_reduction <maximumf>, %213, %cst_162 [1] : vector<16x16xf32> to vector<16xf32>
    %215 = vector.shape_cast %214 : vector<16xf32> to vector<16x1xf32>
    %216 = vector.broadcast %215 : vector<16x1xf32> to vector<16x16xf32>
    %217 = arith.subf %213, %216 : vector<16x16xf32>
    %218 = math.exp %217 : vector<16x16xf32>
    %cst_163 = arith.constant dense<0.000000e+00> : vector<16xf32>
    %219 = vector.multi_reduction <add>, %218, %cst_163 [1] : vector<16x16xf32> to vector<16xf32>
    %220 = vector.shape_cast %219 : vector<16xf32> to vector<16x1xf32>
    %221 = tpu.reciprocal %220 : vector<16x1xf32> -> vector<16x1xf32>
    %222 = vector.broadcast %221 : vector<16x1xf32> to vector<16x16xf32>
    %223 = arith.mulf %218, %222 : vector<16x16xf32>
    %c1_164 = arith.constant 1 : index
    %c0_165 = arith.constant 0 : index
    %c0_166 = arith.constant 0 : index
    %c0_167 = arith.constant 0 : index
    %224 = vector.load %arg6[%c1_164, %c0_165, %c0_166, %c0_167] : memref<2x4x16x32xf32, #tpu.memory_space<vmem>>, vector<1x1x16x32xf32>
    %225 = vector.shape_cast %224 : vector<1x1x16x32xf32> to vector<16x32xf32>
    %cst_168 = arith.constant dense<0.000000e+00> : vector<16x32xf32>
    %226 = tpu.matmul %223, %225, %cst_168 {dimension_numbers = #tpu.dot_dimension_numbers<[1], [0], [0], [1], [0, 0, 1, 1], [], []>} : vector<16x16xf32>, vector<16x32xf32>, vector<16x32xf32> -> vector<16x32xf32>
    %227 = arith.truncf %226 : vector<16x32xf32> to vector<16x32xbf16>
    %c1_169 = arith.constant 1 : index
    %c0_170 = arith.constant 0 : index
    %c0_171 = arith.constant 0 : index
    %c0_172 = arith.constant 0 : index
    %228 = vector.load %arg7[%c1_169, %c0_170, %c0_171, %c0_172] : memref<2x4x32x128xbf16, #tpu.memory_space<vmem>>, vector<1x1x32x128xbf16>
    %229 = vector.shape_cast %228 : vector<1x1x32x128xbf16> to vector<32x128xbf16>
    %cst_173 = arith.constant dense<0.000000e+00> : vector<16x128xf32>
    %230 = tpu.matmul %227, %229, %cst_173 {dimension_numbers = #tpu.dot_dimension_numbers<[1], [0], [0], [1], [0, 0, 1, 1], [], []>} : vector<16x32xbf16>, vector<32x128xbf16>, vector<16x128xf32> -> vector<16x128xf32>
    %231 = arith.addf %202, %230 : vector<16x128xf32>
    %c1_174 = arith.constant 1 : index
    %c1_175 = arith.constant 1 : index
    %c0_176 = arith.constant 0 : index
    %c0_177 = arith.constant 0 : index
    %232 = vector.load %arg3[%c1_174, %c1_175, %c0_176, %c0_177] : memref<2x4x128x32xbf16, #tpu.memory_space<vmem>>, vector<1x1x128x32xbf16>
    %233 = vector.shape_cast %232 : vector<1x1x128x32xbf16> to vector<128x32xbf16>
    %cst_178 = arith.constant dense<0.000000e+00> : vector<16x32xf32>
    %234 = tpu.matmul %201, %233, %cst_178 {dimension_numbers = #tpu.dot_dimension_numbers<[1], [0], [0], [1], [0, 0, 1, 1], [], []>} : vector<16x128xbf16>, vector<128x32xbf16>, vector<16x32xf32> -> vector<16x32xf32>
    %c1_179 = arith.constant 1 : index
    %c1_180 = arith.constant 1 : index
    %c0_181 = arith.constant 0 : index
    %c0_182 = arith.constant 0 : index
    %235 = vector.load %arg4[%c1_179, %c1_180, %c0_181, %c0_182] : memref<2x4x1x32xf32, #tpu.memory_space<vmem>>, vector<1x1x1x32xf32>
    %236 = vector.shape_cast %235 : vector<1x1x1x32xf32> to vector<1x32xf32>
    %237 = vector.broadcast %236 : vector<1x32xf32> to vector<16x32xf32>
    %238 = arith.addf %234, %237 : vector<16x32xf32>
    %c1_183 = arith.constant 1 : index
    %c1_184 = arith.constant 1 : index
    %c0_185 = arith.constant 0 : index
    %c0_186 = arith.constant 0 : index
    %239 = vector.load %arg5[%c1_183, %c1_184, %c0_185, %c0_186] : memref<2x4x32x16xf32, #tpu.memory_space<vmem>>, vector<1x1x32x16xf32>
    %240 = vector.shape_cast %239 : vector<1x1x32x16xf32> to vector<32x16xf32>
    %cst_187 = arith.constant dense<0.000000e+00> : vector<16x16xf32>
    %241 = tpu.matmul %238, %240, %cst_187 {dimension_numbers = #tpu.dot_dimension_numbers<[1], [0], [0], [1], [0, 0, 1, 1], [], []>} : vector<16x32xf32>, vector<32x16xf32>, vector<16x16xf32> -> vector<16x16xf32>
    %242 = arith.addf %241, %6 : vector<16x16xf32>
    %cst_188 = arith.constant dense<0xFF800000> : vector<16xf32>
    %243 = vector.multi_reduction <maximumf>, %242, %cst_188 [1] : vector<16x16xf32> to vector<16xf32>
    %244 = vector.shape_cast %243 : vector<16xf32> to vector<16x1xf32>
    %245 = vector.broadcast %244 : vector<16x1xf32> to vector<16x16xf32>
    %246 = arith.subf %242, %245 : vector<16x16xf32>
    %247 = math.exp %246 : vector<16x16xf32>
    %cst_189 = arith.constant dense<0.000000e+00> : vector<16xf32>
    %248 = vector.multi_reduction <add>, %247, %cst_189 [1] : vector<16x16xf32> to vector<16xf32>
    %249 = vector.shape_cast %248 : vector<16xf32> to vector<16x1xf32>
    %250 = tpu.reciprocal %249 : vector<16x1xf32> -> vector<16x1xf32>
    %251 = vector.broadcast %250 : vector<16x1xf32> to vector<16x16xf32>
    %252 = arith.mulf %247, %251 : vector<16x16xf32>
    %c1_190 = arith.constant 1 : index
    %c1_191 = arith.constant 1 : index
    %c0_192 = arith.constant 0 : index
    %c0_193 = arith.constant 0 : index
    %253 = vector.load %arg6[%c1_190, %c1_191, %c0_192, %c0_193] : memref<2x4x16x32xf32, #tpu.memory_space<vmem>>, vector<1x1x16x32xf32>
    %254 = vector.shape_cast %253 : vector<1x1x16x32xf32> to vector<16x32xf32>
    %cst_194 = arith.constant dense<0.000000e+00> : vector<16x32xf32>
    %255 = tpu.matmul %252, %254, %cst_194 {dimension_numbers = #tpu.dot_dimension_numbers<[1], [0], [0], [1], [0, 0, 1, 1], [], []>} : vector<16x16xf32>, vector<16x32xf32>, vector<16x32xf32> -> vector<16x32xf32>
    %256 = arith.truncf %255 : vector<16x32xf32> to vector<16x32xbf16>
    %c1_195 = arith.constant 1 : index
    %c1_196 = arith.constant 1 : index
    %c0_197 = arith.constant 0 : index
    %c0_198 = arith.constant 0 : index
    %257 = vector.load %arg7[%c1_195, %c1_196, %c0_197, %c0_198] : memref<2x4x32x128xbf16, #tpu.memory_space<vmem>>, vector<1x1x32x128xbf16>
    %258 = vector.shape_cast %257 : vector<1x1x32x128xbf16> to vector<32x128xbf16>
    %cst_199 = arith.constant dense<0.000000e+00> : vector<16x128xf32>
    %259 = tpu.matmul %256, %258, %cst_199 {dimension_numbers = #tpu.dot_dimension_numbers<[1], [0], [0], [1], [0, 0, 1, 1], [], []>} : vector<16x32xbf16>, vector<32x128xbf16>, vector<16x128xf32> -> vector<16x128xf32>
    %260 = arith.addf %231, %259 : vector<16x128xf32>
    %c1_200 = arith.constant 1 : index
    %c2_201 = arith.constant 2 : index
    %c0_202 = arith.constant 0 : index
    %c0_203 = arith.constant 0 : index
    %261 = vector.load %arg3[%c1_200, %c2_201, %c0_202, %c0_203] : memref<2x4x128x32xbf16, #tpu.memory_space<vmem>>, vector<1x1x128x32xbf16>
    %262 = vector.shape_cast %261 : vector<1x1x128x32xbf16> to vector<128x32xbf16>
    %cst_204 = arith.constant dense<0.000000e+00> : vector<16x32xf32>
    %263 = tpu.matmul %201, %262, %cst_204 {dimension_numbers = #tpu.dot_dimension_numbers<[1], [0], [0], [1], [0, 0, 1, 1], [], []>} : vector<16x128xbf16>, vector<128x32xbf16>, vector<16x32xf32> -> vector<16x32xf32>
    %c1_205 = arith.constant 1 : index
    %c2_206 = arith.constant 2 : index
    %c0_207 = arith.constant 0 : index
    %c0_208 = arith.constant 0 : index
    %264 = vector.load %arg4[%c1_205, %c2_206, %c0_207, %c0_208] : memref<2x4x1x32xf32, #tpu.memory_space<vmem>>, vector<1x1x1x32xf32>
    %265 = vector.shape_cast %264 : vector<1x1x1x32xf32> to vector<1x32xf32>
    %266 = vector.broadcast %265 : vector<1x32xf32> to vector<16x32xf32>
    %267 = arith.addf %263, %266 : vector<16x32xf32>
    %c1_209 = arith.constant 1 : index
    %c2_210 = arith.constant 2 : index
    %c0_211 = arith.constant 0 : index
    %c0_212 = arith.constant 0 : index
    %268 = vector.load %arg5[%c1_209, %c2_210, %c0_211, %c0_212] : memref<2x4x32x16xf32, #tpu.memory_space<vmem>>, vector<1x1x32x16xf32>
    %269 = vector.shape_cast %268 : vector<1x1x32x16xf32> to vector<32x16xf32>
    %cst_213 = arith.constant dense<0.000000e+00> : vector<16x16xf32>
    %270 = tpu.matmul %267, %269, %cst_213 {dimension_numbers = #tpu.dot_dimension_numbers<[1], [0], [0], [1], [0, 0, 1, 1], [], []>} : vector<16x32xf32>, vector<32x16xf32>, vector<16x16xf32> -> vector<16x16xf32>
    %271 = arith.addf %270, %6 : vector<16x16xf32>
    %cst_214 = arith.constant dense<0xFF800000> : vector<16xf32>
    %272 = vector.multi_reduction <maximumf>, %271, %cst_214 [1] : vector<16x16xf32> to vector<16xf32>
    %273 = vector.shape_cast %272 : vector<16xf32> to vector<16x1xf32>
    %274 = vector.broadcast %273 : vector<16x1xf32> to vector<16x16xf32>
    %275 = arith.subf %271, %274 : vector<16x16xf32>
    %276 = math.exp %275 : vector<16x16xf32>
    %cst_215 = arith.constant dense<0.000000e+00> : vector<16xf32>
    %277 = vector.multi_reduction <add>, %276, %cst_215 [1] : vector<16x16xf32> to vector<16xf32>
    %278 = vector.shape_cast %277 : vector<16xf32> to vector<16x1xf32>
    %279 = tpu.reciprocal %278 : vector<16x1xf32> -> vector<16x1xf32>
    %280 = vector.broadcast %279 : vector<16x1xf32> to vector<16x16xf32>
    %281 = arith.mulf %276, %280 : vector<16x16xf32>
    %c1_216 = arith.constant 1 : index
    %c2_217 = arith.constant 2 : index
    %c0_218 = arith.constant 0 : index
    %c0_219 = arith.constant 0 : index
    %282 = vector.load %arg6[%c1_216, %c2_217, %c0_218, %c0_219] : memref<2x4x16x32xf32, #tpu.memory_space<vmem>>, vector<1x1x16x32xf32>
    %283 = vector.shape_cast %282 : vector<1x1x16x32xf32> to vector<16x32xf32>
    %cst_220 = arith.constant dense<0.000000e+00> : vector<16x32xf32>
    %284 = tpu.matmul %281, %283, %cst_220 {dimension_numbers = #tpu.dot_dimension_numbers<[1], [0], [0], [1], [0, 0, 1, 1], [], []>} : vector<16x16xf32>, vector<16x32xf32>, vector<16x32xf32> -> vector<16x32xf32>
    %285 = arith.truncf %284 : vector<16x32xf32> to vector<16x32xbf16>
    %c1_221 = arith.constant 1 : index
    %c2_222 = arith.constant 2 : index
    %c0_223 = arith.constant 0 : index
    %c0_224 = arith.constant 0 : index
    %286 = vector.load %arg7[%c1_221, %c2_222, %c0_223, %c0_224] : memref<2x4x32x128xbf16, #tpu.memory_space<vmem>>, vector<1x1x32x128xbf16>
    %287 = vector.shape_cast %286 : vector<1x1x32x128xbf16> to vector<32x128xbf16>
    %cst_225 = arith.constant dense<0.000000e+00> : vector<16x128xf32>
    %288 = tpu.matmul %285, %287, %cst_225 {dimension_numbers = #tpu.dot_dimension_numbers<[1], [0], [0], [1], [0, 0, 1, 1], [], []>} : vector<16x32xbf16>, vector<32x128xbf16>, vector<16x128xf32> -> vector<16x128xf32>
    %289 = arith.addf %260, %288 : vector<16x128xf32>
    %c1_226 = arith.constant 1 : index
    %c3_227 = arith.constant 3 : index
    %c0_228 = arith.constant 0 : index
    %c0_229 = arith.constant 0 : index
    %290 = vector.load %arg3[%c1_226, %c3_227, %c0_228, %c0_229] : memref<2x4x128x32xbf16, #tpu.memory_space<vmem>>, vector<1x1x128x32xbf16>
    %291 = vector.shape_cast %290 : vector<1x1x128x32xbf16> to vector<128x32xbf16>
    %cst_230 = arith.constant dense<0.000000e+00> : vector<16x32xf32>
    %292 = tpu.matmul %201, %291, %cst_230 {dimension_numbers = #tpu.dot_dimension_numbers<[1], [0], [0], [1], [0, 0, 1, 1], [], []>} : vector<16x128xbf16>, vector<128x32xbf16>, vector<16x32xf32> -> vector<16x32xf32>
    %c1_231 = arith.constant 1 : index
    %c3_232 = arith.constant 3 : index
    %c0_233 = arith.constant 0 : index
    %c0_234 = arith.constant 0 : index
    %293 = vector.load %arg4[%c1_231, %c3_232, %c0_233, %c0_234] : memref<2x4x1x32xf32, #tpu.memory_space<vmem>>, vector<1x1x1x32xf32>
    %294 = vector.shape_cast %293 : vector<1x1x1x32xf32> to vector<1x32xf32>
    %295 = vector.broadcast %294 : vector<1x32xf32> to vector<16x32xf32>
    %296 = arith.addf %292, %295 : vector<16x32xf32>
    %c1_235 = arith.constant 1 : index
    %c3_236 = arith.constant 3 : index
    %c0_237 = arith.constant 0 : index
    %c0_238 = arith.constant 0 : index
    %297 = vector.load %arg5[%c1_235, %c3_236, %c0_237, %c0_238] : memref<2x4x32x16xf32, #tpu.memory_space<vmem>>, vector<1x1x32x16xf32>
    %298 = vector.shape_cast %297 : vector<1x1x32x16xf32> to vector<32x16xf32>
    %cst_239 = arith.constant dense<0.000000e+00> : vector<16x16xf32>
    %299 = tpu.matmul %296, %298, %cst_239 {dimension_numbers = #tpu.dot_dimension_numbers<[1], [0], [0], [1], [0, 0, 1, 1], [], []>} : vector<16x32xf32>, vector<32x16xf32>, vector<16x16xf32> -> vector<16x16xf32>
    %300 = arith.addf %299, %6 : vector<16x16xf32>
    %cst_240 = arith.constant dense<0xFF800000> : vector<16xf32>
    %301 = vector.multi_reduction <maximumf>, %300, %cst_240 [1] : vector<16x16xf32> to vector<16xf32>
    %302 = vector.shape_cast %301 : vector<16xf32> to vector<16x1xf32>
    %303 = vector.broadcast %302 : vector<16x1xf32> to vector<16x16xf32>
    %304 = arith.subf %300, %303 : vector<16x16xf32>
    %305 = math.exp %304 : vector<16x16xf32>
    %cst_241 = arith.constant dense<0.000000e+00> : vector<16xf32>
    %306 = vector.multi_reduction <add>, %305, %cst_241 [1] : vector<16x16xf32> to vector<16xf32>
    %307 = vector.shape_cast %306 : vector<16xf32> to vector<16x1xf32>
    %308 = tpu.reciprocal %307 : vector<16x1xf32> -> vector<16x1xf32>
    %309 = vector.broadcast %308 : vector<16x1xf32> to vector<16x16xf32>
    %310 = arith.mulf %305, %309 : vector<16x16xf32>
    %c1_242 = arith.constant 1 : index
    %c3_243 = arith.constant 3 : index
    %c0_244 = arith.constant 0 : index
    %c0_245 = arith.constant 0 : index
    %311 = vector.load %arg6[%c1_242, %c3_243, %c0_244, %c0_245] : memref<2x4x16x32xf32, #tpu.memory_space<vmem>>, vector<1x1x16x32xf32>
    %312 = vector.shape_cast %311 : vector<1x1x16x32xf32> to vector<16x32xf32>
    %cst_246 = arith.constant dense<0.000000e+00> : vector<16x32xf32>
    %313 = tpu.matmul %310, %312, %cst_246 {dimension_numbers = #tpu.dot_dimension_numbers<[1], [0], [0], [1], [0, 0, 1, 1], [], []>} : vector<16x16xf32>, vector<16x32xf32>, vector<16x32xf32> -> vector<16x32xf32>
    %314 = arith.truncf %313 : vector<16x32xf32> to vector<16x32xbf16>
    %c1_247 = arith.constant 1 : index
    %c3_248 = arith.constant 3 : index
    %c0_249 = arith.constant 0 : index
    %c0_250 = arith.constant 0 : index
    %315 = vector.load %arg7[%c1_247, %c3_248, %c0_249, %c0_250] : memref<2x4x32x128xbf16, #tpu.memory_space<vmem>>, vector<1x1x32x128xbf16>
    %316 = vector.shape_cast %315 : vector<1x1x32x128xbf16> to vector<32x128xbf16>
    %cst_251 = arith.constant dense<0.000000e+00> : vector<16x128xf32>
    %317 = tpu.matmul %314, %316, %cst_251 {dimension_numbers = #tpu.dot_dimension_numbers<[1], [0], [0], [1], [0, 0, 1, 1], [], []>} : vector<16x32xbf16>, vector<32x128xbf16>, vector<16x128xf32> -> vector<16x128xf32>
    %318 = arith.addf %289, %317 : vector<16x128xf32>
    %319 = arith.addf %200, %318 : vector<16x128xf32>
    %c1_252 = arith.constant 1 : index
    %c0_253 = arith.constant 0 : index
    %c0_254 = arith.constant 0 : index
    %320 = vector.load %arg8[%c1_252, %c0_253, %c0_254] : memref<2x1x128xf32, #tpu.memory_space<vmem>>, vector<1x1x128xf32>
    %321 = vector.shape_cast %320 : vector<1x1x128xf32> to vector<1x128xf32>
    %322 = vector.broadcast %321 : vector<1x128xf32> to vector<16x128xf32>
    %323 = arith.addf %319, %322 : vector<16x128xf32>
    %c1_255 = arith.constant 1 : index
    %c0_256 = arith.constant 0 : index
    %c0_257 = arith.constant 0 : index
    %324 = vector.load %arg9[%c1_255, %c0_256, %c0_257] : memref<2x1x128xf32, #tpu.memory_space<vmem>>, vector<1x1x128xf32>
    %325 = vector.shape_cast %324 : vector<1x1x128xf32> to vector<1x128xf32>
    %c1_258 = arith.constant 1 : index
    %c0_259 = arith.constant 0 : index
    %c0_260 = arith.constant 0 : index
    %326 = vector.load %arg10[%c1_258, %c0_259, %c0_260] : memref<2x1x128xf32, #tpu.memory_space<vmem>>, vector<1x1x128xf32>
    %327 = vector.shape_cast %326 : vector<1x1x128xf32> to vector<1x128xf32>
    %cst_261 = arith.constant dense<0.000000e+00> : vector<16xf32>
    %328 = vector.multi_reduction <add>, %323, %cst_261 [1] : vector<16x128xf32> to vector<16xf32>
    %329 = vector.shape_cast %328 : vector<16xf32> to vector<16x1xf32>
    %cst_262 = arith.constant 1.280000e+02 : f32
    %330 = vector.broadcast %cst_262 : f32 to vector<16x1xf32>
    %331 = arith.divf %329, %330 : vector<16x1xf32>
    %332 = vector.broadcast %331 : vector<16x1xf32> to vector<16x128xf32>
    %333 = arith.subf %323, %332 : vector<16x128xf32>
    %334 = arith.mulf %333, %333 : vector<16x128xf32>
    %cst_263 = arith.constant dense<0.000000e+00> : vector<16xf32>
    %335 = vector.multi_reduction <add>, %334, %cst_263 [1] : vector<16x128xf32> to vector<16xf32>
    %336 = vector.shape_cast %335 : vector<16xf32> to vector<16x1xf32>
    %cst_264 = arith.constant 1.280000e+02 : f32
    %337 = vector.broadcast %cst_264 : f32 to vector<16x1xf32>
    %338 = arith.divf %336, %337 : vector<16x1xf32>
    %339 = vector.broadcast %331 : vector<16x1xf32> to vector<16x128xf32>
    %340 = arith.subf %323, %339 : vector<16x128xf32>
    %cst_265 = arith.constant 9.99999974E-6 : f32
    %341 = vector.broadcast %cst_265 : f32 to vector<16x1xf32>
    %342 = arith.addf %338, %341 : vector<16x1xf32>
    %343 = math.rsqrt %342 : vector<16x1xf32>
    %344 = vector.broadcast %343 : vector<16x1xf32> to vector<16x128xf32>
    %345 = arith.mulf %340, %344 : vector<16x128xf32>
    %346 = vector.broadcast %325 : vector<1x128xf32> to vector<16x128xf32>
    %347 = arith.mulf %345, %346 : vector<16x128xf32>
    %348 = vector.broadcast %327 : vector<1x128xf32> to vector<16x128xf32>
    %349 = arith.addf %347, %348 : vector<16x128xf32>
    %350 = arith.truncf %349 : vector<16x128xf32> to vector<16x128xbf16>
    %c1_266 = arith.constant 1 : index
    %c0_267 = arith.constant 0 : index
    %c0_268 = arith.constant 0 : index
    %351 = vector.load %arg11[%c1_266, %c0_267, %c0_268] : memref<2x128x256xbf16, #tpu.memory_space<vmem>>, vector<1x128x256xbf16>
    %352 = vector.shape_cast %351 : vector<1x128x256xbf16> to vector<128x256xbf16>
    %cst_269 = arith.constant dense<0.000000e+00> : vector<16x256xf32>
    %353 = tpu.matmul %350, %352, %cst_269 {dimension_numbers = #tpu.dot_dimension_numbers<[1], [0], [0], [1], [0, 0, 1, 1], [], []>} : vector<16x128xbf16>, vector<128x256xbf16>, vector<16x256xf32> -> vector<16x256xf32>
    %c1_270 = arith.constant 1 : index
    %c0_271 = arith.constant 0 : index
    %c0_272 = arith.constant 0 : index
    %354 = vector.load %arg12[%c1_270, %c0_271, %c0_272] : memref<2x1x256xf32, #tpu.memory_space<vmem>>, vector<1x1x256xf32>
    %355 = vector.shape_cast %354 : vector<1x1x256xf32> to vector<1x256xf32>
    %356 = vector.broadcast %355 : vector<1x256xf32> to vector<16x256xf32>
    %357 = arith.addf %353, %356 : vector<16x256xf32>
    %cst_273 = arith.constant 0.000000e+00 : f32
    %358 = vector.broadcast %cst_273 : f32 to vector<16x256xf32>
    %359 = arith.maximumf %357, %358 : vector<16x256xf32>
    %360 = arith.truncf %359 : vector<16x256xf32> to vector<16x256xbf16>
    %c1_274 = arith.constant 1 : index
    %c0_275 = arith.constant 0 : index
    %c0_276 = arith.constant 0 : index
    %361 = vector.load %arg13[%c1_274, %c0_275, %c0_276] : memref<2x256x128xbf16, #tpu.memory_space<vmem>>, vector<1x256x128xbf16>
    %362 = vector.shape_cast %361 : vector<1x256x128xbf16> to vector<256x128xbf16>
    %cst_277 = arith.constant dense<0.000000e+00> : vector<16x128xf32>
    %363 = tpu.matmul %360, %362, %cst_277 {dimension_numbers = #tpu.dot_dimension_numbers<[1], [0], [0], [1], [0, 0, 1, 1], [], []>} : vector<16x256xbf16>, vector<256x128xbf16>, vector<16x128xf32> -> vector<16x128xf32>
    %c1_278 = arith.constant 1 : index
    %c0_279 = arith.constant 0 : index
    %c0_280 = arith.constant 0 : index
    %364 = vector.load %arg14[%c1_278, %c0_279, %c0_280] : memref<2x1x128xf32, #tpu.memory_space<vmem>>, vector<1x1x128xf32>
    %365 = vector.shape_cast %364 : vector<1x1x128xf32> to vector<1x128xf32>
    %366 = vector.broadcast %365 : vector<1x128xf32> to vector<16x128xf32>
    %367 = arith.addf %363, %366 : vector<16x128xf32>
    %368 = arith.addf %349, %367 : vector<16x128xf32>
    %c1_281 = arith.constant 1 : index
    %c0_282 = arith.constant 0 : index
    %c0_283 = arith.constant 0 : index
    %369 = vector.load %arg15[%c1_281, %c0_282, %c0_283] : memref<2x1x128xf32, #tpu.memory_space<vmem>>, vector<1x1x128xf32>
    %370 = vector.shape_cast %369 : vector<1x1x128xf32> to vector<1x128xf32>
    %c1_284 = arith.constant 1 : index
    %c0_285 = arith.constant 0 : index
    %c0_286 = arith.constant 0 : index
    %371 = vector.load %arg16[%c1_284, %c0_285, %c0_286] : memref<2x1x128xf32, #tpu.memory_space<vmem>>, vector<1x1x128xf32>
    %372 = vector.shape_cast %371 : vector<1x1x128xf32> to vector<1x128xf32>
    %cst_287 = arith.constant dense<0.000000e+00> : vector<16xf32>
    %373 = vector.multi_reduction <add>, %368, %cst_287 [1] : vector<16x128xf32> to vector<16xf32>
    %374 = vector.shape_cast %373 : vector<16xf32> to vector<16x1xf32>
    %cst_288 = arith.constant 1.280000e+02 : f32
    %375 = vector.broadcast %cst_288 : f32 to vector<16x1xf32>
    %376 = arith.divf %374, %375 : vector<16x1xf32>
    %377 = vector.broadcast %376 : vector<16x1xf32> to vector<16x128xf32>
    %378 = arith.subf %368, %377 : vector<16x128xf32>
    %379 = arith.mulf %378, %378 : vector<16x128xf32>
    %cst_289 = arith.constant dense<0.000000e+00> : vector<16xf32>
    %380 = vector.multi_reduction <add>, %379, %cst_289 [1] : vector<16x128xf32> to vector<16xf32>
    %381 = vector.shape_cast %380 : vector<16xf32> to vector<16x1xf32>
    %cst_290 = arith.constant 1.280000e+02 : f32
    %382 = vector.broadcast %cst_290 : f32 to vector<16x1xf32>
    %383 = arith.divf %381, %382 : vector<16x1xf32>
    %384 = vector.broadcast %376 : vector<16x1xf32> to vector<16x128xf32>
    %385 = arith.subf %368, %384 : vector<16x128xf32>
    %cst_291 = arith.constant 9.99999974E-6 : f32
    %386 = vector.broadcast %cst_291 : f32 to vector<16x1xf32>
    %387 = arith.addf %383, %386 : vector<16x1xf32>
    %388 = math.rsqrt %387 : vector<16x1xf32>
    %389 = vector.broadcast %388 : vector<16x1xf32> to vector<16x128xf32>
    %390 = arith.mulf %385, %389 : vector<16x128xf32>
    %391 = vector.broadcast %370 : vector<1x128xf32> to vector<16x128xf32>
    %392 = arith.mulf %390, %391 : vector<16x128xf32>
    %393 = vector.broadcast %372 : vector<1x128xf32> to vector<16x128xf32>
    %394 = arith.addf %392, %393 : vector<16x128xf32>
    %395 = arith.truncf %394 : vector<16x128xf32> to vector<16x128xbf16>
    %c0_292 = arith.constant 0 : index
    %c0_293 = arith.constant 0 : index
    %396 = vector.load %arg17[%c0_292, %c0_293] : memref<128x128xbf16, #tpu.memory_space<vmem>>, vector<128x128xbf16>
    %cst_294 = arith.constant dense<0.000000e+00> : vector<16x128xf32>
    %397 = tpu.matmul %395, %396, %cst_294 {dimension_numbers = #tpu.dot_dimension_numbers<[1], [0], [0], [1], [0, 0, 1, 1], [], []>} : vector<16x128xbf16>, vector<128x128xbf16>, vector<16x128xf32> -> vector<16x128xf32>
    %c0_295 = arith.constant 0 : index
    %c0_296 = arith.constant 0 : index
    %398 = vector.load %arg18[%c0_295, %c0_296] : memref<128x16xf32, #tpu.memory_space<vmem>>, vector<128x16xf32>
    %cst_297 = arith.constant dense<0.000000e+00> : vector<16x16xf32>
    %399 = tpu.matmul %397, %398, %cst_297 {dimension_numbers = #tpu.dot_dimension_numbers<[1], [0], [0], [1], [0, 0, 1, 1], [], []>} : vector<16x128xf32>, vector<128x16xf32>, vector<16x16xf32> -> vector<16x16xf32>
    %400 = math.tanh %399 : vector<16x16xf32>
    %cst_298 = arith.constant 1.000000e+01 : f32
    %401 = vector.broadcast %cst_298 : f32 to vector<16x16xf32>
    %402 = arith.mulf %401, %400 : vector<16x16xf32>
    %cst_299 = arith.constant -1.000000e+08 : f32
    %403 = vector.broadcast %cst_299 : f32 to vector<16x16xf32>
    %404 = arith.select %3, %403, %402 : vector<16x16xi1>, vector<16x16xf32>
    %c0_300 = arith.constant 0 : index
    %c0_301 = arith.constant 0 : index
    %405 = vector.load %arg19[%c0_300, %c0_301] : memref<16x16xf32, #tpu.memory_space<vmem>>, vector<16x16xf32>
    tpu.vector_store %arg19[%c0_300, %c0_301], %404 {strides = array<i32>} : memref<16x16xf32, #tpu.memory_space<vmem>>, vector<16x16xf32>,
    return
  }
  func.func @transform_0(%arg0: i32) -> (i32, i32) {
    %c0_i32 = arith.constant 0 : i32
    %c0_i32_0 = arith.constant 0 : i32
    return %arg0, %c0_i32 : i32, i32
  }
  func.func @transform_1(%arg0: i32) -> (i32, i32) {
    %c0_i32 = arith.constant 0 : i32
    %c0_i32_0 = arith.constant 0 : i32
    return %arg0, %c0_i32 : i32, i32
  }
  func.func @transform_2(%arg0: i32) -> (i32, i32, i32, i32) {
    %c0_i32 = arith.constant 0 : i32
    %c0_i32_0 = arith.constant 0 : i32
    %c0_i32_1 = arith.constant 0 : i32
    %c0_i32_2 = arith.constant 0 : i32
    %c0_i32_3 = arith.constant 0 : i32
    return %c0_i32, %c0_i32_0, %c0_i32_1, %c0_i32_2 : i32, i32, i32, i32
  }
  func.func @transform_3(%arg0: i32) -> (i32, i32, i32, i32) {
    %c0_i32 = arith.constant 0 : i32
    %c0_i32_0 = arith.constant 0 : i32
    %c0_i32_1 = arith.constant 0 : i32
    %c0_i32_2 = arith.constant 0 : i32
    %c0_i32_3 = arith.constant 0 : i32
    return %c0_i32, %c0_i32_0, %c0_i32_1, %c0_i32_2 : i32, i32, i32, i32
  }
  func.func @transform_4(%arg0: i32) -> (i32, i32, i32, i32) {
    %c0_i32 = arith.constant 0 : i32
    %c0_i32_0 = arith.constant 0 : i32
    %c0_i32_1 = arith.constant 0 : i32
    %c0_i32_2 = arith.constant 0 : i32
    %c0_i32_3 = arith.constant 0 : i32
    return %c0_i32, %c0_i32_0, %c0_i32_1, %c0_i32_2 : i32, i32, i32, i32
  }
  func.func @transform_5(%arg0: i32) -> (i32, i32, i32, i32) {
    %c0_i32 = arith.constant 0 : i32
    %c0_i32_0 = arith.constant 0 : i32
    %c0_i32_1 = arith.constant 0 : i32
    %c0_i32_2 = arith.constant 0 : i32
    %c0_i32_3 = arith.constant 0 : i32
    return %c0_i32, %c0_i32_0, %c0_i32_1, %c0_i32_2 : i32, i32, i32, i32
  }
  func.func @transform_6(%arg0: i32) -> (i32, i32, i32, i32) {
    %c0_i32 = arith.constant 0 : i32
    %c0_i32_0 = arith.constant 0 : i32
    %c0_i32_1 = arith.constant 0 : i32
    %c0_i32_2 = arith.constant 0 : i32
    %c0_i32_3 = arith.constant 0 : i32
    return %c0_i32, %c0_i32_0, %c0_i32_1, %c0_i32_2 : i32, i32, i32, i32
  }
  func.func @transform_7(%arg0: i32) -> (i32, i32, i32) {
    %c0_i32 = arith.constant 0 : i32
    %c0_i32_0 = arith.constant 0 : i32
    %c0_i32_1 = arith.constant 0 : i32
    %c0_i32_2 = arith.constant 0 : i32
    return %c0_i32, %c0_i32_0, %c0_i32_1 : i32, i32, i32
  }
  func.func @transform_8(%arg0: i32) -> (i32, i32, i32) {
    %c0_i32 = arith.constant 0 : i32
    %c0_i32_0 = arith.constant 0 : i32
    %c0_i32_1 = arith.constant 0 : i32
    %c0_i32_2 = arith.constant 0 : i32
    return %c0_i32, %c0_i32_0, %c0_i32_1 : i32, i32, i32
  }
  func.func @transform_9(%arg0: i32) -> (i32, i32, i32) {
    %c0_i32 = arith.constant 0 : i32
    %c0_i32_0 = arith.constant 0 : i32
    %c0_i32_1 = arith.constant 0 : i32
    %c0_i32_2 = arith.constant 0 : i32
    return %c0_i32, %c0_i32_0, %c0_i32_1 : i32, i32, i32
  }
  func.func @transform_10(%arg0: i32) -> (i32, i32, i32) {
    %c0_i32 = arith.constant 0 : i32
    %c0_i32_0 = arith.constant 0 : i32
    %c0_i32_1 = arith.constant 0 : i32
    %c0_i32_2 = arith.constant 0 : i32
    return %c0_i32, %c0_i32_0, %c0_i32_1 : i32, i32, i32
  }
  func.func @transform_11(%arg0: i32) -> (i32, i32, i32) {
    %c0_i32 = arith.constant 0 : i32
    %c0_i32_0 = arith.constant 0 : i32
    %c0_i32_1 = arith.constant 0 : i32
    %c0_i32_2 = arith.constant 0 : i32
    return %c0_i32, %c0_i32_0, %c0_i32_1 : i32, i32, i32
  }
  func.func @transform_12(%arg0: i32) -> (i32, i32, i32) {
    %c0_i32 = arith.constant 0 : i32
    %c0_i32_0 = arith.constant 0 : i32
    %c0_i32_1 = arith.constant 0 : i32
    %c0_i32_2 = arith.constant 0 : i32
    return %c0_i32, %c0_i32_0, %c0_i32_1 : i32, i32, i32
  }
  func.func @transform_13(%arg0: i32) -> (i32, i32, i32) {
    %c0_i32 = arith.constant 0 : i32
    %c0_i32_0 = arith.constant 0 : i32
    %c0_i32_1 = arith.constant 0 : i32
    %c0_i32_2 = arith.constant 0 : i32
    return %c0_i32, %c0_i32_0, %c0_i32_1 : i32, i32, i32
  }
  func.func @transform_14(%arg0: i32) -> (i32, i32, i32) {
    %c0_i32 = arith.constant 0 : i32
    %c0_i32_0 = arith.constant 0 : i32
    %c0_i32_1 = arith.constant 0 : i32
    %c0_i32_2 = arith.constant 0 : i32
    return %c0_i32, %c0_i32_0, %c0_i32_1 : i32, i32, i32
  }
  func.func @transform_15(%arg0: i32) -> (i32, i32, i32) {
    %c0_i32 = arith.constant 0 : i32
    %c0_i32_0 = arith.constant 0 : i32
    %c0_i32_1 = arith.constant 0 : i32
    %c0_i32_2 = arith.constant 0 : i32
    return %c0_i32, %c0_i32_0, %c0_i32_1 : i32, i32, i32
  }
  func.func @transform_16(%arg0: i32) -> (i32, i32) {
    %c0_i32 = arith.constant 0 : i32
    %c0_i32_0 = arith.constant 0 : i32
    %c0_i32_1 = arith.constant 0 : i32
    return %c0_i32, %c0_i32_0 : i32, i32
  }
  func.func @transform_17(%arg0: i32) -> (i32, i32) {
    %c0_i32 = arith.constant 0 : i32
    %c0_i32_0 = arith.constant 0 : i32
    %c0_i32_1 = arith.constant 0 : i32
    return %c0_i32, %c0_i32_0 : i32, i32
  }
  func.func @transform_18(%arg0: i32) -> (i32, i32) {
    %c0_i32 = arith.constant 0 : i32
    %c0_i32_0 = arith.constant 0 : i32
    return %arg0, %c0_i32 : i32, i32
  }
}

</mosaic_0001>

<bundles_post_ra>
// kernel: tpu_custom_call.1
= control target key start
LH: loop header
LB: loop body
LE: loop exit
PB: predicated region body
PF: predicated region fallthrough
CT: control target
= control target key end

     0   :  { %s6820_s0 = inlined_call_operand.vmem [shape: f32[16,128], index: 0, kind: input, shape index: {}]   ;;  %s6821_s1 = inlined_call_operand.vmem [shape: f32[16,16], index: 1, kind: input, shape index: {}]   ;;  %s6822_s2 = inlined_call_operand.vmem [shape: bf16[2,4,128,32], index: 2, kind: input, shape index: {}]   ;;  %s6823_s3 = inlined_call_operand.vmem [shape: f32[2,4,1,32], index: 3, kind: input, shape index: {}]   ;;  %s6824_s4 = inlined_call_operand.vmem [shape: f32[2,4,32,16], index: 4, kind: input, shape index: {}]   ;;  %s6825_s5 = inlined_call_operand.vmem [shape: f32[2,4,16,32], index: 5, kind: input, shape index: {}]   ;;  %s6826_s6 = inlined_call_operand.vmem [shape: bf16[2,4,32,128], index: 6, kind: input, shape index: {}]   ;;  %s6827_s7 = inlined_call_operand.vmem [shape: f32[2,1,128], index: 7, kind: input, shape index: {}]   ;;  %s6828_s8 = inlined_call_operand.vmem [shape: f32[2,1,128], index: 8, kind: input, shape index: {}]   ;;  %s6829_s9 = inlined_call_operand.vmem [shape: f32[2,1,128], index: 9, kind: input, shape index: {}]   ;;  %s6830_s10 = inlined_call_operand.vmem [shape: bf16[2,128,256], index: 10, kind: input, shape index: {}]   ;;  %s6831_s11 = inlined_call_operand.vmem [shape: f32[2,1,256], index: 11, kind: input, shape index: {}]   ;;  %s6832_s12 = inlined_call_operand.vmem [shape: bf16[2,256,128], index: 12, kind: input, shape index: {}]   ;;  %s6833_s13 = inlined_call_operand.vmem [shape: f32[2,1,128], index: 13, kind: input, shape index: {}]   ;;  %s6834_s14 = inlined_call_operand.vmem [shape: f32[2,1,128], index: 14, kind: input, shape index: {}]   ;;  %s6835_s15 = inlined_call_operand.vmem [shape: f32[2,1,128], index: 15, kind: input, shape index: {}]   ;;  %s6836_s16 = inlined_call_operand.vmem [shape: bf16[128,128], index: 16, kind: input, shape index: {}]   ;;  %s6837_s17 = inlined_call_operand.vmem [shape: f32[128,16], index: 17, kind: input, shape index: {}]   ;;  %s6838_s18 = inlined_call_operand.hbm [shape: f32[16,16], index: 18, kind: output, shape index: {}]  }
   0x1   :  { %6842 = sst [smem:[#allocation5_spill]] %s6820_s0 }
   0x2   :  { %6843 = sst [smem:[#allocation6_spill]] %s6821_s1 }
   0x3   :  { %6844 = sst [smem:[#allocation7_spill]] %s6822_s2 }
   0x4   :  { %s6845_s29 = sld [smem:[#allocation7_spill]]  ;;  %v5643_v1 = vmov 0.0   ;;  %vm5644_vm0 = vmmov 0   ;;  %v182_v4 = vld [vmem:[%s6824_s4] sm:$0xff]  ;;  %v183_v6 = vld [vmem:[%s6824_s4 + $0x8] sm:$0xff]  ;;  %s6846_s22 = sld [smem:[#allocation5_spill]] }
   0x5   :  { %4808 = vmatprep.subr.bf16.mxu0 %v5643_v1  ;;  %4824 = vmatprep.mubr.msk.bf16.mxu0 %vm5644_vm0, %v5643_v1  ;;  %v5231_v7 = vpack.c.bf16 %v183_v6, %v182_v4 }
   0x7   :  { %5232 = vmatprep.subr.bf16.mxu1 %v5231_v7 }
   0x8   :  { %5234 = vmatpush3.bf16.msra.mxu1 %v5231_v7 }
   0xa   :  { %v5365_v0 = vld [vmem:[%s6845_s29] sm:$0xff]   ;;  %v5366_v2 = vld [vmem:[%s6845_s29 + $0x8] sm:$0xff]   ;;  %v5367_v3 = vld [vmem:[%s6845_s29 + $0x10] sm:$0xff]  }
   0xb   :  { %4809 = vmatpush3.bf16.msra.mxu0 %v5365_v0  ;;  %v5368_v5 = vld [vmem:[%s6845_s29 + $0x18] sm:$0xff]   ;;  %v5369_v8 = vld [vmem:[%s6845_s29 + $0x20] sm:$0xff]   ;;  %v5370_v9 = vld [vmem:[%s6845_s29 + $0x28] sm:$0xff]  }
   0xc   :  { %4810 = vmatprep.subr.bf16.mxu0 %v5643_v1  ;;  %v5371_v10 = vld [vmem:[%s6845_s29 + $0x30] sm:$0xff]   ;;  %v5372_v11 = vld [vmem:[%s6845_s29 + $0x38] sm:$0xff]   ;;  %v61_v12 = vld [vmem:[%s6846_s22] sm:$0xff] }
   0xd   :  { %v62_v13 = vld [vmem:[%s6846_s22 + $0x8] sm:$0xff] }
   0xe   :  { %v5790_v14 = vpack.c.bf16 %v62_v13, %v61_v12 }
   0xf   :  { %4811 = vmatpush3.bf16.msra.mxu0 %v5366_v2 }
  0x10   :  { %4812 = vmatprep.subr.bf16.mxu0 %v5643_v1 }
  0x13   :  { %4813 = vmatpush3.bf16.msra.mxu0 %v5367_v3 }
  0x14   :  { %4814 = vmatprep.subr.bf16.mxu0 %v5643_v1 }
  0x17   :  { %4815 = vmatpush3.bf16.msra.mxu0 %v5368_v5 }
  0x18   :  { %4816 = vmatprep.subr.bf16.mxu0 %v5643_v1 }
  0x1b   :  { %4817 = vmatpush3.bf16.msra.mxu0 %v5369_v8 }
  0x1c   :  { %4818 = vmatprep.subr.bf16.mxu0 %v5643_v1 }
  0x1f   :  { %4819 = vmatpush3.bf16.msra.mxu0 %v5370_v9 }
  0x20   :  { %4820 = vmatprep.subr.bf16.mxu0 %v5643_v1 }
  0x23   :  { %4821 = vmatpush3.bf16.msra.mxu0 %v5371_v10 }
  0x24   :  { %4822 = vmatprep.subr.bf16.mxu0 %v5643_v1 }
  0x27   :  { %4823 = vmatpush3.bf16.msra.mxu0 %v5372_v11 }
  0x2a   :  { %4825 = vmatmul.mubr.bf16.vlgmr.msra.gmra.mrb[0].mxu0 %v5790_v14 }
  0x2b   :  { %23 = vsyncpa [#allocation3], 0  ;;  %v184_v15 = vld [vmem:[%s6824_s4 + $0x10] sm:$0xff]  ;;  %v185_v16 = vld [vmem:[%s6824_s4 + $0x18] sm:$0xff]  ;;  %vm186_vm1 = vcmask 261120   ;;  %s6847_s1 = sld [smem:[#allocation6_spill]] }
  0x2c   :  { %v5235_v17 = vpack.c.bf16 %v185_v16, %v184_v15  ;;  %v4105_v18 = vld [vmem:[%s6823_s3] ss:$0 sm:$0xff]  ;;  %vm268_vm4 = vcmask 130048   ;;  %v292_v46 = vld [vmem:[%s6825_s5 + $0x8] sm:$0xff]  ;;  %v5375_v56 = vld [vmem:[%s6845_s29 + $0x50] sm:$0xff]  }
  0x2d   :  { %v291_v45 = vld [vmem:[%s6825_s5] sm:$0xff]  ;;  %v5374_v55 = vld [vmem:[%s6845_s29 + $0x48] sm:$0xff]   ;;  %v5376_v57 = vld [vmem:[%s6845_s29 + $0x58] sm:$0xff]  }
  0x2e   :  { %5236 = vmatprep.subr.bf16.mxu1 %v5235_v17  ;;  %v5239_v47 = vpack.c.bf16 %v292_v46, %v291_v45  ;;  %v5373_v53 = vld [vmem:[%s6845_s29 + $0x40] sm:$0xff]   ;;  %v5378_v59 = vld [vmem:[%s6845_s29 + $0x68] sm:$0xff]   ;;  %v5379_v60 = vld [vmem:[%s6845_s29 + $0x70] sm:$0xff]  }
  0x2f   :  { %5238 = vmatpush3.bf16.msra.mxu1 %v5235_v17  ;;  %v5377_v58 = vld [vmem:[%s6845_s29 + $0x60] sm:$0xff]   ;;  %v5380_v61 = vld [vmem:[%s6845_s29 + $0x78] sm:$0xff]   ;;  %v5382_v63 = vld [vmem:[%s6826_s6 + $0x8] sm:$0xff]  }
  0x30   :  { %5240 = vmatprep.subr.bf16.mxu1 %v5239_v47  ;;  %v5381_v62 = vld [vmem:[%s6826_s6] sm:$0xff]   ;;  %v4145_v2 = vld [vmem:[%s6824_s4 + $0x28] sm:$0xff]  ;;  %v4146_v4 = vld [vmem:[%s6824_s4 + $0x30] sm:$0xff] }
  0x31   :  { %v5807_v25 = vld [vmem:[%s6847_s1] sm:$0xff]  ;;  %v5812_v26 = vld [vmem:[%s6847_s1 + $0x8] sm:$0xff]  ;;  %v4147_v5 = vld [vmem:[%s6824_s4 + $0x38] sm:$0xff] }
  0x32   :  { %vm65_vm2 = vcmp.gt.f32.partialorder %v5807_v25, 0.5  ;;  %vm66_vm3 = vcmp.gt.f32.partialorder %v5812_v26, 0.5  ;;  %v4144_v0 = vld [vmem:[%s6824_s4 + $0x20] sm:$0xff]  ;;  %v5247_v6 = vpack.c.bf16 %v4147_v5, %v4146_v4  ;;  %v4192_v4 = vld [vmem:[%s6824_s4 + $0x50] sm:$0xff]  ;;  %v4193_v5 = vld [vmem:[%s6824_s4 + $0x58] sm:$0xff] }
  0x33   :  { %v5819_v27 = vsel %vm65_vm2, -1e+09, %v5643_v1  ;;  %v5824_v29 = vsel %vm66_vm3, -1e+09, %v5643_v1  ;;  %v5243_v3 = vpack.c.bf16 %v4145_v2, %v4144_v0  ;;  %v4135_v10 = vld [vmem:[%s6823_s3 + $0x1] ss:$0 sm:$0xff] }
  0x34   :  { %v4190_v0 = vld [vmem:[%s6824_s4 + $0x40] sm:$0xff]  ;;  %v4191_v2 = vld [vmem:[%s6824_s4 + $0x48] sm:$0xff] }
  0x35   :  { %5244 = vmatprep.subr.bf16.mxu0 %v5243_v3 }
  0x36   :  { %5246 = vmatpush3.bf16.msra.mxu0 %v5243_v3  ;;  %v5255_v3 = vpack.c.bf16 %v4191_v2, %v4190_v0  ;;  %v4234_v0 = vld [vmem:[%s6824_s4 + $0x68] sm:$0xff] }
  0x37   :  { %5248 = vmatprep.subr.bf16.mxu0 %v5247_v6 }
  0x3a   :  { %5250 = vmatpush3.bf16.msra.mxu0 %v5247_v6  ;;  %v5259_v6 = vpack.c.bf16 %v4193_v5, %v4192_v4  ;;  %v4236_v4 = vld [vmem:[%s6824_s4 + $0x78] sm:$0xff] }
  0xfd   :  { %v175_v19 = vpop.f32.mrb[0].mxu0 }
  0xfe   :  { %v176_v20 = vadd.f32 %v4105_v18, %v175_v19  ;;  %v4826_v21 = vpop.f32.mrb[1].mxu0 }
  0xff   :  { %v178_v22 = vpop.f32.mrb[2].mxu0 }
 0x100   :  { %v179_v23 = vadd.f32 %v4105_v18, %v178_v22  ;;  %v4827_v24 = vpop.f32.mrb[3].mxu0  ;;  %4836 = vmatprep.mubr.msk.f32.mxu1 %vm186_vm1, %v176_v20 }
 0x102   :  { %4837 = vmatmul.mubr.msk.f32.vlgmr.msra.gmra.mrb[0].mxu1 %vm186_vm1, %v179_v23 }
 0x103   :  { %5242 = vmatpush3.bf16.msra.mxu1 %v5239_v47 }
 0x104   :  { %4846 = vmatprep.subr.bf16.mxu1 %v5643_v1 }
 0x1d5   :  { %v4838_v28 = vpop.f32.mrb[0].mxu1 }
 0x1d6   :  { %v259_v30 = vpop.f32.mrb[1].mxu1  ;;  %v265_v32 = vadd.f32 %v4838_v28, %v5824_v29 }
 0x1d7   :  { %v260_v31 = vadd.f32 %v259_v30, %v5819_v27 }
 0x1d8   :  { %v272_v34 = vsel %vm268_vm4, %v265_v32, -inf }
 0x1d9   :  { %v269_v33 = vsel %vm268_vm4, %v260_v31, -inf }
 0x1da   :  { %270 = vmax.xlane.f32.xlu0 %v269_v33 }
 0x1de   :  { %273 = vmax.xlane.f32.xlu0 %v272_v34 }
 0x267   :  { %v271_v35 = vpop.xlane.xlu0 %270 }
 0x268   :  { %v275_v36 = vsub.f32 %v260_v31, %v271_v35 }
 0x26a   :  { %v277_v37 = vmul.f32 1.442695, %v275_v36 }
 0x26b   :  { %v274_v38 = vpop.xlane.xlu0 %273 }
 0x26c   :  { %5533 = vpow2.f32 %v277_v37  ;;  %v276_v39 = vsub.f32 %v265_v32, %v274_v38 }
 0x26e   :  { %v279_v40 = vmul.f32 1.442695, %v276_v39 }
 0x270   :  { %5535 = vpow2.f32 %v279_v40 }
 0x276   :  { %v5534_v41 = vpop.eup %5533 }
 0x277   :  { %v281_v42 = vsel %vm268_vm4, %v5534_v41, 0.0 }
 0x278   :  { %282 = vadd.xlane.f32.xlu1 %v281_v42  ;;  %v4150_v42 = vld [vmem:[%s6825_s5 + $0x10] sm:$0xff] }
 0x27a   :  { %v5536_v43 = vpop.eup %5535 }
 0x27b   :  { %v284_v44 = vsel %vm268_vm4, %v5536_v43, 0.0 }
 0x27c   :  { %285 = vadd.xlane.f32.xlu1 %v284_v44 }
 0x305   :  { %v283_v48 = vpop.xlane.xlu1 %282 }
 0x306   :  { %5537 = vrcp.f32 %v283_v48 }
 0x309   :  { %v286_v49 = vpop.xlane.xlu1 %285 }
 0x30a   :  { %5539 = vrcp.f32 %v286_v49 }
 0x310   :  { %v5538_v50 = vpop.eup %5537 }
 0x311   :  { %v289_v51 = vmul.f32 %v5538_v50, %v5534_v41  ;;  %v5383_v50 = vld [vmem:[%s6826_s6 + $0x10] sm:$0xff]  }
 0x313   :  { %4843 = vmatprep.mubr.msk.f32.mxu1 %vm268_vm4, %v289_v51 }
 0x314   :  { %v5540_v52 = vpop.eup %5539 }
 0x315   :  { %v290_v54 = vmul.f32 %v5540_v52, %v5536_v43  ;;  %v4151_v43 = vld [vmem:[%s6825_s5 + $0x18] sm:$0xff] }
 0x316   :  { %v5251_v44 = vpack.c.bf16 %v4151_v43, %v4150_v42  ;;  %v5384_v52 = vld [vmem:[%s6826_s6 + $0x18] sm:$0xff]   ;;  %v4197_v42 = vld [vmem:[%s6825_s5 + $0x28] sm:$0xff] }
 0x317   :  { %4844 = vmatmul.mubr.msk.f32.vlgmr.msra.gmra.mrb[2].mxu1 %vm268_vm4, %v290_v54 }
 0x318   :  { %4847 = vmatpush3.bf16.msra.mxu1 %v5373_v53  ;;  %4862 = vmatprep.mubr.msk.bf16.mxu1 %vm5644_vm0, %v5643_v1 }
 0x319   :  { %4848 = vmatprep.subr.bf16.mxu1 %v5643_v1  ;;  %5252 = vmatprep.subr.bf16.mxu0 %v5251_v44 }
 0x31c   :  { %4849 = vmatpush3.bf16.msra.mxu1 %v5374_v55  ;;  %v5385_v55 = vld [vmem:[%s6845_s29 + $0x80] sm:$0xff]  }
 0x31d   :  { %4850 = vmatprep.subr.bf16.mxu1 %v5643_v1 }
 0x320   :  { %4851 = vmatpush3.bf16.msra.mxu1 %v5375_v56 }
 0x321   :  { %4852 = vmatprep.subr.bf16.mxu1 %v5643_v1 }
 0x324   :  { %4853 = vmatpush3.bf16.msra.mxu1 %v5376_v57  ;;  %v5386_v57 = vld [vmem:[%s6845_s29 + $0x88] sm:$0xff]  }
 0x325   :  { %4854 = vmatprep.subr.bf16.mxu1 %v5643_v1 }
 0x328   :  { %4855 = vmatpush3.bf16.msra.mxu1 %v5377_v58  ;;  %v5387_v58 = vld [vmem:[%s6845_s29 + $0x90] sm:$0xff]  }
 0x329   :  { %4856 = vmatprep.subr.bf16.mxu1 %v5643_v1 }
 0x32c   :  { %4857 = vmatpush3.bf16.msra.mxu1 %v5378_v59  ;;  %v5388_v59 = vld [vmem:[%s6845_s29 + $0x98] sm:$0xff]  }
 0x32d   :  { %4858 = vmatprep.subr.bf16.mxu1 %v5643_v1 }
 0x330   :  { %4859 = vmatpush3.bf16.msra.mxu1 %v5379_v60  ;;  %v5389_v60 = vld [vmem:[%s6845_s29 + $0xa0] sm:$0xff]  }
 0x331   :  { %4860 = vmatprep.subr.bf16.mxu1 %v5643_v1 }
 0x334   :  { %4861 = vmatpush3.bf16.msra.mxu1 %v5380_v61  ;;  %v5390_v61 = vld [vmem:[%s6845_s29 + $0xa8] sm:$0xff]  }
 0x335   :  { %4892 = vmatprep.subr.bf16.mxu1 %v5643_v1 }
 0x337   :  { %4863 = vmatmul.mubr.bf16.vlgmr.msra.gmra.mrb[4].mxu1 %v5790_v14 }
 0x338   :  { %4893 = vmatpush3.bf16.msra.mxu1 %v5381_v62  ;;  %4896 = vmatprep.mubr.msk.bf16.mxu1 %vm5644_vm0, %v5643_v1  ;;  %v5391_v62 = vld [vmem:[%s6845_s29 + $0xb0] sm:$0xff]  }
 0x339   :  { %4894 = vmatprep.subr.bf16.mxu1 %v5643_v1 }
 0x33c   :  { %4895 = vmatpush3.bf16.msra.mxu1 %v5382_v63  ;;  %v5392_v63 = vld [vmem:[%s6845_s29 + $0xb8] sm:$0xff]  }
 0x33d   :  { %5256 = vmatprep.subr.bf16.mxu1 %v5255_v3 }
 0x3ea   :  { %v4845_v7 = vpop.f32.mrb[2].mxu1 }
 0x3eb   :  { %v365_v8 = vpop.f32.mrb[3].mxu1 }
 0x3ec   :  { %v374_v9 = vpack.c.bf16 %v4845_v7, %v365_v8 }
 0x3ee   :  { %4897 = vmatmul.mubr.msk.bf16.vlgmr.msra.gmra.mrb[8].mxu1 %vm186_vm1, %v374_v9 }
 0x3ef   :  { %5258 = vmatpush3.bf16.msra.mxu1 %v5255_v3  ;;  %v4235_v3 = vld [vmem:[%s6824_s4 + $0x70] sm:$0xff] }
 0x3f0   :  { %5260 = vmatprep.subr.bf16.mxu1 %v5259_v6 }
 0x3f3   :  { %5262 = vmatpush3.bf16.msra.mxu1 %v5259_v6 }
 0x40a   :  { %v486_v11 = vpop.f32.mrb[4].mxu1 }
 0x40b   :  { %v487_v12 = vadd.f32 %v4135_v10, %v486_v11  ;;  %v4864_v13 = vpop.f32.mrb[5].mxu1 }
 0x40c   :  { %v489_v15 = vpop.f32.mrb[6].mxu1  ;;  %v4181_v13 = vld [vmem:[%s6823_s3 + $0x2] ss:$0 sm:$0xff] }
 0x40d   :  { %v490_v16 = vadd.f32 %v4135_v10, %v489_v15  ;;  %v4865_v17 = vpop.f32.mrb[7].mxu1  ;;  %4874 = vmatprep.mubr.msk.f32.mxu0 %vm186_vm1, %v487_v12 }
 0x40f   :  { %4875 = vmatmul.mubr.msk.f32.vlgmr.msra.gmra.mrb[4].mxu0 %vm186_vm1, %v490_v16 }
 0x410   :  { %5254 = vmatpush3.bf16.msra.mxu0 %v5251_v44 }
 0x411   :  { %4884 = vmatprep.subr.bf16.mxu0 %v5643_v1 }
 0x4c1   :  { %v5903_v18 = vpop.f32.mrb[8].mxu1 }
 0x4c2   :  { %v4898_v19 = vpop.f32.mrb[9].mxu1 }
 0x4c3   :  { %v5905_v20 = vpop.f32.mrb[10].mxu1 }
 0x4c4   :  { %v4899_v21 = vpop.f32.mrb[11].mxu1 }
 0x4e2   :  { %v4876_v22 = vpop.f32.mrb[4].mxu0 }
 0x4e3   :  { %v576_v23 = vadd.f32 %v4876_v22, %v5824_v29  ;;  %v570_v24 = vpop.f32.mrb[5].mxu0 }
 0x4e4   :  { %v571_v28 = vadd.f32 %v570_v24, %v5819_v27 }
 0x4e5   :  { %v582_v30 = vsel %vm268_vm4, %v576_v23, -inf }
 0x4e6   :  { %583 = vmax.xlane.f32.xlu1 %v582_v30  ;;  %v579_v31 = vsel %vm268_vm4, %v571_v28, -inf }
 0x4e7   :  { %580 = vmax.xlane.f32.xlu0 %v579_v31 }
 0x573   :  { %v584_v32 = vpop.xlane.xlu1 %583 }
 0x574   :  { %v586_v33 = vsub.f32 %v576_v23, %v584_v32  ;;  %v581_v34 = vpop.xlane.xlu0 %580 }
 0x575   :  { %v585_v35 = vsub.f32 %v571_v28, %v581_v34 }
 0x576   :  { %v589_v36 = vmul.f32 1.442695, %v586_v33 }
 0x577   :  { %v587_v37 = vmul.f32 1.442695, %v585_v35 }
 0x578   :  { %5541 = vpow2.f32 %v589_v36 }
 0x579   :  { %5543 = vpow2.f32 %v587_v37 }
 0x582   :  { %v5542_v38 = vpop.eup %5541 }
 0x583   :  { %v5544_v39 = vpop.eup %5543  ;;  %v594_v40 = vsel %vm268_vm4, %v5542_v38, 0.0 }
 0x584   :  { %595 = vadd.xlane.f32.xlu1 %v594_v40  ;;  %v591_v41 = vsel %vm268_vm4, %v5544_v39, 0.0 }
 0x585   :  { %592 = vadd.xlane.f32.xlu0 %v591_v41  ;;  %v4196_v41 = vld [vmem:[%s6825_s5 + $0x20] sm:$0xff] }
 0x586   :  { %v5263_v43 = vpack.c.bf16 %v4197_v42, %v4196_v41 }
 0x588   :  { %5264 = vmatprep.subr.bf16.mxu1 %v5263_v43 }
 0x611   :  { %v596_v45 = vpop.xlane.xlu1 %595 }
 0x612   :  { %5545 = vrcp.f32 %v596_v45  ;;  %v593_v46 = vpop.xlane.xlu0 %592 }
 0x613   :  { %5547 = vrcp.f32 %v593_v46 }
 0x61c   :  { %v5546_v47 = vpop.eup %5545 }
 0x61d   :  { %v5548_v48 = vpop.eup %5547  ;;  %v600_v51 = vmul.f32 %v5546_v47, %v5542_v38 }
 0x61e   :  { %v599_v49 = vmul.f32 %v5548_v48, %v5544_v39 }
 0x620   :  { %4881 = vmatprep.mubr.msk.f32.mxu0 %vm268_vm4, %v599_v49  ;;  %v5393_v49 = vld [vmem:[%s6826_s6 + $0x20] sm:$0xff]  }
 0x621   :  { %4882 = vmatmul.mubr.msk.f32.vlgmr.msra.gmra.mrb[6].mxu0 %vm268_vm4, %v600_v51  ;;  %v5394_v51 = vld [vmem:[%s6826_s6 + $0x28] sm:$0xff]  }
 0x622   :  { %4885 = vmatpush3.bf16.msra.mxu0 %v5383_v50  ;;  %4888 = vmatprep.mubr.msk.bf16.mxu0 %vm5644_vm0, %v5643_v1 }
 0x623   :  { %4886 = vmatprep.subr.bf16.mxu0 %v5643_v1 }
 0x626   :  { %4887 = vmatpush3.bf16.msra.mxu0 %v5384_v52 }
 0x627   :  { %4900 = vmatprep.subr.bf16.mxu0 %v5643_v1 }
 0x6f4   :  { %v4883_v53 = vpop.f32.mrb[6].mxu0 }
 0x6f5   :  { %v676_v54 = vpop.f32.mrb[7].mxu0 }
 0x6f6   :  { %v685_v56 = vpack.c.bf16 %v4883_v53, %v676_v54  ;;  %v5395_v54 = vld [vmem:[%s6845_s29 + $0xc0] sm:$0xff]  }
 0x6f8   :  { %4889 = vmatmul.mubr.msk.bf16.vlgmr.msra.gmra.mrb[8].mxu0 %vm186_vm1, %v685_v56  ;;  %v5396_v56 = vld [vmem:[%s6845_s29 + $0xc8] sm:$0xff]  }
 0x6f9   :  { %4901 = vmatpush3.bf16.msra.mxu0 %v5385_v55  ;;  %4916 = vmatprep.mubr.msk.bf16.mxu0 %vm5644_vm0, %v5643_v1 }
 0x6fa   :  { %4902 = vmatprep.subr.bf16.mxu0 %v5643_v1 }
 0x6fd   :  { %4903 = vmatpush3.bf16.msra.mxu0 %v5386_v57  ;;  %v5397_v57 = vld [vmem:[%s6845_s29 + $0xd0] sm:$0xff]  }
 0x6fe   :  { %4904 = vmatprep.subr.bf16.mxu0 %v5643_v1 }
 0x701   :  { %4905 = vmatpush3.bf16.msra.mxu0 %v5387_v58  ;;  %v5398_v58 = vld [vmem:[%s6845_s29 + $0xd8] sm:$0xff]  }
 0x702   :  { %4906 = vmatprep.subr.bf16.mxu0 %v5643_v1 }
 0x705   :  { %4907 = vmatpush3.bf16.msra.mxu0 %v5388_v59  ;;  %v5399_v59 = vld [vmem:[%s6845_s29 + $0xe0] sm:$0xff]  }
 0x706   :  { %4908 = vmatprep.subr.bf16.mxu0 %v5643_v1 }
 0x709   :  { %4909 = vmatpush3.bf16.msra.mxu0 %v5389_v60  ;;  %v5400_v60 = vld [vmem:[%s6845_s29 + $0xe8] sm:$0xff]  }
 0x70a   :  { %4910 = vmatprep.subr.bf16.mxu0 %v5643_v1 }
 0x70d   :  { %4911 = vmatpush3.bf16.msra.mxu0 %v5390_v61  ;;  %v5401_v61 = vld [vmem:[%s6845_s29 + $0xf0] sm:$0xff]  }
 0x70e   :  { %4912 = vmatprep.subr.bf16.mxu0 %v5643_v1 }
 0x711   :  { %4913 = vmatpush3.bf16.msra.mxu0 %v5391_v62  ;;  %v5402_v62 = vld [vmem:[%s6845_s29 + $0xf8] sm:$0xff]  }
 0x712   :  { %4914 = vmatprep.subr.bf16.mxu0 %v5643_v1 }
 0x715   :  { %4915 = vmatpush3.bf16.msra.mxu0 %v5392_v63  ;;  %v4233_v63 = vld [vmem:[%s6824_s4 + $0x60] sm:$0xff] }
 0x716   :  { %v5267_v2 = vpack.c.bf16 %v4234_v0, %v4233_v63 }
 0x718   :  { %4917 = vmatmul.mubr.bf16.vlgmr.msra.gmra.mrb[12].mxu0 %v5790_v14  ;;  %5268 = vmatprep.subr.bf16.mxu0 %v5267_v2 }
 0x719   :  { %5270 = vmatpush3.bf16.msra.mxu0 %v5267_v2 }
 0x7cb   :  { %v740_v7 = vpop.f32.mrb[8].mxu0 }
 0x7cc   :  { %v5980_v8 = vadd.f32 %v5903_v18, %v740_v7  ;;  %v4890_v9 = vpop.f32.mrb[9].mxu0 }
 0x7cd   :  { %v743_v10 = vpop.f32.mrb[10].mxu0 }
 0x7ce   :  { %v5983_v11 = vadd.f32 %v5905_v20, %v743_v10  ;;  %v4891_v12 = vpop.f32.mrb[11].mxu0 }
 0x7eb   :  { %v910_v15 = vpop.f32.mrb[12].mxu0 }
 0x7ec   :  { %v911_v16 = vadd.f32 %v4181_v13, %v910_v15  ;;  %v4918_v17 = vpop.f32.mrb[13].mxu0 }
 0x7ed   :  { %v913_v19 = vpop.f32.mrb[14].mxu0 }
 0x7ee   :  { %v914_v21 = vadd.f32 %v4181_v13, %v913_v19  ;;  %v4919_v22 = vpop.f32.mrb[15].mxu0  ;;  %4928 = vmatprep.mubr.msk.f32.mxu1 %vm186_vm1, %v911_v16  ;;  %v4224_v13 = vld [vmem:[%s6823_s3 + $0x3] ss:$0 sm:$0xff] }
 0x7f0   :  { %4929 = vmatmul.mubr.msk.f32.vlgmr.msra.gmra.mrb[12].mxu1 %vm186_vm1, %v914_v21 }
 0x7f1   :  { %5266 = vmatpush3.bf16.msra.mxu1 %v5263_v43 }
 0x7f2   :  { %4938 = vmatprep.subr.bf16.mxu1 %v5643_v1 }
 0x8c3   :  { %v4930_v18 = vpop.f32.mrb[12].mxu1 }
 0x8c4   :  { %v1000_v23 = vadd.f32 %v4930_v18, %v5824_v29  ;;  %v994_v20 = vpop.f32.mrb[13].mxu1 }
 0x8c5   :  { %v995_v24 = vadd.f32 %v994_v20, %v5819_v27 }
 0x8c6   :  { %v1006_v28 = vsel %vm268_vm4, %v1000_v23, -inf }
 0x8c7   :  { %1007 = vmax.xlane.f32.xlu1 %v1006_v28  ;;  %v1003_v30 = vsel %vm268_vm4, %v995_v24, -inf }
 0x8c8   :  { %1004 = vmax.xlane.f32.xlu0 %v1003_v30 }
 0x954   :  { %v1008_v31 = vpop.xlane.xlu1 %1007 }
 0x955   :  { %v1010_v32 = vsub.f32 %v1000_v23, %v1008_v31  ;;  %v1005_v33 = vpop.xlane.xlu0 %1004 }
 0x956   :  { %v1009_v34 = vsub.f32 %v995_v24, %v1005_v33 }
 0x957   :  { %v1013_v35 = vmul.f32 1.442695, %v1010_v32 }
 0x958   :  { %v1011_v36 = vmul.f32 1.442695, %v1009_v34 }
 0x959   :  { %5549 = vpow2.f32 %v1013_v35 }
 0x95a   :  { %5551 = vpow2.f32 %v1011_v36 }
 0x963   :  { %v5550_v37 = vpop.eup %5549 }
 0x964   :  { %v5552_v38 = vpop.eup %5551  ;;  %v1018_v39 = vsel %vm268_vm4, %v5550_v37, 0.0 }
 0x965   :  { %1019 = vadd.xlane.f32.xlu1 %v1018_v39  ;;  %v1015_v40 = vsel %vm268_vm4, %v5552_v38, 0.0  ;;  %v4239_v39 = vld [vmem:[%s6825_s5 + $0x30] sm:$0xff] }
 0x966   :  { %1016 = vadd.xlane.f32.xlu0 %v1015_v40  ;;  %v4240_v40 = vld [vmem:[%s6825_s5 + $0x38] sm:$0xff] }
 0x967   :  { %v5275_v41 = vpack.c.bf16 %v4240_v40, %v4239_v39  ;;  %v5436_v39 = vld [vmem:[%s6832_s12 + $0x18] sm:$0xff]   ;;  %v5437_v40 = vld [vmem:[%s6832_s12 + $0x60] sm:$0xff]  }
 0x9f2   :  { %v1020_v44 = vpop.xlane.xlu1 %1019 }
 0x9f3   :  { %5553 = vrcp.f32 %v1020_v44  ;;  %v1017_v45 = vpop.xlane.xlu0 %1016 }
 0x9f4   :  { %5555 = vrcp.f32 %v1017_v45 }
 0x9fd   :  { %v5554_v46 = vpop.eup %5553 }
 0x9fe   :  { %v5556_v47 = vpop.eup %5555  ;;  %v1024_v50 = vmul.f32 %v5554_v46, %v5550_v37 }
 0x9ff   :  { %v1023_v48 = vmul.f32 %v5556_v47, %v5552_v38  ;;  %v5403_v47 = vld [vmem:[%s6826_s6 + $0x30] sm:$0xff]  }
 0xa01   :  { %4935 = vmatprep.mubr.msk.f32.mxu1 %vm268_vm4, %v1023_v48 }
 0xa02   :  { %4936 = vmatmul.mubr.msk.f32.vlgmr.msra.gmra.mrb[14].mxu1 %vm268_vm4, %v1024_v50 }
 0xa03   :  { %4939 = vmatpush3.bf16.msra.mxu1 %v5393_v49  ;;  %4942 = vmatprep.mubr.msk.bf16.mxu1 %vm5644_vm0, %v5643_v1  ;;  %v5404_v49 = vld [vmem:[%s6826_s6 + $0x38] sm:$0xff]  }
 0xa04   :  { %4940 = vmatprep.subr.bf16.mxu1 %v5643_v1 }
 0xa07   :  { %4941 = vmatpush3.bf16.msra.mxu1 %v5394_v51 }
 0xa08   :  { %4946 = vmatprep.subr.bf16.mxu1 %v5643_v1 }
 0xad5   :  { %v4937_v52 = vpop.f32.mrb[14].mxu1 }
 0xad6   :  { %v1100_v53 = vpop.f32.mrb[15].mxu1 }
 0xad7   :  { %v1109_v55 = vpack.c.bf16 %v4937_v52, %v1100_v53 }
 0xad9   :  { %4943 = vmatmul.mubr.msk.bf16.vlgmr.msra.gmra.mrb[16].mxu1 %vm186_vm1, %v1109_v55 }
 0xada   :  { %4947 = vmatpush3.bf16.msra.mxu1 %v5395_v54  ;;  %4962 = vmatprep.mubr.msk.bf16.mxu1 %vm5644_vm0, %v5643_v1 }
 0xadb   :  { %4948 = vmatprep.subr.bf16.mxu1 %v5643_v1 }
 0xade   :  { %4949 = vmatpush3.bf16.msra.mxu1 %v5396_v56 }
 0xadf   :  { %4950 = vmatprep.subr.bf16.mxu1 %v5643_v1 }
 0xae2   :  { %4951 = vmatpush3.bf16.msra.mxu1 %v5397_v57  ;;  %v4250_v57 = vld [vmem:[%s6827_s7] ss:$0 sm:$0xff] }
 0xae3   :  { %4952 = vmatprep.subr.bf16.mxu1 %v5643_v1 }
 0xae6   :  { %4953 = vmatpush3.bf16.msra.mxu1 %v5398_v58  ;;  %v5617_v58 = vld [vmem:[%s6846_s22] sm:$0xff] }
 0xae7   :  { %4954 = vmatprep.subr.bf16.mxu1 %v5643_v1 }
 0xaea   :  { %4955 = vmatpush3.bf16.msra.mxu1 %v5399_v59 }
 0xaeb   :  { %4956 = vmatprep.subr.bf16.mxu1 %v5643_v1 }
 0xaee   :  { %4957 = vmatpush3.bf16.msra.mxu1 %v5400_v60 }
 0xaef   :  { %4958 = vmatprep.subr.bf16.mxu1 %v5643_v1 }
 0xaf2   :  { %4959 = vmatpush3.bf16.msra.mxu1 %v5401_v61 }
 0xaf3   :  { %4960 = vmatprep.subr.bf16.mxu1 %v5643_v1 }
 0xaf6   :  { %4961 = vmatpush3.bf16.msra.mxu1 %v5402_v62  ;;  %v5618_v62 = vld [vmem:[%s6846_s22 + $0x8] sm:$0xff] }
 0xaf9   :  { %4963 = vmatmul.mubr.bf16.vlgmr.msra.gmra.mrb[20].mxu1 %v5790_v14  ;;  %v5271_v14 = vpack.c.bf16 %v4236_v4, %v4235_v3  ;;  %v5405_v3 = vld [vmem:[%s6830_s10] ss:$8 sps:$4 sm:$0xff]   ;;  %v5407_v4 = vld [vmem:[%s6830_s10 + $0x4] ss:$8 sps:$4 sm:$0xff]  }
 0xafb   :  { %5272 = vmatprep.subr.bf16.mxu0 %v5271_v14 }
 0xafc   :  { %5274 = vmatpush3.bf16.msra.mxu0 %v5271_v14  ;;  %v5410_v14 = vld [vmem:[%s6830_s10 + $0x14] ss:$8 sps:$4 sm:$0xff]  }
 0xafd   :  { %5276 = vmatprep.subr.bf16.mxu0 %v5275_v41 }
 0xbac   :  { %v1164_v5 = vpop.f32.mrb[16].mxu1 }
 0xbad   :  { %v6063_v6 = vadd.f32 %v1164_v5, %v5980_v8  ;;  %v4944_v7 = vpop.f32.mrb[17].mxu1  ;;  %v5408_v5 = vld [vmem:[%s6830_s10 + $0x10] ss:$8 sps:$4 sm:$0xff]  }
 0xbae   :  { %v1167_v9 = vpop.f32.mrb[18].mxu1 }
 0xbaf   :  { %v6066_v10 = vadd.f32 %v1167_v9, %v5983_v11  ;;  %v4945_v12 = vpop.f32.mrb[19].mxu1 }
 0xbcc   :  { %v1280_v15 = vpop.f32.mrb[20].mxu1 }
 0xbcd   :  { %v1281_v16 = vadd.f32 %v4224_v13, %v1280_v15  ;;  %v4964_v17 = vpop.f32.mrb[21].mxu1 }
 0xbce   :  { %v1283_v19 = vpop.f32.mrb[22].mxu1  ;;  %v5413_v17 = vld [vmem:[%s6830_s10 + $0x24] ss:$8 sps:$4 sm:$0xff]  }
 0xbcf   :  { %v1284_v21 = vadd.f32 %v4224_v13, %v1283_v19  ;;  %v4965_v22 = vpop.f32.mrb[23].mxu1  ;;  %4974 = vmatprep.mubr.msk.f32.mxu0 %vm186_vm1, %v1281_v16  ;;  %v5411_v19 = vld [vmem:[%s6830_s10 + $0x20] ss:$8 sps:$4 sm:$0xff]  }
 0xbd0   :  { %v5414_v22 = vld [vmem:[%s6830_s10 + $0x30] ss:$8 sps:$4 sm:$0xff]  }
 0xbd1   :  { %4975 = vmatmul.mubr.msk.f32.vlgmr.msra.gmra.mrb[16].mxu0 %vm186_vm1, %v1284_v21  ;;  %v5416_v21 = vld [vmem:[%s6830_s10 + $0x34] ss:$8 sps:$4 sm:$0xff]  }
 0xbd2   :  { %5278 = vmatpush3.bf16.msra.mxu0 %v5275_v41  ;;  %v5438_v41 = vld [vmem:[%s6832_s12 + $0x20] sm:$0xff]  }
 0xbd3   :  { %4984 = vmatprep.subr.bf16.mxu0 %v5643_v1 }
 0xca4   :  { %v4976_v8 = vpop.f32.mrb[16].mxu0 }
 0xca5   :  { %v1370_v18 = vadd.f32 %v4976_v8, %v5824_v29  ;;  %v1364_v11 = vpop.f32.mrb[17].mxu0  ;;  %v5419_v8 = vld [vmem:[%s6830_s10 + $0x44] ss:$8 sps:$4 sm:$0xff]  }
 0xca6   :  { %v1365_v23 = vadd.f32 %v1364_v11, %v5819_v27  ;;  %v5422_v11 = vld [vmem:[%s6830_s10 + $0x54] ss:$8 sps:$4 sm:$0xff]  }
 0xca7   :  { %v1376_v20 = vsel %vm268_vm4, %v1370_v18, -inf }
 0xca8   :  { %1377 = vmax.xlane.f32.xlu1 %v1376_v20  ;;  %v1373_v24 = vsel %vm268_vm4, %v1365_v23, -inf  ;;  %v5425_v20 = vld [vmem:[%s6830_s10 + $0x64] ss:$8 sps:$4 sm:$0xff]  }
 0xca9   :  { %1374 = vmax.xlane.f32.xlu0 %v1373_v24  ;;  %v5423_v24 = vld [vmem:[%s6830_s10 + $0x60] ss:$8 sps:$4 sm:$0xff]  }
 0xd35   :  { %v1378_v28 = vpop.xlane.xlu1 %1377 }
 0xd36   :  { %v1380_v30 = vsub.f32 %v1370_v18, %v1378_v28  ;;  %v1375_v31 = vpop.xlane.xlu0 %1374  ;;  %v5417_v18 = vld [vmem:[%s6830_s10 + $0x40] ss:$8 sps:$4 sm:$0xff]   ;;  %v5428_v28 = vld [vmem:[%s6830_s10 + $0x74] ss:$8 sps:$4 sm:$0xff]  }
 0xd37   :  { %v1379_v32 = vsub.f32 %v1365_v23, %v1375_v31  ;;  %v5420_v23 = vld [vmem:[%s6830_s10 + $0x50] ss:$8 sps:$4 sm:$0xff]   ;;  %v5645_v31 = vmov 0  }
 0xd38   :  { %v1383_v33 = vmul.f32 1.442695, %v1380_v30  ;;  %v5426_v30 = vld [vmem:[%s6830_s10 + $0x70] ss:$8 sps:$4 sm:$0xff]  }
 0xd39   :  { %v1381_v34 = vmul.f32 1.442695, %v1379_v32  ;;  %v5429_v32 = vld [vmem:[%s6832_s12 + $0x40] sm:$0xff]  }
 0xd3a   :  { %5557 = vpow2.f32 %v1383_v33  ;;  %v5430_v33 = vld [vmem:[%s6832_s12] sm:$0xff]   ;;  %4649 = vmatprep.subr.bf16.mxu1 %v5429_v32 }
 0xd3b   :  { %5559 = vpow2.f32 %v1381_v34  ;;  %v5431_v34 = vld [vmem:[%s6832_s12 + $0x48] sm:$0xff]   ;;  %4650 = vmatpush3.bf16.msra.mxu1 %v5430_v33 }
 0xd3c   :  { %4651 = vmatprep.subr.bf16.mxu1 %v5431_v34 }
 0xd44   :  { %v5558_v35 = vpop.eup %5557 }
 0xd45   :  { %v5560_v36 = vpop.eup %5559  ;;  %v1388_v37 = vsel %vm268_vm4, %v5558_v35, 0.0 }
 0xd46   :  { %1389 = vadd.xlane.f32.xlu1 %v1388_v37  ;;  %v1385_v38 = vsel %vm268_vm4, %v5560_v36, 0.0  ;;  %v5434_v37 = vld [vmem:[%s6832_s12 + $0x10] sm:$0xff]  }
 0xd47   :  { %1386 = vadd.xlane.f32.xlu0 %v1385_v38  ;;  %v5435_v38 = vld [vmem:[%s6832_s12 + $0x58] sm:$0xff]  }
 0xdd3   :  { %v1390_v42 = vpop.xlane.xlu1 %1389 }
 0xdd4   :  { %5561 = vrcp.f32 %v1390_v42  ;;  %v1387_v43 = vpop.xlane.xlu0 %1386  ;;  %v5439_v42 = vld [vmem:[%s6832_s12 + $0x68] sm:$0xff]  }
 0xdd5   :  { %5563 = vrcp.f32 %v1387_v43 }
 0xdde   :  { %v5562_v44 = vpop.eup %5561 }
 0xddf   :  { %v5564_v45 = vpop.eup %5563  ;;  %v1394_v48 = vmul.f32 %v5562_v44, %v5558_v35  ;;  %v5432_v35 = vld [vmem:[%s6832_s12 + $0x8] sm:$0xff]  }
 0xde0   :  { %v1393_v46 = vmul.f32 %v5564_v45, %v5560_v36  ;;  %v5433_v36 = vld [vmem:[%s6832_s12 + $0x50] sm:$0xff]   ;;  %4652 = vmatpush3.bf16.msra.mxu1 %v5432_v35 }
 0xde1   :  { %4653 = vmatprep.subr.bf16.mxu1 %v5433_v36 }
 0xde2   :  { %4981 = vmatprep.mubr.msk.f32.mxu0 %vm268_vm4, %v1393_v46 }
 0xde3   :  { %4982 = vmatmul.mubr.msk.f32.vlgmr.msra.gmra.mrb[18].mxu0 %vm268_vm4, %v1394_v48 }
 0xde4   :  { %4985 = vmatpush3.bf16.msra.mxu0 %v5403_v47  ;;  %4988 = vmatprep.mubr.msk.bf16.mxu0 %vm5644_vm0, %v5643_v1 }
 0xde5   :  { %4986 = vmatprep.subr.bf16.mxu0 %v5643_v1  ;;  %4654 = vmatpush3.bf16.msra.mxu1 %v5434_v37 }
 0xde6   :  { %4655 = vmatprep.subr.bf16.mxu1 %v5435_v38 }
 0xde8   :  { %4987 = vmatpush3.bf16.msra.mxu0 %v5404_v49 }
 0xde9   :  { %1704 = vmatprep.subr.bf16.mxu0 %v5407_v4  ;;  %4656 = vmatpush3.bf16.msra.mxu1 %v5436_v39  ;;  %v5445_v39 = vld [vmem:[%s6845_s29 + $0x100] sm:$0xff]  }
 0xdea   :  { %4657 = vmatprep.subr.bf16.mxu1 %v5437_v40  ;;  %v5446_v40 = vld [vmem:[%s6845_s29 + $0x108] sm:$0xff]  }
 0xded   :  { %4658 = vmatpush3.bf16.msra.mxu1 %v5438_v41 }
 0xdee   :  { %4659 = vmatprep.subr.bf16.mxu1 %v5439_v42 }
 0xeb6   :  { %v4983_v50 = vpop.f32.mrb[18].mxu0 }
 0xeb7   :  { %v1470_v51 = vpop.f32.mrb[19].mxu0 }
 0xeb8   :  { %v1479_v52 = vpack.c.bf16 %v4983_v50, %v1470_v51  ;;  %v4251_v50 = vld [vmem:[%s6828_s8] ss:$0 sm:$0xff] }
 0xeba   :  { %4989 = vmatmul.mubr.msk.bf16.vlgmr.msra.gmra.mrb[20].mxu0 %vm186_vm1, %v1479_v52 }
 0xebb   :  { %1705 = vmatpush1.bf16.msra.mxu0 %v5405_v3  ;;  %1736 = vmatprep.mubr.bf16.mxu0 %v5645_v31 }
 0xebc   :  { %1706 = vmatprep.subr.bf16.mxu0 %v5410_v14  ;;  %v1612_v14 = vld [vmem:[%s6831_s11] sm:$0x3] }
 0xebf   :  { %1707 = vmatpush1.bf16.msra.mxu0 %v5408_v5 }
 0xec0   :  { %1708 = vmatprep.subr.bf16.mxu0 %v5413_v17 }
 0xec3   :  { %1709 = vmatpush1.bf16.msra.mxu0 %v5411_v19 }
 0xec4   :  { %1710 = vmatprep.subr.bf16.mxu0 %v5416_v21 }
 0xec7   :  { %1711 = vmatpush1.bf16.msra.mxu0 %v5414_v22 }
 0xec8   :  { %1712 = vmatprep.subr.bf16.mxu0 %v5419_v8 }
 0xecb   :  { %1713 = vmatpush1.bf16.msra.mxu0 %v5417_v18 }
 0xecc   :  { %1714 = vmatprep.subr.bf16.mxu0 %v5422_v11 }
 0xecf   :  { %1715 = vmatpush1.bf16.msra.mxu0 %v5420_v23 }
 0xed0   :  { %1716 = vmatprep.subr.bf16.mxu0 %v5425_v20 }
 0xed3   :  { %1717 = vmatpush1.bf16.msra.mxu0 %v5423_v24  ;;  %v4269_v24 = vld [vmem:[%s6833_s13] ss:$0 sm:$0xff] }
 0xed4   :  { %1718 = vmatprep.subr.bf16.mxu0 %v5428_v28 }
 0xed7   :  { %1719 = vmatpush1.bf16.msra.mxu0 %v5426_v30 }
 0xed8   :  { %4992 = vmatprep.subr.bf16.mxu0 %v5643_v1 }
 0xf8d   :  { %v1534_v53 = vpop.f32.mrb[20].mxu0 }
 0xf8e   :  { %v1541_v54 = vadd.f32 %v1534_v53, %v6063_v6  ;;  %v4990_v55 = vpop.f32.mrb[21].mxu0 }
 0xf8f   :  { %v1537_v56 = vpop.f32.mrb[22].mxu0  ;;  %v4252_v55 = vld [vmem:[%s6829_s9] ss:$0 sm:$0xff] }
 0xf90   :  { %v1543_v59 = vadd.f32 %v5617_v58, %v1541_v54  ;;  %v1542_v60 = vadd.f32 %v1537_v56, %v6066_v10  ;;  %v4991_v61 = vpop.f32.mrb[23].mxu0 }
 0xf91   :  { %v5441_v61 = vld [vmem:[%s6832_s12 + $0x70] sm:$0xff]  }
 0xf92   :  { %v1544_v63 = vadd.f32 %v5618_v62, %v1542_v60  ;;  %v1552_v0 = vadd.f32 %v4250_v57, %v1543_v59  ;;  %v5440_v60 = vld [vmem:[%s6832_s12 + $0x28] sm:$0xff]   ;;  %v5442_v62 = vld [vmem:[%s6832_s12 + $0x30] sm:$0xff]  }
 0xf93   :  { %4660 = vmatpush3.bf16.msra.mxu1 %v5440_v60 }
 0xf94   :  { %1556 = vadd.xlane.f32.xlu0 %v1552_v0  ;;  %v1553_v2 = vadd.f32 %v4250_v57, %v1544_v63  ;;  %4661 = vmatprep.subr.bf16.mxu1 %v5441_v61  ;;  %v5443_v63 = vld [vmem:[%s6832_s12 + $0x78] sm:$0xff]  }
 0xf96   :  { %1558 = vadd.xlane.f32.xlu1 %v1553_v2 }
 0xf97   :  { %4662 = vmatpush3.bf16.msra.mxu1 %v5442_v62 }
 0xf98   :  { %4663 = vmatprep.subr.bf16.mxu1 %v5443_v63 }
0x1021   :  { %v1557_v6 = vpop.xlane.xlu0 %1556 }
0x1022   :  { %v1561_v7 = vmul.f32 0.0078125, %v1557_v6 }
0x1023   :  { %v1559_v9 = vpop.xlane.xlu1 %1558 }
0x1024   :  { %v6121_v10 = vsub.f32 %v1552_v0, %v1561_v7  ;;  %v1562_v12 = vmul.f32 0.0078125, %v1559_v9  ;;  %v5444_v0 = vld [vmem:[%s6832_s12 + $0x38] sm:$0xff]  }
0x1025   :  { %4664 = vmatpush3.bf16.msra.mxu1 %v5444_v0 }
0x1026   :  { %v6123_v13 = vsub.f32 %v1553_v2, %v1562_v12  ;;  %v1565_v15 = vmul.f32 %v6121_v10, %v6121_v10  ;;  %v1614_v2 = vlaneseq }
0x1028   :  { %1567 = vadd.xlane.f32.xlu0 %v1565_v15  ;;  %v1566_v16 = vmul.f32 %v6123_v13, %v6123_v13  ;;  %v6225_v3 = vshrl.u32 %v1614_v2, 7  ;;  %v4286_v2 = vld [vmem:[%s6834_s14] ss:$0 sm:$0xff] }
0x102a   :  { %1569 = vadd.xlane.f32.xlu1 %v1566_v16  ;;  %v1616_v4 = vsub.s32 0, %v6225_v3  ;;  %v1620_v5 = vsub.s32 1, %v6225_v3  ;;  %v4532_v3 = vld [vmem:[%s6833_s13 + $0x1] ss:$0 sm:$0xff] }
0x102c   :  { %v1617_v6 = vrot.slane %v1612_v14, %v1616_v4  ;;  %v1621_v7 = vrot.slane %v1612_v14, %v1620_v5 }
0x10b5   :  { %v1568_v43 = vpop.xlane.xlu0 %1567 }
0x10b6   :  { %v1571_v44 = vmul.f32 0.0078125, %v1568_v43 }
0x10b7   :  { %v1570_v45 = vpop.xlane.xlu1 %1569 }
0x10b8   :  { %v1573_v46 = vadd.f32 1e-05, %v1571_v44  ;;  %v1572_v47 = vmul.f32 0.0078125, %v1570_v45 }
0x10ba   :  { %5565 = vrsqrt.f32 %v1573_v46  ;;  %v1574_v48 = vadd.f32 1e-05, %v1572_v47 }
0x10bc   :  { %5567 = vrsqrt.f32 %v1574_v48 }
0x10c4   :  { %v5566_v49 = vpop.eup %5565 }
0x10c5   :  { %v1577_v51 = vmul.f32 %v5566_v49, %v6121_v10  ;;  %v5447_v49 = vld [vmem:[%s6845_s29 + $0x110] sm:$0xff]  }
0x10c6   :  { %v5568_v52 = vpop.eup %5567 }
0x10c7   :  { %v1578_v53 = vmul.f32 %v5568_v52, %v6123_v13  ;;  %v1585_v54 = vmul.f32 %v4251_v50, %v1577_v51  ;;  %v5449_v51 = vld [vmem:[%s6845_s29 + $0x120] sm:$0xff]   ;;  %v5450_v52 = vld [vmem:[%s6845_s29 + $0x128] sm:$0xff]  }
0x10c9   :  { %v1586_v56 = vmul.f32 %v4251_v50, %v1578_v53  ;;  %v1593_v57 = vadd.f32 %v4252_v55, %v1585_v54  ;;  %v5448_v50 = vld [vmem:[%s6845_s29 + $0x118] sm:$0xff]   ;;  %v5451_v53 = vld [vmem:[%s6845_s29 + $0x130] sm:$0xff]  }
0x10ca   :  { %v5452_v54 = vld [vmem:[%s6845_s29 + $0x138] sm:$0xff]  }
0x10cb   :  { %v1594_v58 = vadd.f32 %v4252_v55, %v1586_v56  ;;  %v4314_v55 = vld [vmem:[%s6824_s4 + $0x80] sm:$0xff]  ;;  %v4315_v56 = vld [vmem:[%s6824_s4 + $0x88] sm:$0xff] }
0x10cd   :  { %v1595_v59 = vpack.c.bf16 %v1594_v58, %v1593_v57 }
0x10cf   :  { %1737 = vmatmul.mubr.bf16.vlgmr.msra.gmra.mrb[24].mxu0 %v1595_v59 }
0x10d0   :  { %5008 = vmatprep.mubr.msk.bf16.mxu0 %vm5644_vm0, %v5643_v1  ;;  %4993 = vmatpush3.bf16.msra.mxu0 %v5445_v39 }
0x10d1   :  { %4994 = vmatprep.subr.bf16.mxu0 %v5643_v1 }
0x10d4   :  { %4995 = vmatpush3.bf16.msra.mxu0 %v5446_v40 }
0x10d5   :  { %4996 = vmatprep.subr.bf16.mxu0 %v5643_v1 }
0x10d8   :  { %4997 = vmatpush3.bf16.msra.mxu0 %v5447_v49 }
0x10d9   :  { %4998 = vmatprep.subr.bf16.mxu0 %v5643_v1 }
0x10dc   :  { %4999 = vmatpush3.bf16.msra.mxu0 %v5448_v50 }
0x10dd   :  { %5000 = vmatprep.subr.bf16.mxu0 %v5643_v1 }
0x10e0   :  { %5001 = vmatpush3.bf16.msra.mxu0 %v5449_v51 }
0x10e1   :  { %5002 = vmatprep.subr.bf16.mxu0 %v5643_v1 }
0x10e4   :  { %5003 = vmatpush3.bf16.msra.mxu0 %v5450_v52 }
0x10e5   :  { %5004 = vmatprep.subr.bf16.mxu0 %v5643_v1 }
0x10e8   :  { %5005 = vmatpush3.bf16.msra.mxu0 %v5451_v53 }
0x10e9   :  { %5006 = vmatprep.subr.bf16.mxu0 %v5643_v1 }
0x10ec   :  { %5007 = vmatpush3.bf16.msra.mxu0 %v5452_v54  ;;  %v5453_v54 = vld [vmem:[%s6845_s29 + $0x140] sm:$0xff]  }
0x11a2   :  { %v1738_v9 = vpop.f32.mrb[24].mxu0 }
0x11a3   :  { %v1739_v10 = vadd.f32 %v1738_v9, %v1617_v6  ;;  %v1740_v12 = vpop.f32.mrb[25].mxu0 }
0x11a4   :  { %v1741_v13 = vadd.f32 %v1740_v12, %v1621_v7  ;;  %v1742_v15 = vpop.f32.mrb[26].mxu0 }
0x11a5   :  { %v1743_v16 = vadd.f32 %v1742_v15, %v1617_v6  ;;  %v1744_v17 = vpop.f32.mrb[27].mxu0  ;;  %v1747_v21 = vmax.f32 %v1739_v10, 0.0  ;;  %v4287_v10 = vld [vmem:[%s6835_s15] ss:$0 sm:$0xff] }
0x11a6   :  { %v1745_v19 = vadd.f32 %v1744_v17, %v1621_v7  ;;  %v1748_v8 = vmax.f32 %v1741_v13, 0.0  ;;  %v4316_v17 = vld [vmem:[%s6824_s4 + $0x90] sm:$0xff] }
0x11a7   :  { %v1749_v22 = vmax.f32 %v1743_v16, 0.0 }
0x11a8   :  { %v1750_v18 = vmax.f32 %v1745_v19, 0.0  ;;  %v4317_v19 = vld [vmem:[%s6824_s4 + $0x98] sm:$0xff] }
0x11a9   :  { %v1751_v11 = vpack.c.bf16 %v1749_v22, %v1747_v21  ;;  %v5283_v21 = vpack.c.bf16 %v4317_v19, %v4316_v17  ;;  %v4305_v22 = vld [vmem:[%s6823_s3 + $0x4] ss:$0 sm:$0xff] }
0x11aa   :  { %v1752_v23 = vpack.c.bf16 %v1750_v18, %v1748_v8 }
0x11ac   :  { %1920 = vmatprep.mubr.bf16.mxu1 %v1752_v23 }
0x11ad   :  { %1921 = vmatmul.mubr.bf16.vlgmr.msra.gmra.mrb[24].mxu1 %v1751_v11 }
0x1280   :  { %v4665_v20 = vpop.f32.mrb[24].mxu1 }
0x1281   :  { %v4666_v28 = vpop.f32.mrb[25].mxu1 }
0x1282   :  { %v4667_v30 = vadd.f32 %v4666_v28, %v4665_v20  ;;  %v4668_v32 = vpop.f32.mrb[26].mxu1 }
0x1283   :  { %v4669_v33 = vpop.f32.mrb[27].mxu1 }
0x1284   :  { %v1923_v34 = vadd.f32 %v4667_v30, %v4269_v24  ;;  %v4670_v35 = vadd.f32 %v4669_v33, %v4668_v32 }
0x1286   :  { %v1926_v36 = vadd.f32 %v4670_v35, %v4269_v24  ;;  %v1929_v37 = vadd.f32 %v1923_v34, %v1593_v57  ;;  %v5279_v57 = vpack.c.bf16 %v4315_v56, %v4314_v55  ;;  %v5454_v56 = vld [vmem:[%s6845_s29 + $0x148] sm:$0xff]  }
0x1288   :  { %1933 = vadd.xlane.f32.xlu0 %v1929_v37  ;;  %v1930_v38 = vadd.f32 %v1926_v36, %v1594_v58  ;;  %5280 = vmatprep.subr.bf16.mxu1 %v5279_v57 }
0x1289   :  { %5282 = vmatpush3.bf16.msra.mxu1 %v5279_v57  ;;  %v5455_v57 = vld [vmem:[%s6845_s29 + $0x150] sm:$0xff]  }
0x128a   :  { %1935 = vadd.xlane.f32.xlu1 %v1930_v38  ;;  %5284 = vmatprep.subr.bf16.mxu1 %v5283_v21 }
0x128d   :  { %5286 = vmatpush3.bf16.msra.mxu1 %v5283_v21  ;;  %v4345_v21 = vld [vmem:[%s6823_s3 + $0x5] ss:$0 sm:$0xff] }
0x1315   :  { %v1934_v41 = vpop.xlane.xlu0 %1933 }
0x1316   :  { %v1937_v42 = vmul.f32 0.0078125, %v1934_v41 }
0x1317   :  { %v1936_v43 = vpop.xlane.xlu1 %1935 }
0x1318   :  { %v1939_v44 = vsub.f32 %v1929_v37, %v1937_v42  ;;  %v1938_v45 = vmul.f32 0.0078125, %v1936_v43 }
0x131a   :  { %v1940_v46 = vsub.f32 %v1930_v38, %v1938_v45  ;;  %v1941_v47 = vmul.f32 %v1939_v44, %v1939_v44 }
0x131c   :  { %1943 = vadd.xlane.f32.xlu0 %v1941_v47  ;;  %v1942_v48 = vmul.f32 %v1940_v46, %v1940_v46  ;;  %v4321_v47 = vld [vmem:[%s6825_s5 + $0x48] sm:$0xff] }
0x131e   :  { %1945 = vadd.xlane.f32.xlu1 %v1942_v48 }
0x13a9   :  { %v1944_v58 = vpop.xlane.xlu0 %1943 }
0x13aa   :  { %v1947_v59 = vmul.f32 0.0078125, %v1944_v58  ;;  %v5456_v58 = vld [vmem:[%s6845_s29 + $0x158] sm:$0xff]  }
0x13ab   :  { %v1946_v60 = vpop.xlane.xlu1 %1945 }
0x13ac   :  { %v1949_v61 = vadd.f32 1e-05, %v1947_v59  ;;  %v1948_v62 = vmul.f32 0.0078125, %v1946_v60  ;;  %v5457_v59 = vld [vmem:[%s6845_s29 + $0x160] sm:$0xff]   ;;  %v5458_v60 = vld [vmem:[%s6845_s29 + $0x168] sm:$0xff]  }
0x13ae   :  { %5569 = vrsqrt.f32 %v1949_v61  ;;  %v1950_v63 = vadd.f32 1e-05, %v1948_v62  ;;  %v5459_v61 = vld [vmem:[%s6845_s29 + $0x170] sm:$0xff]   ;;  %v5460_v62 = vld [vmem:[%s6845_s29 + $0x178] sm:$0xff]  }
0x13b0   :  { %5571 = vrsqrt.f32 %v1950_v63  ;;  %v5461_v63 = vld [vmem:[%s6826_s6 + $0x40] sm:$0xff]  }
0x13b8   :  { %v5570_v0 = vpop.eup %5569 }
0x13b9   :  { %v1953_v14 = vmul.f32 %v5570_v0, %v1939_v44  ;;  %v5462_v0 = vld [vmem:[%s6826_s6 + $0x48] sm:$0xff]  }
0x13ba   :  { %v5572_v6 = vpop.eup %5571 }
0x13bb   :  { %v1954_v7 = vmul.f32 %v5572_v6, %v1940_v46  ;;  %v1961_v9 = vmul.f32 %v4286_v2, %v1953_v14  ;;  %v4320_v46 = vld [vmem:[%s6825_s5 + $0x40] sm:$0xff]  ;;  %v4355_v14 = vld [vmem:[%s6824_s4 + $0xa8] sm:$0xff] }
0x13bc   :  { %v5287_v48 = vpack.c.bf16 %v4321_v47, %v4320_v46 }
0x13bd   :  { %v1962_v12 = vmul.f32 %v4286_v2, %v1954_v7  ;;  %v6282_v13 = vadd.f32 %v4287_v10, %v1961_v9  ;;  %v4354_v2 = vld [vmem:[%s6824_s4 + $0xa0] sm:$0xff]  ;;  %v4356_v7 = vld [vmem:[%s6824_s4 + $0xb0] sm:$0xff]  ;;  %v4357_v9 = vld [vmem:[%s6824_s4 + $0xb8] sm:$0xff] }
0x13be   :  { %5288 = vmatprep.subr.bf16.mxu1 %v5287_v48  ;;  %v5291_v6 = vpack.c.bf16 %v4355_v14, %v4354_v2  ;;  %v5467_v2 = vld [vmem:[%s6845_s29 + $0x190] sm:$0xff]   ;;  %v5468_v14 = vld [vmem:[%s6845_s29 + $0x198] sm:$0xff]  }
0x13bf   :  { %v6284_v15 = vadd.f32 %v4287_v10, %v1962_v12  ;;  %v5295_v10 = vpack.c.bf16 %v4357_v9, %v4356_v7  ;;  %v5470_v7 = vld [vmem:[%s6845_s29 + $0x1a8] sm:$0xff]   ;;  %v5471_v9 = vld [vmem:[%s6845_s29 + $0x1b0] sm:$0xff]  }
0x13c0   :  { %5292 = vmatprep.subr.bf16.mxu0 %v5291_v6 }
0x13c1   :  { %v6288_v16 = vpack.c.bf16 %v6284_v15, %v6282_v13 }
0x13c3   :  { %5009 = vmatmul.mubr.bf16.vlgmr.msra.gmra.mrb[28].mxu0 %v6288_v16 }
0x13c4   :  { %5294 = vmatpush3.bf16.msra.mxu0 %v5291_v6  ;;  %v5469_v6 = vld [vmem:[%s6845_s29 + $0x1a0] sm:$0xff]  }
0x13c5   :  { %5296 = vmatprep.subr.bf16.mxu0 %v5295_v10 }
0x13c8   :  { %5298 = vmatpush3.bf16.msra.mxu0 %v5295_v10  ;;  %v5472_v10 = vld [vmem:[%s6845_s29 + $0x1b8] sm:$0xff]  }
0x1496   :  { %v2079_v8 = vpop.f32.mrb[28].mxu0 }
0x1497   :  { %v2080_v18 = vadd.f32 %v4305_v22, %v2079_v8  ;;  %v5010_v11 = vpop.f32.mrb[29].mxu0 }
0x1498   :  { %v2082_v23 = vpop.f32.mrb[30].mxu0 }
0x1499   :  { %v2083_v20 = vadd.f32 %v4305_v22, %v2082_v23  ;;  %v5011_v24 = vpop.f32.mrb[31].mxu0  ;;  %5020 = vmatprep.mubr.msk.f32.mxu1 %vm186_vm1, %v2080_v18 }
0x149b   :  { %5021 = vmatmul.mubr.msk.f32.vlgmr.msra.gmra.mrb[28].mxu1 %vm186_vm1, %v2083_v20 }
0x149c   :  { %5290 = vmatpush3.bf16.msra.mxu1 %v5287_v48 }
0x149d   :  { %5030 = vmatprep.subr.bf16.mxu1 %v5643_v1 }
0x156e   :  { %v5022_v28 = vpop.f32.mrb[28].mxu1 }
0x156f   :  { %v2169_v30 = vadd.f32 %v5022_v28, %v5824_v29  ;;  %v2163_v32 = vpop.f32.mrb[29].mxu1 }
0x1570   :  { %v2164_v33 = vadd.f32 %v2163_v32, %v5819_v27 }
0x1571   :  { %v2175_v34 = vsel %vm268_vm4, %v2169_v30, -inf }
0x1572   :  { %2176 = vmax.xlane.f32.xlu1 %v2175_v34  ;;  %v2172_v35 = vsel %vm268_vm4, %v2164_v33, -inf }
0x1573   :  { %2173 = vmax.xlane.f32.xlu0 %v2172_v35 }
0x15ff   :  { %v2177_v36 = vpop.xlane.xlu1 %2176 }
0x1600   :  { %v2179_v37 = vsub.f32 %v2169_v30, %v2177_v36  ;;  %v2174_v38 = vpop.xlane.xlu0 %2173 }
0x1601   :  { %v2178_v39 = vsub.f32 %v2164_v33, %v2174_v38 }
0x1602   :  { %v2182_v40 = vmul.f32 1.442695, %v2179_v37 }
0x1603   :  { %v2180_v41 = vmul.f32 1.442695, %v2178_v39 }
0x1604   :  { %5573 = vpow2.f32 %v2182_v40 }
0x1605   :  { %5575 = vpow2.f32 %v2180_v41 }
0x160e   :  { %v5574_v42 = vpop.eup %5573 }
0x160f   :  { %v5576_v43 = vpop.eup %5575  ;;  %v2187_v44 = vsel %vm268_vm4, %v5574_v42, 0.0 }
0x1610   :  { %2188 = vadd.xlane.f32.xlu1 %v2187_v44  ;;  %v2184_v45 = vsel %vm268_vm4, %v5576_v43, 0.0 }
0x1611   :  { %2185 = vadd.xlane.f32.xlu0 %v2184_v45 }
0x169d   :  { %v2189_v49 = vpop.xlane.xlu1 %2188 }
0x169e   :  { %5577 = vrcp.f32 %v2189_v49  ;;  %v2186_v50 = vpop.xlane.xlu0 %2185  ;;  %v4360_v49 = vld [vmem:[%s6825_s5 + $0x50] sm:$0xff] }
0x169f   :  { %5579 = vrcp.f32 %v2186_v50  ;;  %v4361_v50 = vld [vmem:[%s6825_s5 + $0x58] sm:$0xff] }
0x16a8   :  { %v5578_v51 = vpop.eup %5577 }
0x16a9   :  { %v5580_v52 = vpop.eup %5579  ;;  %v2193_v55 = vmul.f32 %v5578_v51, %v5574_v42  ;;  %v5299_v51 = vpack.c.bf16 %v4361_v50, %v4360_v49 }
0x16aa   :  { %v2192_v53 = vmul.f32 %v5580_v52, %v5576_v43 }
0x16ab   :  { %5300 = vmatprep.subr.bf16.mxu0 %v5299_v51 }
0x16ac   :  { %5027 = vmatprep.mubr.msk.f32.mxu1 %vm268_vm4, %v2192_v53 }
0x16ad   :  { %5028 = vmatmul.mubr.msk.f32.vlgmr.msra.gmra.mrb[30].mxu1 %vm268_vm4, %v2193_v55 }
0x16ae   :  { %5031 = vmatpush3.bf16.msra.mxu1 %v5453_v54  ;;  %5046 = vmatprep.mubr.msk.bf16.mxu1 %vm5644_vm0, %v5643_v1 }
0x16af   :  { %5032 = vmatprep.subr.bf16.mxu1 %v5643_v1 }
0x16b2   :  { %5033 = vmatpush3.bf16.msra.mxu1 %v5454_v56 }
0x16b3   :  { %5034 = vmatprep.subr.bf16.mxu1 %v5643_v1 }
0x16b6   :  { %5035 = vmatpush3.bf16.msra.mxu1 %v5455_v57  ;;  %v5463_v57 = vld [vmem:[%s6826_s6 + $0x50] sm:$0xff]  }
0x16b7   :  { %5036 = vmatprep.subr.bf16.mxu1 %v5643_v1 }
0x16ba   :  { %5037 = vmatpush3.bf16.msra.mxu1 %v5456_v58 }
0x16bb   :  { %5038 = vmatprep.subr.bf16.mxu1 %v5643_v1 }
0x16be   :  { %5039 = vmatpush3.bf16.msra.mxu1 %v5457_v59  ;;  %v5464_v59 = vld [vmem:[%s6826_s6 + $0x58] sm:$0xff]  }
0x16bf   :  { %5040 = vmatprep.subr.bf16.mxu1 %v5643_v1 }
0x16c2   :  { %5041 = vmatpush3.bf16.msra.mxu1 %v5458_v60 }
0x16c3   :  { %5042 = vmatprep.subr.bf16.mxu1 %v5643_v1 }
0x16c6   :  { %5043 = vmatpush3.bf16.msra.mxu1 %v5459_v61 }
0x16c7   :  { %5044 = vmatprep.subr.bf16.mxu1 %v5643_v1 }
0x16ca   :  { %5045 = vmatpush3.bf16.msra.mxu1 %v5460_v62  ;;  %v5465_v62 = vld [vmem:[%s6845_s29 + $0x180] sm:$0xff]  }
0x16cb   :  { %5076 = vmatprep.subr.bf16.mxu1 %v5643_v1 }
0x16cd   :  { %5047 = vmatmul.mubr.bf16.vlgmr.msra.gmra.mrb[32].mxu1 %v6288_v16 }
0x16ce   :  { %5077 = vmatpush3.bf16.msra.mxu1 %v5461_v63  ;;  %5080 = vmatprep.mubr.msk.bf16.mxu1 %vm5644_vm0, %v5643_v1 }
0x16cf   :  { %5078 = vmatprep.subr.bf16.mxu1 %v5643_v1 }
0x16d2   :  { %5079 = vmatpush3.bf16.msra.mxu1 %v5462_v0  ;;  %v5466_v0 = vld [vmem:[%s6845_s29 + $0x188] sm:$0xff]  }
0x1780   :  { %v5029_v12 = vpop.f32.mrb[30].mxu1 }
0x1781   :  { %v2269_v17 = vpop.f32.mrb[31].mxu1 }
0x1782   :  { %v2278_v19 = vpack.c.bf16 %v5029_v12, %v2269_v17  ;;  %v4400_v12 = vld [vmem:[%s6824_s4 + $0xc0] sm:$0xff]  ;;  %v4401_v17 = vld [vmem:[%s6824_s4 + $0xc8] sm:$0xff] }
0x1784   :  { %5081 = vmatmul.mubr.msk.bf16.vlgmr.msra.gmra.mrb[36].mxu1 %vm186_vm1, %v2278_v19  ;;  %v5303_v19 = vpack.c.bf16 %v4401_v17, %v4400_v12  ;;  %v5478_v12 = vld [vmem:[%s6845_s29 + $0x1d8] sm:$0xff]   ;;  %v5479_v17 = vld [vmem:[%s6845_s29 + $0x1e0] sm:$0xff]  }
0x1786   :  { %5304 = vmatprep.subr.bf16.mxu1 %v5303_v19 }
0x1787   :  { %5306 = vmatpush3.bf16.msra.mxu1 %v5303_v19  ;;  %v5480_v19 = vld [vmem:[%s6845_s29 + $0x1e8] sm:$0xff]  }
0x17a0   :  { %v2391_v22 = vpop.f32.mrb[32].mxu1 }
0x17a1   :  { %v2392_v8 = vadd.f32 %v4345_v21, %v2391_v22  ;;  %v5048_v18 = vpop.f32.mrb[33].mxu1  ;;  %v4403_v22 = vld [vmem:[%s6824_s4 + $0xd8] sm:$0xff] }
0x17a2   :  { %v2394_v11 = vpop.f32.mrb[34].mxu1 }
0x17a3   :  { %v2395_v23 = vadd.f32 %v4345_v21, %v2394_v11  ;;  %v5049_v20 = vpop.f32.mrb[35].mxu1  ;;  %5058 = vmatprep.mubr.msk.f32.mxu0 %vm186_vm1, %v2392_v8  ;;  %v4402_v21 = vld [vmem:[%s6824_s4 + $0xd0] sm:$0xff] }
0x17a4   :  { %v5307_v8 = vpack.c.bf16 %v4403_v22, %v4402_v21  ;;  %v5481_v21 = vld [vmem:[%s6845_s29 + $0x1f0] sm:$0xff]   ;;  %v5482_v22 = vld [vmem:[%s6845_s29 + $0x1f8] sm:$0xff]  }
0x17a5   :  { %5059 = vmatmul.mubr.msk.f32.vlgmr.msra.gmra.mrb[32].mxu0 %vm186_vm1, %v2395_v23 }
0x17a6   :  { %5302 = vmatpush3.bf16.msra.mxu0 %v5299_v51  ;;  %5308 = vmatprep.subr.bf16.mxu1 %v5307_v8 }
0x17a7   :  { %5068 = vmatprep.subr.bf16.mxu0 %v5643_v1  ;;  %5310 = vmatpush3.bf16.msra.mxu1 %v5307_v8  ;;  %v4443_v8 = vld [vmem:[%s6824_s4 + $0xe0] sm:$0xff] }
0x1857   :  { %v6379_v24 = vpop.f32.mrb[36].mxu1 }
0x1858   :  { %v5082_v28 = vpop.f32.mrb[37].mxu1 }
0x1859   :  { %v6381_v30 = vpop.f32.mrb[38].mxu1 }
0x185a   :  { %v5083_v32 = vpop.f32.mrb[39].mxu1 }
0x1878   :  { %v5060_v33 = vpop.f32.mrb[32].mxu0 }
0x1879   :  { %v2481_v34 = vadd.f32 %v5060_v33, %v5824_v29  ;;  %v2475_v35 = vpop.f32.mrb[33].mxu0  ;;  %v4391_v33 = vld [vmem:[%s6823_s3 + $0x6] ss:$0 sm:$0xff] }
0x187a   :  { %v2476_v36 = vadd.f32 %v2475_v35, %v5819_v27 }
0x187b   :  { %v2487_v37 = vsel %vm268_vm4, %v2481_v34, -inf }
0x187c   :  { %2488 = vmax.xlane.f32.xlu1 %v2487_v37  ;;  %v2484_v38 = vsel %vm268_vm4, %v2476_v36, -inf }
0x187d   :  { %2485 = vmax.xlane.f32.xlu0 %v2484_v38 }
0x1909   :  { %v2489_v39 = vpop.xlane.xlu1 %2488 }
0x190a   :  { %v2491_v40 = vsub.f32 %v2481_v34, %v2489_v39  ;;  %v2486_v41 = vpop.xlane.xlu0 %2485 }
0x190b   :  { %v2490_v42 = vsub.f32 %v2476_v36, %v2486_v41 }
0x190c   :  { %v2494_v43 = vmul.f32 1.442695, %v2491_v40 }
0x190d   :  { %v2492_v44 = vmul.f32 1.442695, %v2490_v42 }
0x190e   :  { %5581 = vpow2.f32 %v2494_v43 }
0x190f   :  { %5583 = vpow2.f32 %v2492_v44 }
0x1918   :  { %v5582_v45 = vpop.eup %5581 }
0x1919   :  { %v5584_v46 = vpop.eup %5583  ;;  %v2499_v47 = vsel %vm268_vm4, %v5582_v45, 0.0 }
0x191a   :  { %2500 = vadd.xlane.f32.xlu1 %v2499_v47  ;;  %v2496_v48 = vsel %vm268_vm4, %v5584_v46, 0.0 }
0x191b   :  { %2497 = vadd.xlane.f32.xlu0 %v2496_v48 }
0x19a7   :  { %v2501_v52 = vpop.xlane.xlu1 %2500 }
0x19a8   :  { %5585 = vrcp.f32 %v2501_v52  ;;  %v2498_v53 = vpop.xlane.xlu0 %2497 }
0x19a9   :  { %5587 = vrcp.f32 %v2498_v53 }
0x19b2   :  { %v5586_v54 = vpop.eup %5585 }
0x19b3   :  { %v5588_v55 = vpop.eup %5587  ;;  %v2505_v58 = vmul.f32 %v5586_v54, %v5582_v45  ;;  %v4406_v54 = vld [vmem:[%s6825_s5 + $0x60] sm:$0xff] }
0x19b4   :  { %v2504_v56 = vmul.f32 %v5588_v55, %v5584_v46  ;;  %v4407_v55 = vld [vmem:[%s6825_s5 + $0x68] sm:$0xff] }
0x19b6   :  { %5065 = vmatprep.mubr.msk.f32.mxu0 %vm268_vm4, %v2504_v56  ;;  %v5311_v56 = vpack.c.bf16 %v4407_v55, %v4406_v54 }
0x19b7   :  { %5066 = vmatmul.mubr.msk.f32.vlgmr.msra.gmra.mrb[34].mxu0 %vm268_vm4, %v2505_v58 }
0x19b8   :  { %5069 = vmatpush3.bf16.msra.mxu0 %v5463_v57  ;;  %5072 = vmatprep.mubr.msk.bf16.mxu0 %vm5644_vm0, %v5643_v1 }
0x19b9   :  { %5070 = vmatprep.subr.bf16.mxu0 %v5643_v1  ;;  %5312 = vmatprep.subr.bf16.mxu1 %v5311_v56 }
0x19bc   :  { %5071 = vmatpush3.bf16.msra.mxu0 %v5464_v59 }
0x19bd   :  { %5084 = vmatprep.subr.bf16.mxu0 %v5643_v1 }
0x1a8a   :  { %v5067_v60 = vpop.f32.mrb[34].mxu0 }
0x1a8b   :  { %v2581_v61 = vpop.f32.mrb[35].mxu0 }
0x1a8c   :  { %v2590_v63 = vpack.c.bf16 %v5067_v60, %v2581_v61 }
0x1a8e   :  { %5073 = vmatmul.mubr.msk.bf16.vlgmr.msra.gmra.mrb[36].mxu0 %vm186_vm1, %v2590_v63 }
0x1a8f   :  { %5085 = vmatpush3.bf16.msra.mxu0 %v5465_v62  ;;  %5100 = vmatprep.mubr.msk.bf16.mxu0 %vm5644_vm0, %v5643_v1  ;;  %v5473_v62 = vld [vmem:[%s6826_s6 + $0x60] sm:$0xff]  }
0x1a90   :  { %5086 = vmatprep.subr.bf16.mxu0 %v5643_v1 }
0x1a93   :  { %5087 = vmatpush3.bf16.msra.mxu0 %v5466_v0  ;;  %v5474_v0 = vld [vmem:[%s6826_s6 + $0x68] sm:$0xff]  }
0x1a94   :  { %5088 = vmatprep.subr.bf16.mxu0 %v5643_v1 }
0x1a97   :  { %5089 = vmatpush3.bf16.msra.mxu0 %v5467_v2 }
0x1a98   :  { %5090 = vmatprep.subr.bf16.mxu0 %v5643_v1 }
0x1a9b   :  { %5091 = vmatpush3.bf16.msra.mxu0 %v5468_v14 }
0x1a9c   :  { %5092 = vmatprep.subr.bf16.mxu0 %v5643_v1 }
0x1a9f   :  { %5093 = vmatpush3.bf16.msra.mxu0 %v5469_v6  ;;  %v5475_v6 = vld [vmem:[%s6845_s29 + $0x1c0] sm:$0xff]  }
0x1aa0   :  { %5094 = vmatprep.subr.bf16.mxu0 %v5643_v1 }
0x1aa3   :  { %5095 = vmatpush3.bf16.msra.mxu0 %v5470_v7 }
0x1aa4   :  { %5096 = vmatprep.subr.bf16.mxu0 %v5643_v1 }
0x1aa7   :  { %5097 = vmatpush3.bf16.msra.mxu0 %v5471_v9  ;;  %v5476_v9 = vld [vmem:[%s6845_s29 + $0x1c8] sm:$0xff]  }
0x1aa8   :  { %5098 = vmatprep.subr.bf16.mxu0 %v5643_v1 }
0x1aab   :  { %5099 = vmatpush3.bf16.msra.mxu0 %v5472_v10  ;;  %v5477_v10 = vld [vmem:[%s6845_s29 + $0x1d0] sm:$0xff]  }
0x1aae   :  { %5101 = vmatmul.mubr.bf16.vlgmr.msra.gmra.mrb[40].mxu0 %v6288_v16 }
0x1b61   :  { %v2645_v18 = vpop.f32.mrb[36].mxu0 }
0x1b62   :  { %v6456_v11 = vadd.f32 %v6379_v24, %v2645_v18  ;;  %v5074_v23 = vpop.f32.mrb[37].mxu0  ;;  %v4444_v18 = vld [vmem:[%s6824_s4 + $0xe8] sm:$0xff] }
0x1b63   :  { %v2648_v20 = vpop.f32.mrb[38].mxu0  ;;  %v5315_v23 = vpack.c.bf16 %v4444_v18, %v4443_v8 }
0x1b64   :  { %v6459_v28 = vadd.f32 %v6381_v30, %v2648_v20  ;;  %v5075_v32 = vpop.f32.mrb[39].mxu0  ;;  %v4445_v20 = vld [vmem:[%s6824_s4 + $0xf0] sm:$0xff] }
0x1b65   :  { %5316 = vmatprep.subr.bf16.mxu0 %v5315_v23  ;;  %v4446_v32 = vld [vmem:[%s6824_s4 + $0xf8] sm:$0xff] }
0x1b66   :  { %5318 = vmatpush3.bf16.msra.mxu0 %v5315_v23 }
0x1b81   :  { %v2815_v34 = vpop.f32.mrb[40].mxu0 }
0x1b82   :  { %v2816_v35 = vadd.f32 %v4391_v33, %v2815_v34  ;;  %v5102_v36 = vpop.f32.mrb[41].mxu0 }
0x1b83   :  { %v2818_v37 = vpop.f32.mrb[42].mxu0 }
0x1b84   :  { %v2819_v38 = vadd.f32 %v4391_v33, %v2818_v37  ;;  %v5103_v39 = vpop.f32.mrb[43].mxu0  ;;  %5112 = vmatprep.mubr.msk.f32.mxu1 %vm186_vm1, %v2816_v35 }
0x1b85   :  { %v4434_v39 = vld [vmem:[%s6823_s3 + $0x7] ss:$0 sm:$0xff] }
0x1b86   :  { %5113 = vmatmul.mubr.msk.f32.vlgmr.msra.gmra.mrb[40].mxu1 %vm186_vm1, %v2819_v38 }
0x1b87   :  { %5314 = vmatpush3.bf16.msra.mxu1 %v5311_v56  ;;  %v4449_v56 = vld [vmem:[%s6825_s5 + $0x70] sm:$0xff] }
0x1b88   :  { %5122 = vmatprep.subr.bf16.mxu1 %v5643_v1 }
0x1c59   :  { %v5114_v24 = vpop.f32.mrb[40].mxu1 }
0x1c5a   :  { %v2905_v40 = vadd.f32 %v5114_v24, %v5824_v29  ;;  %v2899_v30 = vpop.f32.mrb[41].mxu1 }
0x1c5b   :  { %v2900_v41 = vadd.f32 %v2899_v30, %v5819_v27 }
0x1c5c   :  { %v2911_v42 = vsel %vm268_vm4, %v2905_v40, -inf }
0x1c5d   :  { %2912 = vmax.xlane.f32.xlu1 %v2911_v42  ;;  %v2908_v43 = vsel %vm268_vm4, %v2900_v41, -inf }
0x1c5e   :  { %2909 = vmax.xlane.f32.xlu0 %v2908_v43 }
0x1cea   :  { %v2913_v44 = vpop.xlane.xlu1 %2912 }
0x1ceb   :  { %v2915_v45 = vsub.f32 %v2905_v40, %v2913_v44  ;;  %v2910_v46 = vpop.xlane.xlu0 %2909 }
0x1cec   :  { %v2914_v47 = vsub.f32 %v2900_v41, %v2910_v46 }
0x1ced   :  { %v2918_v48 = vmul.f32 1.442695, %v2915_v45 }
0x1cee   :  { %v2916_v49 = vmul.f32 1.442695, %v2914_v47 }
0x1cef   :  { %5589 = vpow2.f32 %v2918_v48 }
0x1cf0   :  { %5591 = vpow2.f32 %v2916_v49 }
0x1cf9   :  { %v5590_v50 = vpop.eup %5589 }
0x1cfa   :  { %v5592_v51 = vpop.eup %5591  ;;  %v2923_v52 = vsel %vm268_vm4, %v5590_v50, 0.0 }
0x1cfb   :  { %2924 = vadd.xlane.f32.xlu1 %v2923_v52  ;;  %v2920_v53 = vsel %vm268_vm4, %v5592_v51, 0.0 }
0x1cfc   :  { %2921 = vadd.xlane.f32.xlu0 %v2920_v53 }
0x1d88   :  { %v2925_v57 = vpop.xlane.xlu1 %2924 }
0x1d89   :  { %5593 = vrcp.f32 %v2925_v57  ;;  %v2922_v58 = vpop.xlane.xlu0 %2921  ;;  %v4450_v57 = vld [vmem:[%s6825_s5 + $0x78] sm:$0xff] }
0x1d8a   :  { %5595 = vrcp.f32 %v2922_v58  ;;  %v5323_v58 = vpack.c.bf16 %v4450_v57, %v4449_v56  ;;  %v5518_v56 = vld [vmem:[%s6832_s12 + $0xa0] sm:$0xff]   ;;  %v5519_v57 = vld [vmem:[%s6832_s12 + $0xe8] sm:$0xff]  }
0x1d93   :  { %v5594_v59 = vpop.eup %5593 }
0x1d94   :  { %v5596_v60 = vpop.eup %5595  ;;  %v2929_v63 = vmul.f32 %v5594_v59, %v5590_v50 }
0x1d95   :  { %v2928_v61 = vmul.f32 %v5596_v60, %v5592_v51 }
0x1d97   :  { %5119 = vmatprep.mubr.msk.f32.mxu1 %vm268_vm4, %v2928_v61 }
0x1d98   :  { %5120 = vmatmul.mubr.msk.f32.vlgmr.msra.gmra.mrb[42].mxu1 %vm268_vm4, %v2929_v63 }
0x1d99   :  { %5123 = vmatpush3.bf16.msra.mxu1 %v5473_v62  ;;  %5126 = vmatprep.mubr.msk.bf16.mxu1 %vm5644_vm0, %v5643_v1 }
0x1d9a   :  { %5124 = vmatprep.subr.bf16.mxu1 %v5643_v1 }
0x1d9d   :  { %5125 = vmatpush3.bf16.msra.mxu1 %v5474_v0  ;;  %v5483_v0 = vld [vmem:[%s6826_s6 + $0x70] sm:$0xff]  }
0x1d9e   :  { %5130 = vmatprep.subr.bf16.mxu1 %v5643_v1 }
0x1e6b   :  { %v5121_v2 = vpop.f32.mrb[42].mxu1 }
0x1e6c   :  { %v3005_v14 = vpop.f32.mrb[43].mxu1 }
0x1e6d   :  { %v3014_v7 = vpack.c.bf16 %v5121_v2, %v3005_v14  ;;  %v5484_v14 = vld [vmem:[%s6826_s6 + $0x78] sm:$0xff]  }
0x1e6f   :  { %5127 = vmatmul.mubr.msk.bf16.vlgmr.msra.gmra.mrb[44].mxu1 %vm186_vm1, %v3014_v7 }
0x1e70   :  { %5131 = vmatpush3.bf16.msra.mxu1 %v5475_v6  ;;  %5146 = vmatprep.mubr.msk.bf16.mxu1 %vm5644_vm0, %v5643_v1 }
0x1e71   :  { %5132 = vmatprep.subr.bf16.mxu1 %v5643_v1 }
0x1e74   :  { %5133 = vmatpush3.bf16.msra.mxu1 %v5476_v9 }
0x1e75   :  { %5134 = vmatprep.subr.bf16.mxu1 %v5643_v1 }
0x1e78   :  { %5135 = vmatpush3.bf16.msra.mxu1 %v5477_v10 }
0x1e79   :  { %5136 = vmatprep.subr.bf16.mxu1 %v5643_v1 }
0x1e7c   :  { %5137 = vmatpush3.bf16.msra.mxu1 %v5478_v12 }
0x1e7d   :  { %5138 = vmatprep.subr.bf16.mxu1 %v5643_v1 }
0x1e80   :  { %5139 = vmatpush3.bf16.msra.mxu1 %v5479_v17 }
0x1e81   :  { %5140 = vmatprep.subr.bf16.mxu1 %v5643_v1 }
0x1e84   :  { %5141 = vmatpush3.bf16.msra.mxu1 %v5480_v19 }
0x1e85   :  { %5142 = vmatprep.subr.bf16.mxu1 %v5643_v1 }
0x1e88   :  { %5143 = vmatpush3.bf16.msra.mxu1 %v5481_v21  ;;  %v4461_v21 = vld [vmem:[%s6827_s7 + $0x1] ss:$0 sm:$0xff] }
0x1e89   :  { %5144 = vmatprep.subr.bf16.mxu1 %v5643_v1 }
0x1e8c   :  { %5145 = vmatpush3.bf16.msra.mxu1 %v5482_v22 }
0x1e8f   :  { %5147 = vmatmul.mubr.bf16.vlgmr.msra.gmra.mrb[48].mxu1 %v6288_v16  ;;  %v5319_v16 = vpack.c.bf16 %v4446_v32, %v4445_v20 }
0x1e91   :  { %5320 = vmatprep.subr.bf16.mxu0 %v5319_v16 }
0x1e92   :  { %5322 = vmatpush3.bf16.msra.mxu0 %v5319_v16  ;;  %v5487_v16 = vld [vmem:[%s6830_s10 + $0x84] ss:$8 sps:$4 sm:$0xff]  }
0x1e93   :  { %5324 = vmatprep.subr.bf16.mxu0 %v5323_v58 }
0x1f42   :  { %v3069_v33 = vpop.f32.mrb[44].mxu1 }
0x1f43   :  { %v6539_v34 = vadd.f32 %v3069_v33, %v6456_v11  ;;  %v5128_v35 = vpop.f32.mrb[45].mxu1 }
0x1f44   :  { %v3072_v36 = vpop.f32.mrb[46].mxu1 }
0x1f45   :  { %v6542_v37 = vadd.f32 %v3072_v36, %v6459_v28  ;;  %v5129_v38 = vpop.f32.mrb[47].mxu1 }
0x1f62   :  { %v3185_v24 = vpop.f32.mrb[48].mxu1 }
0x1f63   :  { %v3186_v40 = vadd.f32 %v4434_v39, %v3185_v24  ;;  %v5148_v30 = vpop.f32.mrb[49].mxu1 }
0x1f64   :  { %v3188_v41 = vpop.f32.mrb[50].mxu1  ;;  %v5491_v30 = vld [vmem:[%s6830_s10 + $0xa0] ss:$8 sps:$4 sm:$0xff]  }
0x1f65   :  { %v3189_v42 = vadd.f32 %v4434_v39, %v3188_v41  ;;  %v5149_v43 = vpop.f32.mrb[51].mxu1  ;;  %5158 = vmatprep.mubr.msk.f32.mxu0 %vm186_vm1, %v3186_v40  ;;  %v5493_v40 = vld [vmem:[%s6830_s10 + $0xa4] ss:$8 sps:$4 sm:$0xff]   ;;  %v5496_v41 = vld [vmem:[%s6830_s10 + $0xb4] ss:$8 sps:$4 sm:$0xff]  }
0x1f66   :  { %v5499_v43 = vld [vmem:[%s6830_s10 + $0xc4] ss:$8 sps:$4 sm:$0xff]  }
0x1f67   :  { %5159 = vmatmul.mubr.msk.f32.vlgmr.msra.gmra.mrb[44].mxu0 %vm186_vm1, %v3189_v42  ;;  %v5494_v42 = vld [vmem:[%s6830_s10 + $0xb0] ss:$8 sps:$4 sm:$0xff]  }
0x1f68   :  { %5326 = vmatpush3.bf16.msra.mxu0 %v5323_v58 }
0x1f69   :  { %5168 = vmatprep.subr.bf16.mxu0 %v5643_v1 }
0x203a   :  { %v5160_v11 = vpop.f32.mrb[44].mxu0 }
0x203b   :  { %v3275_v44 = vadd.f32 %v5160_v11, %v5824_v29  ;;  %v3269_v28 = vpop.f32.mrb[45].mxu0  ;;  %v5497_v11 = vld [vmem:[%s6830_s10 + $0xc0] ss:$8 sps:$4 sm:$0xff]  }
0x203c   :  { %v3270_v45 = vadd.f32 %v3269_v28, %v5819_v27  ;;  %v5500_v28 = vld [vmem:[%s6830_s10 + $0xd0] ss:$8 sps:$4 sm:$0xff]  }
0x203d   :  { %v3281_v46 = vsel %vm268_vm4, %v3275_v44, -inf }
0x203e   :  { %3282 = vmax.xlane.f32.xlu1 %v3281_v46  ;;  %v3278_v47 = vsel %vm268_vm4, %v3270_v45, -inf  ;;  %v5503_v46 = vld [vmem:[%s6830_s10 + $0xe0] ss:$8 sps:$4 sm:$0xff]  }
0x203f   :  { %3279 = vmax.xlane.f32.xlu0 %v3278_v47  ;;  %v5508_v47 = vld [vmem:[%s6830_s10 + $0xf4] ss:$8 sps:$4 sm:$0xff]  }
0x20cb   :  { %v3283_v48 = vpop.xlane.xlu1 %3282 }
0x20cc   :  { %v3285_v49 = vsub.f32 %v3275_v44, %v3283_v48  ;;  %v3280_v50 = vpop.xlane.xlu0 %3279  ;;  %v5502_v44 = vld [vmem:[%s6830_s10 + $0xd4] ss:$8 sps:$4 sm:$0xff]   ;;  %v5506_v48 = vld [vmem:[%s6830_s10 + $0xf0] ss:$8 sps:$4 sm:$0xff]  }
0x20cd   :  { %v3284_v51 = vsub.f32 %v3270_v45, %v3280_v50  ;;  %v5505_v45 = vld [vmem:[%s6830_s10 + $0xe4] ss:$8 sps:$4 sm:$0xff]  }
0x20ce   :  { %v3288_v52 = vmul.f32 1.442695, %v3285_v49  ;;  %v5509_v49 = vld [vmem:[%s6832_s12 + $0xc0] sm:$0xff]  }
0x20cf   :  { %v3286_v53 = vmul.f32 1.442695, %v3284_v51  ;;  %v5510_v50 = vld [vmem:[%s6832_s12 + $0x80] sm:$0xff]   ;;  %v5511_v51 = vld [vmem:[%s6832_s12 + $0xc8] sm:$0xff]   ;;  %4759 = vmatprep.subr.bf16.mxu1 %v5509_v49 }
0x20d0   :  { %5597 = vpow2.f32 %v3288_v52  ;;  %4760 = vmatpush3.bf16.msra.mxu1 %v5510_v50  ;;  %v5512_v52 = vld [vmem:[%s6832_s12 + $0x88] sm:$0xff]   ;;  %v5525_v49 = vld [vmem:[%s6836_s16] sm:$0xff]  }
0x20d1   :  { %5599 = vpow2.f32 %v3286_v53  ;;  %4761 = vmatprep.subr.bf16.mxu1 %v5511_v51  ;;  %v5513_v53 = vld [vmem:[%s6832_s12 + $0xd0] sm:$0xff]   ;;  %v5526_v50 = vld [vmem:[%s6836_s16 + $0x8] sm:$0xff]  }
0x20d4   :  { %4762 = vmatpush3.bf16.msra.mxu1 %v5512_v52 }
0x20d5   :  { %4763 = vmatprep.subr.bf16.mxu1 %v5513_v53 }
0x20da   :  { %v5598_v54 = vpop.eup %5597 }
0x20db   :  { %v5600_v55 = vpop.eup %5599  ;;  %v3293_v29 = vsel %vm268_vm4, %v5598_v54, 0.0 }
0x20dc   :  { %3294 = vadd.xlane.f32.xlu1 %v3293_v29  ;;  %v3290_v27 = vsel %vm268_vm4, %v5600_v55, 0.0  ;;  %v5516_v29 = vld [vmem:[%s6832_s12 + $0x98] sm:$0xff]  }
0x20dd   :  { %3291 = vadd.xlane.f32.xlu0 %v3290_v27  ;;  %v5517_v27 = vld [vmem:[%s6832_s12 + $0xe0] sm:$0xff]  }
0x2169   :  { %v3295_v59 = vpop.xlane.xlu1 %3294 }
0x216a   :  { %5601 = vrcp.f32 %v3295_v59  ;;  %v3292_v60 = vpop.xlane.xlu0 %3291 }
0x216b   :  { %5603 = vrcp.f32 %v3292_v60 }
0x2174   :  { %v5602_v61 = vpop.eup %5601 }
0x2175   :  { %v5604_v62 = vpop.eup %5603  ;;  %v3299_v2 = vmul.f32 %v5602_v61, %v5598_v54  ;;  %v5514_v54 = vld [vmem:[%s6832_s12 + $0x90] sm:$0xff]  }
0x2176   :  { %v3298_v63 = vmul.f32 %v5604_v62, %v5600_v55  ;;  %v5515_v55 = vld [vmem:[%s6832_s12 + $0xd8] sm:$0xff]   ;;  %4764 = vmatpush3.bf16.msra.mxu1 %v5514_v54 }
0x2177   :  { %4765 = vmatprep.subr.bf16.mxu1 %v5515_v55 }
0x2178   :  { %5165 = vmatprep.mubr.msk.f32.mxu0 %vm268_vm4, %v3298_v63 }
0x2179   :  { %5166 = vmatmul.mubr.msk.f32.vlgmr.msra.gmra.mrb[46].mxu0 %vm268_vm4, %v3299_v2  ;;  %v4464_v2 = vld [vmem:[%s6828_s8 + $0x1] ss:$0 sm:$0xff] }
0x217a   :  { %5169 = vmatpush3.bf16.msra.mxu0 %v5483_v0  ;;  %5172 = vmatprep.mubr.msk.bf16.mxu0 %vm5644_vm0, %v5643_v1 }
0x217b   :  { %5170 = vmatprep.subr.bf16.mxu0 %v5643_v1  ;;  %4766 = vmatpush3.bf16.msra.mxu1 %v5516_v29 }
0x217c   :  { %4767 = vmatprep.subr.bf16.mxu1 %v5517_v27 }
0x217e   :  { %5171 = vmatpush3.bf16.msra.mxu0 %v5484_v14 }
0x217f   :  { %3613 = vmatprep.subr.bf16.mxu0 %v5487_v16  ;;  %4768 = vmatpush3.bf16.msra.mxu1 %v5518_v56 }
0x2180   :  { %4769 = vmatprep.subr.bf16.mxu1 %v5519_v57  ;;  %v5527_v57 = vld [vmem:[%s6836_s16 + $0x10] sm:$0xff]  }
0x224c   :  { %v5167_v6 = vpop.f32.mrb[46].mxu0 }
0x224d   :  { %v3375_v7 = vpop.f32.mrb[47].mxu0 }
0x224e   :  { %v3384_v9 = vpack.c.bf16 %v5167_v6, %v3375_v7 }
0x2250   :  { %5173 = vmatmul.mubr.msk.bf16.vlgmr.msra.gmra.mrb[48].mxu0 %vm186_vm1, %v3384_v9 }
0x2251   :  { %3645 = vmatprep.mubr.bf16.mxu0 %v5645_v31  ;;  %v5485_v31 = vld [vmem:[%s6830_s10 + $0x80] ss:$8 sps:$4 sm:$0xff]  }
0x2252   :  { %3614 = vmatpush1.bf16.msra.mxu0 %v5485_v31 }
0x2323   :  { %v3439_v10 = vpop.f32.mrb[48].mxu0 }
0x2324   :  { %v3446_v12 = vadd.f32 %v3439_v10, %v6539_v34  ;;  %v5174_v17 = vpop.f32.mrb[49].mxu0  ;;  %v4465_v10 = vld [vmem:[%s6829_s9 + $0x1] ss:$0 sm:$0xff] }
0x2325   :  { %v3442_v19 = vpop.f32.mrb[50].mxu0 }
0x2326   :  { %v3448_v22 = vadd.f32 %v3446_v12, %v6282_v13  ;;  %v3447_v8 = vadd.f32 %v3442_v19, %v6542_v37  ;;  %v5175_v18 = vpop.f32.mrb[51].mxu0  ;;  %v5490_v13 = vld [vmem:[%s6830_s10 + $0x94] ss:$8 sps:$4 sm:$0xff]  }
0x2327   :  { %3615 = vmatprep.subr.bf16.mxu0 %v5490_v13  ;;  %v5522_v18 = vld [vmem:[%s6832_s12 + $0xb0] sm:$0xff]  }
0x2328   :  { %v3449_v23 = vadd.f32 %v3447_v8, %v6284_v15  ;;  %v3458_v20 = vadd.f32 %v4461_v21, %v3448_v22  ;;  %v5488_v15 = vld [vmem:[%s6830_s10 + $0x90] ss:$8 sps:$4 sm:$0xff]   ;;  %v5520_v22 = vld [vmem:[%s6832_s12 + $0xa8] sm:$0xff]  }
0x2329   :  { %3616 = vmatpush1.bf16.msra.mxu0 %v5488_v15  ;;  %4770 = vmatpush3.bf16.msra.mxu1 %v5520_v22  ;;  %v5521_v8 = vld [vmem:[%s6832_s12 + $0xf0] sm:$0xff]   ;;  %v3999_v22 = vld [vmem:[%s6837_s17 + $0x48] sm:$0xff] }
0x232a   :  { %3464 = vadd.xlane.f32.xlu0 %v3458_v20  ;;  %v3459_v32 = vadd.f32 %v4461_v21, %v3449_v23  ;;  %3617 = vmatprep.subr.bf16.mxu0 %v5493_v40  ;;  %v5523_v23 = vld [vmem:[%s6832_s12 + $0xf8] sm:$0xff]  }
0x232b   :  { %4771 = vmatprep.subr.bf16.mxu1 %v5521_v8 }
0x232c   :  { %3466 = vadd.xlane.f32.xlu1 %v3459_v32 }
0x232d   :  { %3618 = vmatpush1.bf16.msra.mxu0 %v5491_v30  ;;  %4772 = vmatpush3.bf16.msra.mxu1 %v5522_v18  ;;  %v4000_v18 = vld [vmem:[%s6837_s17 + $0x50] sm:$0xff] }
0x232e   :  { %3619 = vmatprep.subr.bf16.mxu0 %v5496_v41  ;;  %4773 = vmatprep.subr.bf16.mxu1 %v5523_v23  ;;  %v4001_v23 = vld [vmem:[%s6837_s17 + $0x58] sm:$0xff] }
0x2331   :  { %3620 = vmatpush1.bf16.msra.mxu0 %v5494_v42 }
0x2332   :  { %3621 = vmatprep.subr.bf16.mxu0 %v5499_v43 }
0x2335   :  { %3622 = vmatpush1.bf16.msra.mxu0 %v5497_v11 }
0x2336   :  { %3623 = vmatprep.subr.bf16.mxu0 %v5502_v44 }
0x2339   :  { %3624 = vmatpush1.bf16.msra.mxu0 %v5500_v28 }
0x233a   :  { %3625 = vmatprep.subr.bf16.mxu0 %v5505_v45 }
0x233d   :  { %3626 = vmatpush1.bf16.msra.mxu0 %v5503_v46 }
0x233e   :  { %3627 = vmatprep.subr.bf16.mxu0 %v5508_v47 }
0x2341   :  { %3628 = vmatpush1.bf16.msra.mxu0 %v5506_v48 }
0x2342   :  { %5176 = vmatprep.subr.bf16.mxu0 %v5643_v1 }
0x23b7   :  { %v3465_v33 = vpop.xlane.xlu0 %3464 }
0x23b8   :  { %v3468_v34 = vmul.f32 0.0078125, %v3465_v33 }
0x23b9   :  { %v3467_v35 = vpop.xlane.xlu1 %3466 }
0x23ba   :  { %v6594_v36 = vsub.f32 %v3458_v20, %v3468_v34  ;;  %v3469_v37 = vmul.f32 0.0078125, %v3467_v35  ;;  %v5524_v20 = vld [vmem:[%s6832_s12 + $0xb8] sm:$0xff]  }
0x23bb   :  { %4774 = vmatpush3.bf16.msra.mxu1 %v5524_v20  ;;  %v5347_v20 = vpack.c.bf16 %v4001_v23, %v4000_v18 }
0x23bc   :  { %v6596_v38 = vsub.f32 %v3459_v32, %v3469_v37  ;;  %v3472_v39 = vmul.f32 %v6594_v36, %v6594_v36  ;;  %v4482_v32 = vld [vmem:[%s6831_s11 + $0x2] sm:$0x3] }
0x23bd   :  { %v3526_v31 = vrot.slane %v4482_v32, %v1616_v4  ;;  %v3530_v16 = vrot.slane %v4482_v32, %v1620_v5  ;;  %v4002_v32 = vld [vmem:[%s6837_s17 + $0x60] sm:$0xff] }
0x23be   :  { %3474 = vadd.xlane.f32.xlu0 %v3472_v39  ;;  %v3473_v24 = vmul.f32 %v6596_v38, %v6596_v38 }
0x23c0   :  { %3476 = vadd.xlane.f32.xlu1 %v3473_v24 }
0x244b   :  { %v3475_v58 = vpop.xlane.xlu0 %3474 }
0x244c   :  { %v3478_v59 = vmul.f32 0.0078125, %v3475_v58  ;;  %v5528_v58 = vld [vmem:[%s6836_s16 + $0x18] sm:$0xff]  }
0x244d   :  { %v3477_v60 = vpop.xlane.xlu1 %3476 }
0x244e   :  { %v3480_v61 = vadd.f32 1e-05, %v3478_v59  ;;  %v3479_v62 = vmul.f32 0.0078125, %v3477_v60  ;;  %v5529_v59 = vld [vmem:[%s6836_s16 + $0x20] sm:$0xff]   ;;  %v5530_v60 = vld [vmem:[%s6836_s16 + $0x28] sm:$0xff]  }
0x2450   :  { %5605 = vrsqrt.f32 %v3480_v61  ;;  %v3481_v63 = vadd.f32 1e-05, %v3479_v62  ;;  %v5531_v61 = vld [vmem:[%s6836_s16 + $0x30] sm:$0xff]   ;;  %v5532_v62 = vld [vmem:[%s6836_s16 + $0x38] sm:$0xff]  }
0x2452   :  { %5607 = vrsqrt.f32 %v3481_v63  ;;  %v3990_v63 = vld [vmem:[%s6837_s17] sm:$0xff] }
0x245a   :  { %v5606_v0 = vpop.eup %5605 }
0x245b   :  { %v3484_v14 = vmul.f32 %v5606_v0, %v6594_v36  ;;  %v3991_v0 = vld [vmem:[%s6837_s17 + $0x8] sm:$0xff] }
0x245c   :  { %v5608_v6 = vpop.eup %5607 }
0x245d   :  { %v3485_v7 = vmul.f32 %v5608_v6, %v6596_v38  ;;  %v3492_v9 = vmul.f32 %v4464_v2, %v3484_v14  ;;  %v5327_v14 = vpack.c.bf16 %v3991_v0, %v3990_v63  ;;  %v3993_v6 = vld [vmem:[%s6837_s17 + $0x18] sm:$0xff] }
0x245f   :  { %v3493_v12 = vmul.f32 %v4464_v2, %v3485_v7  ;;  %v3500_v17 = vadd.f32 %v4465_v10, %v3492_v9  ;;  %v3992_v2 = vld [vmem:[%s6837_s17 + $0x10] sm:$0xff]  ;;  %v3995_v9 = vld [vmem:[%s6837_s17 + $0x28] sm:$0xff]  ;;  %5328 = vmatprep.subr.bf16.mxu1 %v5327_v14 }
0x2460   :  { %v5331_v7 = vpack.c.bf16 %v3993_v6, %v3992_v2 }
0x2461   :  { %v3501_v19 = vadd.f32 %v4465_v10, %v3493_v12  ;;  %v3996_v12 = vld [vmem:[%s6837_s17 + $0x30] sm:$0xff] }
0x2463   :  { %v3502_v21 = vpack.c.bf16 %v3501_v19, %v3500_v17 }
0x2465   :  { %3646 = vmatmul.mubr.bf16.vlgmr.msra.gmra.mrb[52].mxu0 %v3502_v21  ;;  %v3998_v21 = vld [vmem:[%s6837_s17 + $0x40] sm:$0xff] }
0x2466   :  { %5192 = vmatprep.mubr.msk.bf16.mxu0 %vm5644_vm0, %v5643_v1  ;;  %5177 = vmatpush3.bf16.msra.mxu0 %v5525_v49  ;;  %v5343_v8 = vpack.c.bf16 %v3999_v22, %v3998_v21 }
0x2467   :  { %5178 = vmatprep.subr.bf16.mxu0 %v5643_v1 }
0x246a   :  { %5179 = vmatpush3.bf16.msra.mxu0 %v5526_v50 }
0x246b   :  { %5180 = vmatprep.subr.bf16.mxu0 %v5643_v1 }
0x246e   :  { %5181 = vmatpush3.bf16.msra.mxu0 %v5527_v57 }
0x246f   :  { %5182 = vmatprep.subr.bf16.mxu0 %v5643_v1 }
0x2472   :  { %5183 = vmatpush3.bf16.msra.mxu0 %v5528_v58 }
0x2473   :  { %5184 = vmatprep.subr.bf16.mxu0 %v5643_v1 }
0x2476   :  { %5185 = vmatpush3.bf16.msra.mxu0 %v5529_v59 }
0x2477   :  { %5186 = vmatprep.subr.bf16.mxu0 %v5643_v1 }
0x247a   :  { %5187 = vmatpush3.bf16.msra.mxu0 %v5530_v60 }
0x247b   :  { %5188 = vmatprep.subr.bf16.mxu0 %v5643_v1 }
0x247e   :  { %5189 = vmatpush3.bf16.msra.mxu0 %v5531_v61 }
0x247f   :  { %5190 = vmatprep.subr.bf16.mxu0 %v5643_v1  ;;  %v3994_v1 = vld [vmem:[%s6837_s17 + $0x20] sm:$0xff] }
0x2480   :  { %v5335_v10 = vpack.c.bf16 %v3995_v9, %v3994_v1 }
0x2482   :  { %5191 = vmatpush3.bf16.msra.mxu0 %v5532_v62 }
0x2538   :  { %v3647_v13 = vpop.f32.mrb[52].mxu0 }
0x2539   :  { %v3648_v15 = vadd.f32 %v3647_v13, %v3526_v31  ;;  %v3649_v33 = vpop.f32.mrb[53].mxu0  ;;  %v4004_v13 = vld [vmem:[%s6837_s17 + $0x70] sm:$0xff] }
0x253a   :  { %v3650_v34 = vadd.f32 %v3649_v33, %v3530_v16  ;;  %v3651_v35 = vpop.f32.mrb[54].mxu0 }
0x253b   :  { %v3652_v36 = vadd.f32 %v3651_v35, %v3526_v31  ;;  %v3653_v37 = vpop.f32.mrb[55].mxu0  ;;  %v3656_v39 = vmax.f32 %v3648_v15, 0.0  ;;  %v4003_v31 = vld [vmem:[%s6837_s17 + $0x68] sm:$0xff]  ;;  %v4005_v15 = vld [vmem:[%s6837_s17 + $0x78] sm:$0xff] }
0x253c   :  { %v3654_v38 = vadd.f32 %v3653_v37, %v3530_v16  ;;  %v3657_v40 = vmax.f32 %v3650_v34, 0.0  ;;  %v5351_v16 = vpack.c.bf16 %v4003_v31, %v4002_v32  ;;  %v5355_v33 = vpack.c.bf16 %v4005_v15, %v4004_v13 }
0x253d   :  { %v3658_v24 = vmax.f32 %v3652_v36, 0.0 }
0x253e   :  { %v3659_v30 = vmax.f32 %v3654_v38, 0.0 }
0x253f   :  { %v3660_v41 = vpack.c.bf16 %v3658_v24, %v3656_v39 }
0x2540   :  { %v3661_v42 = vpack.c.bf16 %v3659_v30, %v3657_v40  ;;  %v4551_v40 = vld [vmem:[%s6834_s14 + $0x1] ss:$0 sm:$0xff]  ;;  %s5646_s14 = smov [#allocation2]  }
0x2541   :  { %s4094_s16 = sshll.u32 %s5646_s14, 4  ;;  %s4095_s16 = int_to_ptr.vmem [resolvable:$true] %s4094_s16 }
0x2542   :  { %3831 = vmatprep.mubr.bf16.mxu1 %v3661_v42  ;;  %p5624_p1 = scmp.lt.s32.totalorder %s4095_s16, %s4095_s16 }
0x2543   :  { %3832 = vmatmul.mubr.bf16.vlgmr.msra.gmra.mrb[52].mxu1 %v3660_v41 }
0x2544   :  { %5330 = vmatpush3.bf16.msra.mxu1 %v5327_v14 }
0x2545   :  { %5332 = vmatprep.subr.bf16.mxu1 %v5331_v7 }
0x2548   :  { %5334 = vmatpush3.bf16.msra.mxu1 %v5331_v7 }
0x2549   :  { %5336 = vmatprep.subr.bf16.mxu1 %v5335_v10 }
0x254c   :  { %5338 = vmatpush3.bf16.msra.mxu1 %v5335_v10 }
0x2616   :  { %v4775_v4 = vpop.f32.mrb[52].mxu1 }
0x2617   :  { %v4776_v5 = vpop.f32.mrb[53].mxu1 }
0x2618   :  { %v4777_v43 = vadd.f32 %v4776_v5, %v4775_v4  ;;  %v4778_v11 = vpop.f32.mrb[54].mxu1 }
0x2619   :  { %v4779_v44 = vpop.f32.mrb[55].mxu1 }
0x261a   :  { %v3834_v28 = vadd.f32 %v4777_v43, %v4532_v3  ;;  %v4780_v45 = vadd.f32 %v4779_v44, %v4778_v11 }
0x261c   :  { %v3837_v46 = vadd.f32 %v4780_v45, %v4532_v3  ;;  %v3840_v47 = vadd.f32 %v3834_v28, %v3500_v17  ;;  %v3997_v17 = vld [vmem:[%s6837_s17 + $0x38] sm:$0xff]  ;;  %v4552_v3 = vld [vmem:[%s6835_s15 + $0x1] ss:$0 sm:$0xff]  ;;  %s5619_s15 = scalar_lea.vmem %s4095_s16, 256 }
0x261d   :  { %p5620_p0 = scmp.ne.s32.totalorder %s4095_s16, %s5619_s15  ;;  %p5625_p2 = scmp.lt.s32.totalorder %s5619_s15, %s5619_s15 }
0x261e   :  { %3846 = vadd.xlane.f32.xlu0 %v3840_v47  ;;  %v3841_v48 = vadd.f32 %v3837_v46, %v3501_v19  ;;  %v5339_v19 = vpack.c.bf16 %v3997_v17, %v3996_v12 }
0x261f   :  { %p5626_p3 = por %p5625_p2, %p5624_p1 }
0x2620   :  { %3848 = vadd.xlane.f32.xlu1 %v3841_v48  ;;  %5340 = vmatprep.subr.bf16.mxu1 %v5339_v19 }
0x2621   :  { %5342 = vmatpush3.bf16.msra.mxu1 %v5339_v19  ;;  %p5627_p4 = pnand %p5626_p3, %p5620_p0 }
0x2622   :  { %5344 = vmatprep.subr.bf16.mxu1 %v5343_v8 }
0x2625   :  { %5346 = vmatpush3.bf16.msra.mxu1 %v5343_v8 }
0x2626   :  { %5348 = vmatprep.subr.bf16.mxu1 %v5347_v20 }
0x2629   :  { %5350 = vmatpush3.bf16.msra.mxu1 %v5347_v20 }
0x262a   :  { %5352 = vmatprep.subr.bf16.mxu1 %v5351_v16 }
0x262d   :  { %5354 = vmatpush3.bf16.msra.mxu1 %v5351_v16 }
0x262e   :  { %5356 = vmatprep.subr.bf16.mxu1 %v5355_v33 }
0x2631   :  { %5358 = vmatpush3.bf16.msra.mxu1 %v5355_v33 }
0x26ab   :  { %v3847_v51 = vpop.xlane.xlu0 %3846 }
0x26ac   :  { %v3850_v52 = vmul.f32 0.0078125, %v3847_v51 }
0x26ad   :  { %v3849_v53 = vpop.xlane.xlu1 %3848 }
0x26ae   :  { %v6715_v54 = vsub.f32 %v3840_v47, %v3850_v52  ;;  %v3851_v55 = vmul.f32 0.0078125, %v3849_v53 }
0x26b0   :  { %v6717_v29 = vsub.f32 %v3841_v48, %v3851_v55  ;;  %v3854_v27 = vmul.f32 %v6715_v54, %v6715_v54 }
0x26b2   :  { %3856 = vadd.xlane.f32.xlu0 %v3854_v27  ;;  %v3855_v56 = vmul.f32 %v6717_v29, %v6717_v29 }
0x26b4   :  { %3858 = vadd.xlane.f32.xlu1 %v3855_v56 }
0x273f   :  { %v3857_v34 = vpop.xlane.xlu0 %3856 }
0x2740   :  { %v3860_v35 = vmul.f32 0.0078125, %v3857_v34 }
0x2741   :  { %v3859_v36 = vpop.xlane.xlu1 %3858 }
0x2742   :  { %v3862_v37 = vadd.f32 1e-05, %v3860_v35  ;;  %v3861_v38 = vmul.f32 0.0078125, %v3859_v36 }
0x2744   :  { %5609 = vrsqrt.f32 %v3862_v37  ;;  %v3863_v39 = vadd.f32 1e-05, %v3861_v38 }
0x2746   :  { %5611 = vrsqrt.f32 %v3863_v39 }
0x274e   :  { %v5610_v24 = vpop.eup %5609 }
0x274f   :  { %v3866_v30 = vmul.f32 %v5610_v24, %v6715_v54 }
0x2750   :  { %v5612_v41 = vpop.eup %5611 }
0x2751   :  { %v3867_v42 = vmul.f32 %v5612_v41, %v6717_v29  ;;  %v3874_v4 = vmul.f32 %v4551_v40, %v3866_v30 }
0x2753   :  { %v3875_v5 = vmul.f32 %v4551_v40, %v3867_v42  ;;  %v3882_v43 = vadd.f32 %v4552_v3, %v3874_v4 }
0x2755   :  { %v3883_v11 = vadd.f32 %v4552_v3, %v3875_v5 }
0x2757   :  { %v3884_v44 = vpack.c.bf16 %v3883_v11, %v3882_v43 }
0x2759   :  { %5193 = vmatmul.mubr.bf16.vlgmr.msra.gmra.mrb[56].mxu0 %v3884_v44 }
0x282c   :  { %v3983_v28 = vpop.f32.mrb[56].mxu0 }
0x282d   :  { %v5194_v45 = vpop.f32.mrb[57].mxu0  ;;  %5228 = vmatprep.mubr.f32.mxu1 %v3983_v28 }
0x282e   :  { %v3986_v46 = vpop.f32.mrb[58].mxu0 }
0x282f   :  { %v5195_v47 = vpop.f32.mrb[59].mxu0  ;;  %5229 = vmatmul.mubr.f32.vlgmr.msra.gmra.mrb[56].mxu1 %v3986_v46 }
0x2902   :  { %v5230_v48 = vpop.f32.mrb[56].mxu1 }
0x2903   :  { %5613 = vtanh.f32 %v5230_v48  ;;  %v4072_v49 = vpop.f32.mrb[57].mxu1 }
0x2904   :  { %5615 = vtanh.f32 %v4072_v49 }
0x290d   :  { %v5614_v50 = vpop.eup %5613 }
0x290e   :  { %v5616_v51 = vpop.eup %5615  ;;  %v4084_v52 = vmul.f32 10.0, %v5614_v50 }
0x290f   :  { %v4083_v53 = vmul.f32 10.0, %v5616_v51 }
0x2910   :  { %v4086_v54 = vsel %vm66_vm3, -1e+08, %v4084_v52 }
0x2911   :  { %4088 = vst.msk [vmem:[#allocation2 + $0x8] sm:$0xff] %vm268_vm4, %v4086_v54  ;;  %v4085_v55 = vsel %vm65_vm2, -1e+08, %v4083_v53 }
0x2912   :  { %4087 = vst.msk [vmem:[#allocation2] sm:$0xff] %vm268_vm4, %v4085_v55 }
0x2913   :  { %5630 = shalt.err (!%p5627_p4)
}
0x2914   :  { %s5631_s29 = scalar_lea.hbm %s6838_s18, 256 }
0x2915   :  { %p5632_p5 = scmp.ne.s32.totalorder %s6838_s18, %s5631_s29  ;;  %p5635_p6 = scmp.lt.u32.totalorder %s5631_s29, %s6838_s18 }
0x2917   :  { %p5637_p7 = pnand %p5635_p6, %p5632_p5 }
0x2919   :  { %5640 = shalt.err (!%p5637_p7)
}
0x291a   :  { %s5647_s3 = smov 128   ;;  %s5648_s4 = smov 8  }
0x291b   :  { %4100 = dma.vmem_to_hbm [thread:$0]  %s4095_s16, 256, %s6838_s18, [#allocation3], %s5647_s3, %s5647_s3, %s5648_s4  }
0x291c   :  { %5641 = dma.done.wait [#allocation3], 256  }
0x291d   :  { %5642 = vsyncadd [#allocation3], 4294967040 }
0x291e   :  { %4104 = vsyncpa [#allocation3], 1 }

</bundles_post_ra>
